<compile_context>
chip_gen: v7x
topology: tpu7x:2x2x1
jax: 0.10.0
libtpu: 0.0.40
codegen_flags: <defaults>
</compile_context>

<pallas_src>
import math
from functools import partial

import numpy as np
import jax
import jax.numpy as jnp
from jax import lax
from jax.experimental import pallas as pl
from jax.experimental.pallas import tpu as pltpu

# ---------------------------------------------------------------------------
# Scaled-down versions of the basic-pitch constants so the demo stays small.
# (Structure of the computation is identical; only magnitudes are reduced.)
# ---------------------------------------------------------------------------
AUDIO_SAMPLE_RATE = 4096
FFT_HOP = 128
ANNOTATIONS_BASE_FREQUENCY = 64.0
ANNOTATIONS_N_SEMITONES = 24
CONTOURS_BINS_PER_SEMITONE = 2
MAX_N_SEMITONES = int(
    np.floor(12.0 * np.log2(0.5 * AUDIO_SAMPLE_RATE / ANNOTATIONS_BASE_FREQUENCY))
)

# plain Python float -> traced as a jaxpr literal, NOT a captured device const
TEN_OVER_LN10 = float(10.0 / math.log(10.0))


# ---------------------------------------------------------------------------
# Deterministic CQT filterbank (cos / sin kernels), nnAudio CQT1992v2 style.
# ---------------------------------------------------------------------------
def make_cqt_kernels(sr, fmin, n_bins, bins_per_octave):
    Q = 1.0 / (2.0 ** (1.0 / bins_per_octave) - 1.0)
    freqs = fmin * 2.0 ** (np.arange(n_bins) / bins_per_octave)
    assert freqs.max() <= sr / 2.0, "CQT bin above Nyquist"
    lengths = np.ceil(Q * sr / freqs).astype(np.int64)
    K = int(2 ** np.ceil(np.log2(lengths.max())))
    kern = np.zeros((n_bins, K), dtype=np.complex128)
    for k in range(n_bins):
        l = int(lengths[k])
        start = int(np.ceil(K / 2.0 - l / 2.0))
        sig = (
            np.hanning(l)
            * np.exp(1j * 2.0 * np.pi * freqs[k] * np.arange(l) / sr)
            / l
        )
        # librosa-style magnitude normalization (sqrt(length)) folded into kernel
        sig = sig * np.sqrt(l)
        kern[k, start : start + l] = sig
    w_real = np.real(kern).T.astype(np.float32)  # (K, n_bins)
    w_imag = np.imag(kern).T.astype(np.float32)  # (K, n_bins)
    return w_real, w_imag, K


# ---------------------------------------------------------------------------
# Fused Pallas kernel: framed-LHS build + single K=4096 CQT power matmul +
# NormalizedLog epilogue.  One invocation handles the whole batch (B folded
# into M) so the MXU sees (B*t_pad, K) x (K, 2*nb_pad).
# ---------------------------------------------------------------------------
def _make_fused_cqt_normlog_kernel(B, n_shift, hop, t_pad, t_valid, nb_pad, n_bins):
    def kernel(x_ref, w_ref, o_ref, frames_ref):
        # x_ref     : (B, rows_pad, hop)   f32   reflect-padded audio, hop samples/row
        # w_ref     : (K, 2*nb_pad)        bf16  [Wr | Wi] filterbank (K = n_shift*hop)
        # o_ref     : (B, t_pad, nb_pad)   f32   normalized log-power (lane padded)
        # frames_ref: (B*t_pad, K)         bf16  VMEM scratch, framed LHS

        # ---- framing: frame[t, j*hop + r] == x[t + j, r] ------------------
        # One f32->bf16 cast per batch element (hoisted out of the shift loop);
        # n_shift lane-aligned column writes into the scratch — the sublane
        # realign of the unaligned row-shifts is paid once here, not per matmul.
        for b in range(B):
            xb = x_ref[b].astype(jnp.bfloat16)          # (rows_pad, hop) bf16
            r0 = b * t_pad
            for j in range(n_shift):                    # static unroll
                frames_ref[r0 : r0 + t_pad, j * hop : (j + 1) * hop] = xb[j : j + t_pad, :]

        # ---- ONE MXU contraction over K (accumulate in the MXU result buf) -
        acc = jnp.dot(frames_ref[...], w_ref[...],
                      preferred_element_type=jnp.float32)  # (B*t_pad, 2*nb_pad) f32

        re = acc[:, :nb_pad]
        im = acc[:, nb_pad:]
        power = re * re + im * im      # |CQT|^2 — no sqrt, NormalizedLog squares anyway

        # ---- NormalizedLog: 10*log10(power + 1e-10), per-batch min/max scale
        log_power = TEN_OVER_LN10 * jnp.log(power + 1e-10)   # (B*t_pad, nb_pad)

        rows = lax.broadcasted_iota(jnp.int32, (t_pad, nb_pad), 0)
        cols = lax.broadcasted_iota(jnp.int32, (t_pad, nb_pad), 1)
        valid = (rows < t_valid) & (cols < n_bins)            # mask padded frames/bins

        for b in range(B):                                    # static unroll (B small)
            lp = log_power[b * t_pad : (b + 1) * t_pad, :]    # sublane-aligned slice
            # both reductions run directly on log_power (no serial min->sub->max chain)
            lp_min = jnp.min(jnp.where(valid, lp, 3.0e38), keepdims=True)    # (1,1)
            lp_max = jnp.max(jnp.where(valid, lp, -3.0e38), keepdims=True)   # (1,1)
            off_max = lp_max - lp_min                                        # (1,1)
            # scalar reciprocal before the broadcast; mul folds the broadcast
            inv = pl.reciprocal(jnp.maximum(off_max, 1e-20), approx=True)    # (1,1)
            keep = valid & (off_max > 0.0)    # == torch's where(off_max != 0, ..., 0)
            o_ref[b] = jnp.where(keep, (lp - lp_min) * inv, 0.0)

    return kernel


# ---------------------------------------------------------------------------
# Full NormalizedCQT forward
# ---------------------------------------------------------------------------
@partial(jax.jit, static_argnames=("n_harmonics", "use_batchnorm"))
def normalized_cqt(audio, n_harmonics=4, use_batchnorm=True):
    """audio: (B, n_samples, 1) float32 -> (B, 1, n_frames, n_bins) float32."""
    B, n_samples, _ = audio.shape
    hop = FFT_HOP

    n_semitones = int(
        np.min(
            [
                int(np.ceil(12.0 * np.log2(n_harmonics)) + ANNOTATIONS_N_SEMITONES),
                MAX_N_SEMITONES,
            ]
        )
    )
    n_bins = n_semitones * CONTOURS_BINS_PER_SEMITONE
    bins_per_octave = 12 * CONTOURS_BINS_PER_SEMITONE

    wr, wi, K = make_cqt_kernels(
        AUDIO_SAMPLE_RATE, ANNOTATIONS_BASE_FREQUENCY, n_bins, bins_per_octave
    )
    # TODO(synk): in-kernel framing assumes K % hop == 0 (true for these constants);
    # general K would need an extra remainder shift.
    assert K % hop == 0
    n_shift = K // hop

    # ---- weight prep: concat Wr|Wi along N, pad bins to 128 lanes, bf16 ----
    nb_pad = ((n_bins + 127) // 128) * 128
    w = np.concatenate(
        [
            np.pad(wr, ((0, 0), (0, nb_pad - n_bins))),
            np.pad(wi, ((0, 0), (0, nb_pad - n_bins))),
        ],
        axis=1,
    )  # (K, 2*nb_pad)
    w_bf16 = jnp.asarray(w, dtype=jnp.bfloat16)

    # ---- glue: reflect pad (center=True) + reshape into hop-sample rows ----
    # No strided gather: frame[t, j*hop + r] == x_mat[t + j, r].
    x = audio[..., 0]  # (B, N)
    pad = K // 2
    x_pad = jnp.pad(x, ((0, 0), (pad, pad)), mode="reflect")
    T = (x_pad.shape[1] - K) // hop + 1          # valid frames
    t_pad = ((T + 15) // 16) * 16                # bf16-sublane-pack aligned frame count
    rows_needed = t_pad - 1 + n_shift
    rows_pad = ((rows_needed + 7) // 8) * 8
    total = rows_pad * hop
    assert total >= x_pad.shape[1]
    x_pad = jnp.pad(x_pad, ((0, 0), (0, total - x_pad.shape[1])))
    x_mat = x_pad.reshape(B, rows_pad, hop)      # (B, rows_pad, hop) f32

    # ---- fused Pallas kernel: one invocation, batch folded into M ----------
    # TODO(synk): at production basic-pitch sizes add a frame-tile grid axis
    # (and CORE_PARALLEL / frame split for v7x's 2 TCs, pl.Buffered(1) on the
    # weight spec) so live VMEM stays bounded; at this demo scale one step
    # minimizes fixed overhead and maximizes MXU M-occupancy.
    kernel = _make_fused_cqt_normlog_kernel(B, n_shift, hop, t_pad, T, nb_pad, n_bins)
    out_padded = pl.pallas_call(
        kernel,
        out_shape=jax.ShapeDtypeStruct((B, t_pad, nb_pad), jnp.float32),
        grid_spec=pltpu.PrefetchScalarGridSpec(
            num_scalar_prefetch=0,
            grid=(1,),
            in_specs=[
                pl.BlockSpec((B, rows_pad, hop), lambda i: (0, 0, 0)),
                pl.BlockSpec((K, 2 * nb_pad), lambda i: (0, 0)),
            ],
            out_specs=pl.BlockSpec((B, t_pad, nb_pad), lambda i: (0, 0, 0)),
            scratch_shapes=[pltpu.VMEM((B * t_pad, K), jnp.bfloat16)],
        ),
        compiler_params=pltpu.CompilerParams(
            dimension_semantics=("arbitrary",),
        ),
    )(x_mat, w_bf16)

    # slice away lane / frame padding only here (kernel stores stay lane-dense)
    norm = out_padded[:, :T, :n_bins]  # (B, n_frames, n_bins)

    # unsqueeze(1): torch carries (B,1,n_bins,T); we carry (B,1,T,n_bins), which
    # equals the torch result AFTER its final transpose(3, 2).
    out = norm[:, None, :, :]

    if use_batchnorm:
        # nn.BatchNorm2d(1) training mode: batch statistics over (N, H, W),
        # gamma=1, beta=0, eps=1e-5 (biased variance).
        mean = jnp.mean(out)
        var = jnp.mean((out - mean) ** 2)
        out = (out - mean) / jnp.sqrt(var + 1e-5)

    return out  # (B, 1, n_frames, n_bins)


if __name__ == "__main__":
    key = jax.random.PRNGKey(0)
    B, N_SAMPLES = 2, 4096
    audio = jax.random.normal(key, (B, N_SAMPLES, 1), dtype=jnp.float32)

    out = normalized_cqt(audio, n_harmonics=4, use_batchnorm=True)
    out = jax.block_until_ready(out)

    # expected: (B, 1, n_frames, n_bins) with n_frames = N/hop + 1, n_bins = 96
    expected_frames = N_SAMPLES // FFT_HOP + 1
    assert out.ndim == 4 and out.shape[0] == B and out.shape[1] == 1
    assert out.shape[2] == expected_frames
    assert out.shape[3] == 96
    assert bool(jnp.all(jnp.isfinite(out)))

    print("KERNEL_OK")
</pallas_src>

<mosaic_0001>
module attributes {stable_mosaic.version = 11 : i64} {
  func.func @kernel(%arg0: i32, %arg1: memref<2x80x128xf32, #tpu.memory_space<vmem>>, %arg2: memref<4096x256xbf16, #tpu.memory_space<vmem>>, %arg3: memref<2x48x128xf32, #tpu.memory_space<vmem>>, %arg4: memref<96x4096xbf16, #tpu.memory_space<vmem>>) attributes {dimension_semantics = [#tpu.dimension_semantics<arbitrary>], iteration_bounds = array<i64: 1>, scalar_prefetch = 0 : i64, scratch_operands = 1 : i64, tpu.core_type = #tpu.core_type<tc>, window_params = [{pipeline_mode = #tpu.pipeline_mode<synchronous>, transform_indices = @transform_0, window_bounds = array<i64: 2, 80, 128>}, {pipeline_mode = #tpu.pipeline_mode<synchronous>, transform_indices = @transform_1, window_bounds = array<i64: 4096, 256>}, {pipeline_mode = #tpu.pipeline_mode<synchronous>, transform_indices = @transform_2, window_bounds = array<i64: 2, 48, 128>}]} {
    %c0 = arith.constant 0 : index
    %c0_0 = arith.constant 0 : index
    %c0_1 = arith.constant 0 : index
    %0 = vector.load %arg1[%c0, %c0_0, %c0_1] : memref<2x80x128xf32, #tpu.memory_space<vmem>>, vector<1x80x128xf32>
    %1 = vector.shape_cast %0 : vector<1x80x128xf32> to vector<80x128xf32>
    %2 = arith.truncf %1 : vector<80x128xf32> to vector<80x128xbf16>
    %3 = vector.extract_strided_slice %2 {offsets = [0, 0], sizes = [48, 128], strides = [1, 1]} : vector<80x128xbf16> to vector<48x128xbf16>
    %c0_2 = arith.constant 0 : index
    %c0_3 = arith.constant 0 : index
    %4 = vector.load %arg4[%c0_2, %c0_3] : memref<96x4096xbf16, #tpu.memory_space<vmem>>, vector<48x128xbf16>
    tpu.vector_store %arg4[%c0_2, %c0_3], %3 {strides = array<i32>} : memref<96x4096xbf16, #tpu.memory_space<vmem>>, vector<48x128xbf16>,
    %5 = vector.extract_strided_slice %2 {offsets = [1, 0], sizes = [48, 128], strides = [1, 1]} : vector<80x128xbf16> to vector<48x128xbf16>
    %c0_4 = arith.constant 0 : index
    %c128 = arith.constant 128 : index
    %6 = vector.load %arg4[%c0_4, %c128] : memref<96x4096xbf16, #tpu.memory_space<vmem>>, vector<48x128xbf16>
    tpu.vector_store %arg4[%c0_4, %c128], %5 {strides = array<i32>} : memref<96x4096xbf16, #tpu.memory_space<vmem>>, vector<48x128xbf16>,
    %7 = vector.extract_strided_slice %2 {offsets = [2, 0], sizes = [48, 128], strides = [1, 1]} : vector<80x128xbf16> to vector<48x128xbf16>
    %c0_5 = arith.constant 0 : index
    %c256 = arith.constant 256 : index
    %8 = vector.load %arg4[%c0_5, %c256] : memref<96x4096xbf16, #tpu.memory_space<vmem>>, vector<48x128xbf16>
    tpu.vector_store %arg4[%c0_5, %c256], %7 {strides = array<i32>} : memref<96x4096xbf16, #tpu.memory_space<vmem>>, vector<48x128xbf16>,
    %9 = vector.extract_strided_slice %2 {offsets = [3, 0], sizes = [48, 128], strides = [1, 1]} : vector<80x128xbf16> to vector<48x128xbf16>
    %c0_6 = arith.constant 0 : index
    %c384 = arith.constant 384 : index
    %10 = vector.load %arg4[%c0_6, %c384] : memref<96x4096xbf16, #tpu.memory_space<vmem>>, vector<48x128xbf16>
    tpu.vector_store %arg4[%c0_6, %c384], %9 {strides = array<i32>} : memref<96x4096xbf16, #tpu.memory_space<vmem>>, vector<48x128xbf16>,
    %11 = vector.extract_strided_slice %2 {offsets = [4, 0], sizes = [48, 128], strides = [1, 1]} : vector<80x128xbf16> to vector<48x128xbf16>
    %c0_7 = arith.constant 0 : index
    %c512 = arith.constant 512 : index
    %12 = vector.load %arg4[%c0_7, %c512] : memref<96x4096xbf16, #tpu.memory_space<vmem>>, vector<48x128xbf16>
    tpu.vector_store %arg4[%c0_7, %c512], %11 {strides = array<i32>} : memref<96x4096xbf16, #tpu.memory_space<vmem>>, vector<48x128xbf16>,
    %13 = vector.extract_strided_slice %2 {offsets = [5, 0], sizes = [48, 128], strides = [1, 1]} : vector<80x128xbf16> to vector<48x128xbf16>
    %c0_8 = arith.constant 0 : index
    %c640 = arith.constant 640 : index
    %14 = vector.load %arg4[%c0_8, %c640] : memref<96x4096xbf16, #tpu.memory_space<vmem>>, vector<48x128xbf16>
    tpu.vector_store %arg4[%c0_8, %c640], %13 {strides = array<i32>} : memref<96x4096xbf16, #tpu.memory_space<vmem>>, vector<48x128xbf16>,
    %15 = vector.extract_strided_slice %2 {offsets = [6, 0], sizes = [48, 128], strides = [1, 1]} : vector<80x128xbf16> to vector<48x128xbf16>
    %c0_9 = arith.constant 0 : index
    %c768 = arith.constant 768 : index
    %16 = vector.load %arg4[%c0_9, %c768] : memref<96x4096xbf16, #tpu.memory_space<vmem>>, vector<48x128xbf16>
    tpu.vector_store %arg4[%c0_9, %c768], %15 {strides = array<i32>} : memref<96x4096xbf16, #tpu.memory_space<vmem>>, vector<48x128xbf16>,
    %17 = vector.extract_strided_slice %2 {offsets = [7, 0], sizes = [48, 128], strides = [1, 1]} : vector<80x128xbf16> to vector<48x128xbf16>
    %c0_10 = arith.constant 0 : index
    %c896 = arith.constant 896 : index
    %18 = vector.load %arg4[%c0_10, %c896] : memref<96x4096xbf16, #tpu.memory_space<vmem>>, vector<48x128xbf16>
    tpu.vector_store %arg4[%c0_10, %c896], %17 {strides = array<i32>} : memref<96x4096xbf16, #tpu.memory_space<vmem>>, vector<48x128xbf16>,
    %19 = vector.extract_strided_slice %2 {offsets = [8, 0], sizes = [48, 128], strides = [1, 1]} : vector<80x128xbf16> to vector<48x128xbf16>
    %c0_11 = arith.constant 0 : index
    %c1024 = arith.constant 1024 : index
    %20 = vector.load %arg4[%c0_11, %c1024] : memref<96x4096xbf16, #tpu.memory_space<vmem>>, vector<48x128xbf16>
    tpu.vector_store %arg4[%c0_11, %c1024], %19 {strides = array<i32>} : memref<96x4096xbf16, #tpu.memory_space<vmem>>, vector<48x128xbf16>,
    %21 = vector.extract_strided_slice %2 {offsets = [9, 0], sizes = [48, 128], strides = [1, 1]} : vector<80x128xbf16> to vector<48x128xbf16>
    %c0_12 = arith.constant 0 : index
    %c1152 = arith.constant 1152 : index
    %22 = vector.load %arg4[%c0_12, %c1152] : memref<96x4096xbf16, #tpu.memory_space<vmem>>, vector<48x128xbf16>
    tpu.vector_store %arg4[%c0_12, %c1152], %21 {strides = array<i32>} : memref<96x4096xbf16, #tpu.memory_space<vmem>>, vector<48x128xbf16>,
    %23 = vector.extract_strided_slice %2 {offsets = [10, 0], sizes = [48, 128], strides = [1, 1]} : vector<80x128xbf16> to vector<48x128xbf16>
    %c0_13 = arith.constant 0 : index
    %c1280 = arith.constant 1280 : index
    %24 = vector.load %arg4[%c0_13, %c1280] : memref<96x4096xbf16, #tpu.memory_space<vmem>>, vector<48x128xbf16>
    tpu.vector_store %arg4[%c0_13, %c1280], %23 {strides = array<i32>} : memref<96x4096xbf16, #tpu.memory_space<vmem>>, vector<48x128xbf16>,
    %25 = vector.extract_strided_slice %2 {offsets = [11, 0], sizes = [48, 128], strides = [1, 1]} : vector<80x128xbf16> to vector<48x128xbf16>
    %c0_14 = arith.constant 0 : index
    %c1408 = arith.constant 1408 : index
    %26 = vector.load %arg4[%c0_14, %c1408] : memref<96x4096xbf16, #tpu.memory_space<vmem>>, vector<48x128xbf16>
    tpu.vector_store %arg4[%c0_14, %c1408], %25 {strides = array<i32>} : memref<96x4096xbf16, #tpu.memory_space<vmem>>, vector<48x128xbf16>,
    %27 = vector.extract_strided_slice %2 {offsets = [12, 0], sizes = [48, 128], strides = [1, 1]} : vector<80x128xbf16> to vector<48x128xbf16>
    %c0_15 = arith.constant 0 : index
    %c1536 = arith.constant 1536 : index
    %28 = vector.load %arg4[%c0_15, %c1536] : memref<96x4096xbf16, #tpu.memory_space<vmem>>, vector<48x128xbf16>
    tpu.vector_store %arg4[%c0_15, %c1536], %27 {strides = array<i32>} : memref<96x4096xbf16, #tpu.memory_space<vmem>>, vector<48x128xbf16>,
    %29 = vector.extract_strided_slice %2 {offsets = [13, 0], sizes = [48, 128], strides = [1, 1]} : vector<80x128xbf16> to vector<48x128xbf16>
    %c0_16 = arith.constant 0 : index
    %c1664 = arith.constant 1664 : index
    %30 = vector.load %arg4[%c0_16, %c1664] : memref<96x4096xbf16, #tpu.memory_space<vmem>>, vector<48x128xbf16>
    tpu.vector_store %arg4[%c0_16, %c1664], %29 {strides = array<i32>} : memref<96x4096xbf16, #tpu.memory_space<vmem>>, vector<48x128xbf16>,
    %31 = vector.extract_strided_slice %2 {offsets = [14, 0], sizes = [48, 128], strides = [1, 1]} : vector<80x128xbf16> to vector<48x128xbf16>
    %c0_17 = arith.constant 0 : index
    %c1792 = arith.constant 1792 : index
    %32 = vector.load %arg4[%c0_17, %c1792] : memref<96x4096xbf16, #tpu.memory_space<vmem>>, vector<48x128xbf16>
    tpu.vector_store %arg4[%c0_17, %c1792], %31 {strides = array<i32>} : memref<96x4096xbf16, #tpu.memory_space<vmem>>, vector<48x128xbf16>,
    %33 = vector.extract_strided_slice %2 {offsets = [15, 0], sizes = [48, 128], strides = [1, 1]} : vector<80x128xbf16> to vector<48x128xbf16>
    %c0_18 = arith.constant 0 : index
    %c1920 = arith.constant 1920 : index
    %34 = vector.load %arg4[%c0_18, %c1920] : memref<96x4096xbf16, #tpu.memory_space<vmem>>, vector<48x128xbf16>
    tpu.vector_store %arg4[%c0_18, %c1920], %33 {strides = array<i32>} : memref<96x4096xbf16, #tpu.memory_space<vmem>>, vector<48x128xbf16>,
    %35 = vector.extract_strided_slice %2 {offsets = [16, 0], sizes = [48, 128], strides = [1, 1]} : vector<80x128xbf16> to vector<48x128xbf16>
    %c0_19 = arith.constant 0 : index
    %c2048 = arith.constant 2048 : index
    %36 = vector.load %arg4[%c0_19, %c2048] : memref<96x4096xbf16, #tpu.memory_space<vmem>>, vector<48x128xbf16>
    tpu.vector_store %arg4[%c0_19, %c2048], %35 {strides = array<i32>} : memref<96x4096xbf16, #tpu.memory_space<vmem>>, vector<48x128xbf16>,
    %37 = vector.extract_strided_slice %2 {offsets = [17, 0], sizes = [48, 128], strides = [1, 1]} : vector<80x128xbf16> to vector<48x128xbf16>
    %c0_20 = arith.constant 0 : index
    %c2176 = arith.constant 2176 : index
    %38 = vector.load %arg4[%c0_20, %c2176] : memref<96x4096xbf16, #tpu.memory_space<vmem>>, vector<48x128xbf16>
    tpu.vector_store %arg4[%c0_20, %c2176], %37 {strides = array<i32>} : memref<96x4096xbf16, #tpu.memory_space<vmem>>, vector<48x128xbf16>,
    %39 = vector.extract_strided_slice %2 {offsets = [18, 0], sizes = [48, 128], strides = [1, 1]} : vector<80x128xbf16> to vector<48x128xbf16>
    %c0_21 = arith.constant 0 : index
    %c2304 = arith.constant 2304 : index
    %40 = vector.load %arg4[%c0_21, %c2304] : memref<96x4096xbf16, #tpu.memory_space<vmem>>, vector<48x128xbf16>
    tpu.vector_store %arg4[%c0_21, %c2304], %39 {strides = array<i32>} : memref<96x4096xbf16, #tpu.memory_space<vmem>>, vector<48x128xbf16>,
    %41 = vector.extract_strided_slice %2 {offsets = [19, 0], sizes = [48, 128], strides = [1, 1]} : vector<80x128xbf16> to vector<48x128xbf16>
    %c0_22 = arith.constant 0 : index
    %c2432 = arith.constant 2432 : index
    %42 = vector.load %arg4[%c0_22, %c2432] : memref<96x4096xbf16, #tpu.memory_space<vmem>>, vector<48x128xbf16>
    tpu.vector_store %arg4[%c0_22, %c2432], %41 {strides = array<i32>} : memref<96x4096xbf16, #tpu.memory_space<vmem>>, vector<48x128xbf16>,
    %43 = vector.extract_strided_slice %2 {offsets = [20, 0], sizes = [48, 128], strides = [1, 1]} : vector<80x128xbf16> to vector<48x128xbf16>
    %c0_23 = arith.constant 0 : index
    %c2560 = arith.constant 2560 : index
    %44 = vector.load %arg4[%c0_23, %c2560] : memref<96x4096xbf16, #tpu.memory_space<vmem>>, vector<48x128xbf16>
    tpu.vector_store %arg4[%c0_23, %c2560], %43 {strides = array<i32>} : memref<96x4096xbf16, #tpu.memory_space<vmem>>, vector<48x128xbf16>,
    %45 = vector.extract_strided_slice %2 {offsets = [21, 0], sizes = [48, 128], strides = [1, 1]} : vector<80x128xbf16> to vector<48x128xbf16>
    %c0_24 = arith.constant 0 : index
    %c2688 = arith.constant 2688 : index
    %46 = vector.load %arg4[%c0_24, %c2688] : memref<96x4096xbf16, #tpu.memory_space<vmem>>, vector<48x128xbf16>
    tpu.vector_store %arg4[%c0_24, %c2688], %45 {strides = array<i32>} : memref<96x4096xbf16, #tpu.memory_space<vmem>>, vector<48x128xbf16>,
    %47 = vector.extract_strided_slice %2 {offsets = [22, 0], sizes = [48, 128], strides = [1, 1]} : vector<80x128xbf16> to vector<48x128xbf16>
    %c0_25 = arith.constant 0 : index
    %c2816 = arith.constant 2816 : index
    %48 = vector.load %arg4[%c0_25, %c2816] : memref<96x4096xbf16, #tpu.memory_space<vmem>>, vector<48x128xbf16>
    tpu.vector_store %arg4[%c0_25, %c2816], %47 {strides = array<i32>} : memref<96x4096xbf16, #tpu.memory_space<vmem>>, vector<48x128xbf16>,
    %49 = vector.extract_strided_slice %2 {offsets = [23, 0], sizes = [48, 128], strides = [1, 1]} : vector<80x128xbf16> to vector<48x128xbf16>
    %c0_26 = arith.constant 0 : index
    %c2944 = arith.constant 2944 : index
    %50 = vector.load %arg4[%c0_26, %c2944] : memref<96x4096xbf16, #tpu.memory_space<vmem>>, vector<48x128xbf16>
    tpu.vector_store %arg4[%c0_26, %c2944], %49 {strides = array<i32>} : memref<96x4096xbf16, #tpu.memory_space<vmem>>, vector<48x128xbf16>,
    %51 = vector.extract_strided_slice %2 {offsets = [24, 0], sizes = [48, 128], strides = [1, 1]} : vector<80x128xbf16> to vector<48x128xbf16>
    %c0_27 = arith.constant 0 : index
    %c3072 = arith.constant 3072 : index
    %52 = vector.load %arg4[%c0_27, %c3072] : memref<96x4096xbf16, #tpu.memory_space<vmem>>, vector<48x128xbf16>
    tpu.vector_store %arg4[%c0_27, %c3072], %51 {strides = array<i32>} : memref<96x4096xbf16, #tpu.memory_space<vmem>>, vector<48x128xbf16>,
    %53 = vector.extract_strided_slice %2 {offsets = [25, 0], sizes = [48, 128], strides = [1, 1]} : vector<80x128xbf16> to vector<48x128xbf16>
    %c0_28 = arith.constant 0 : index
    %c3200 = arith.constant 3200 : index
    %54 = vector.load %arg4[%c0_28, %c3200] : memref<96x4096xbf16, #tpu.memory_space<vmem>>, vector<48x128xbf16>
    tpu.vector_store %arg4[%c0_28, %c3200], %53 {strides = array<i32>} : memref<96x4096xbf16, #tpu.memory_space<vmem>>, vector<48x128xbf16>,
    %55 = vector.extract_strided_slice %2 {offsets = [26, 0], sizes = [48, 128], strides = [1, 1]} : vector<80x128xbf16> to vector<48x128xbf16>
    %c0_29 = arith.constant 0 : index
    %c3328 = arith.constant 3328 : index
    %56 = vector.load %arg4[%c0_29, %c3328] : memref<96x4096xbf16, #tpu.memory_space<vmem>>, vector<48x128xbf16>
    tpu.vector_store %arg4[%c0_29, %c3328], %55 {strides = array<i32>} : memref<96x4096xbf16, #tpu.memory_space<vmem>>, vector<48x128xbf16>,
    %57 = vector.extract_strided_slice %2 {offsets = [27, 0], sizes = [48, 128], strides = [1, 1]} : vector<80x128xbf16> to vector<48x128xbf16>
    %c0_30 = arith.constant 0 : index
    %c3456 = arith.constant 3456 : index
    %58 = vector.load %arg4[%c0_30, %c3456] : memref<96x4096xbf16, #tpu.memory_space<vmem>>, vector<48x128xbf16>
    tpu.vector_store %arg4[%c0_30, %c3456], %57 {strides = array<i32>} : memref<96x4096xbf16, #tpu.memory_space<vmem>>, vector<48x128xbf16>,
    %59 = vector.extract_strided_slice %2 {offsets = [28, 0], sizes = [48, 128], strides = [1, 1]} : vector<80x128xbf16> to vector<48x128xbf16>
    %c0_31 = arith.constant 0 : index
    %c3584 = arith.constant 3584 : index
    %60 = vector.load %arg4[%c0_31, %c3584] : memref<96x4096xbf16, #tpu.memory_space<vmem>>, vector<48x128xbf16>
    tpu.vector_store %arg4[%c0_31, %c3584], %59 {strides = array<i32>} : memref<96x4096xbf16, #tpu.memory_space<vmem>>, vector<48x128xbf16>,
    %61 = vector.extract_strided_slice %2 {offsets = [29, 0], sizes = [48, 128], strides = [1, 1]} : vector<80x128xbf16> to vector<48x128xbf16>
    %c0_32 = arith.constant 0 : index
    %c3712 = arith.constant 3712 : index
    %62 = vector.load %arg4[%c0_32, %c3712] : memref<96x4096xbf16, #tpu.memory_space<vmem>>, vector<48x128xbf16>
    tpu.vector_store %arg4[%c0_32, %c3712], %61 {strides = array<i32>} : memref<96x4096xbf16, #tpu.memory_space<vmem>>, vector<48x128xbf16>,
    %63 = vector.extract_strided_slice %2 {offsets = [30, 0], sizes = [48, 128], strides = [1, 1]} : vector<80x128xbf16> to vector<48x128xbf16>
    %c0_33 = arith.constant 0 : index
    %c3840 = arith.constant 3840 : index
    %64 = vector.load %arg4[%c0_33, %c3840] : memref<96x4096xbf16, #tpu.memory_space<vmem>>, vector<48x128xbf16>
    tpu.vector_store %arg4[%c0_33, %c3840], %63 {strides = array<i32>} : memref<96x4096xbf16, #tpu.memory_space<vmem>>, vector<48x128xbf16>,
    %65 = vector.extract_strided_slice %2 {offsets = [31, 0], sizes = [48, 128], strides = [1, 1]} : vector<80x128xbf16> to vector<48x128xbf16>
    %c0_34 = arith.constant 0 : index
    %c3968 = arith.constant 3968 : index
    %66 = vector.load %arg4[%c0_34, %c3968] : memref<96x4096xbf16, #tpu.memory_space<vmem>>, vector<48x128xbf16>
    tpu.vector_store %arg4[%c0_34, %c3968], %65 {strides = array<i32>} : memref<96x4096xbf16, #tpu.memory_space<vmem>>, vector<48x128xbf16>,
    %c1 = arith.constant 1 : index
    %c0_35 = arith.constant 0 : index
    %c0_36 = arith.constant 0 : index
    %67 = vector.load %arg1[%c1, %c0_35, %c0_36] : memref<2x80x128xf32, #tpu.memory_space<vmem>>, vector<1x80x128xf32>
    %68 = vector.shape_cast %67 : vector<1x80x128xf32> to vector<80x128xf32>
    %69 = arith.truncf %68 : vector<80x128xf32> to vector<80x128xbf16>
    %70 = vector.extract_strided_slice %69 {offsets = [0, 0], sizes = [48, 128], strides = [1, 1]} : vector<80x128xbf16> to vector<48x128xbf16>
    %c48 = arith.constant 48 : index
    %c0_37 = arith.constant 0 : index
    %71 = vector.load %arg4[%c48, %c0_37] : memref<96x4096xbf16, #tpu.memory_space<vmem>>, vector<48x128xbf16>
    tpu.vector_store %arg4[%c48, %c0_37], %70 {strides = array<i32>} : memref<96x4096xbf16, #tpu.memory_space<vmem>>, vector<48x128xbf16>,
    %72 = vector.extract_strided_slice %69 {offsets = [1, 0], sizes = [48, 128], strides = [1, 1]} : vector<80x128xbf16> to vector<48x128xbf16>
    %c48_38 = arith.constant 48 : index
    %c128_39 = arith.constant 128 : index
    %73 = vector.load %arg4[%c48_38, %c128_39] : memref<96x4096xbf16, #tpu.memory_space<vmem>>, vector<48x128xbf16>
    tpu.vector_store %arg4[%c48_38, %c128_39], %72 {strides = array<i32>} : memref<96x4096xbf16, #tpu.memory_space<vmem>>, vector<48x128xbf16>,
    %74 = vector.extract_strided_slice %69 {offsets = [2, 0], sizes = [48, 128], strides = [1, 1]} : vector<80x128xbf16> to vector<48x128xbf16>
    %c48_40 = arith.constant 48 : index
    %c256_41 = arith.constant 256 : index
    %75 = vector.load %arg4[%c48_40, %c256_41] : memref<96x4096xbf16, #tpu.memory_space<vmem>>, vector<48x128xbf16>
    tpu.vector_store %arg4[%c48_40, %c256_41], %74 {strides = array<i32>} : memref<96x4096xbf16, #tpu.memory_space<vmem>>, vector<48x128xbf16>,
    %76 = vector.extract_strided_slice %69 {offsets = [3, 0], sizes = [48, 128], strides = [1, 1]} : vector<80x128xbf16> to vector<48x128xbf16>
    %c48_42 = arith.constant 48 : index
    %c384_43 = arith.constant 384 : index
    %77 = vector.load %arg4[%c48_42, %c384_43] : memref<96x4096xbf16, #tpu.memory_space<vmem>>, vector<48x128xbf16>
    tpu.vector_store %arg4[%c48_42, %c384_43], %76 {strides = array<i32>} : memref<96x4096xbf16, #tpu.memory_space<vmem>>, vector<48x128xbf16>,
    %78 = vector.extract_strided_slice %69 {offsets = [4, 0], sizes = [48, 128], strides = [1, 1]} : vector<80x128xbf16> to vector<48x128xbf16>
    %c48_44 = arith.constant 48 : index
    %c512_45 = arith.constant 512 : index
    %79 = vector.load %arg4[%c48_44, %c512_45] : memref<96x4096xbf16, #tpu.memory_space<vmem>>, vector<48x128xbf16>
    tpu.vector_store %arg4[%c48_44, %c512_45], %78 {strides = array<i32>} : memref<96x4096xbf16, #tpu.memory_space<vmem>>, vector<48x128xbf16>,
    %80 = vector.extract_strided_slice %69 {offsets = [5, 0], sizes = [48, 128], strides = [1, 1]} : vector<80x128xbf16> to vector<48x128xbf16>
    %c48_46 = arith.constant 48 : index
    %c640_47 = arith.constant 640 : index
    %81 = vector.load %arg4[%c48_46, %c640_47] : memref<96x4096xbf16, #tpu.memory_space<vmem>>, vector<48x128xbf16>
    tpu.vector_store %arg4[%c48_46, %c640_47], %80 {strides = array<i32>} : memref<96x4096xbf16, #tpu.memory_space<vmem>>, vector<48x128xbf16>,
    %82 = vector.extract_strided_slice %69 {offsets = [6, 0], sizes = [48, 128], strides = [1, 1]} : vector<80x128xbf16> to vector<48x128xbf16>
    %c48_48 = arith.constant 48 : index
    %c768_49 = arith.constant 768 : index
    %83 = vector.load %arg4[%c48_48, %c768_49] : memref<96x4096xbf16, #tpu.memory_space<vmem>>, vector<48x128xbf16>
    tpu.vector_store %arg4[%c48_48, %c768_49], %82 {strides = array<i32>} : memref<96x4096xbf16, #tpu.memory_space<vmem>>, vector<48x128xbf16>,
    %84 = vector.extract_strided_slice %69 {offsets = [7, 0], sizes = [48, 128], strides = [1, 1]} : vector<80x128xbf16> to vector<48x128xbf16>
    %c48_50 = arith.constant 48 : index
    %c896_51 = arith.constant 896 : index
    %85 = vector.load %arg4[%c48_50, %c896_51] : memref<96x4096xbf16, #tpu.memory_space<vmem>>, vector<48x128xbf16>
    tpu.vector_store %arg4[%c48_50, %c896_51], %84 {strides = array<i32>} : memref<96x4096xbf16, #tpu.memory_space<vmem>>, vector<48x128xbf16>,
    %86 = vector.extract_strided_slice %69 {offsets = [8, 0], sizes = [48, 128], strides = [1, 1]} : vector<80x128xbf16> to vector<48x128xbf16>
    %c48_52 = arith.constant 48 : index
    %c1024_53 = arith.constant 1024 : index
    %87 = vector.load %arg4[%c48_52, %c1024_53] : memref<96x4096xbf16, #tpu.memory_space<vmem>>, vector<48x128xbf16>
    tpu.vector_store %arg4[%c48_52, %c1024_53], %86 {strides = array<i32>} : memref<96x4096xbf16, #tpu.memory_space<vmem>>, vector<48x128xbf16>,
    %88 = vector.extract_strided_slice %69 {offsets = [9, 0], sizes = [48, 128], strides = [1, 1]} : vector<80x128xbf16> to vector<48x128xbf16>
    %c48_54 = arith.constant 48 : index
    %c1152_55 = arith.constant 1152 : index
    %89 = vector.load %arg4[%c48_54, %c1152_55] : memref<96x4096xbf16, #tpu.memory_space<vmem>>, vector<48x128xbf16>
    tpu.vector_store %arg4[%c48_54, %c1152_55], %88 {strides = array<i32>} : memref<96x4096xbf16, #tpu.memory_space<vmem>>, vector<48x128xbf16>,
    %90 = vector.extract_strided_slice %69 {offsets = [10, 0], sizes = [48, 128], strides = [1, 1]} : vector<80x128xbf16> to vector<48x128xbf16>
    %c48_56 = arith.constant 48 : index
    %c1280_57 = arith.constant 1280 : index
    %91 = vector.load %arg4[%c48_56, %c1280_57] : memref<96x4096xbf16, #tpu.memory_space<vmem>>, vector<48x128xbf16>
    tpu.vector_store %arg4[%c48_56, %c1280_57], %90 {strides = array<i32>} : memref<96x4096xbf16, #tpu.memory_space<vmem>>, vector<48x128xbf16>,
    %92 = vector.extract_strided_slice %69 {offsets = [11, 0], sizes = [48, 128], strides = [1, 1]} : vector<80x128xbf16> to vector<48x128xbf16>
    %c48_58 = arith.constant 48 : index
    %c1408_59 = arith.constant 1408 : index
    %93 = vector.load %arg4[%c48_58, %c1408_59] : memref<96x4096xbf16, #tpu.memory_space<vmem>>, vector<48x128xbf16>
    tpu.vector_store %arg4[%c48_58, %c1408_59], %92 {strides = array<i32>} : memref<96x4096xbf16, #tpu.memory_space<vmem>>, vector<48x128xbf16>,
    %94 = vector.extract_strided_slice %69 {offsets = [12, 0], sizes = [48, 128], strides = [1, 1]} : vector<80x128xbf16> to vector<48x128xbf16>
    %c48_60 = arith.constant 48 : index
    %c1536_61 = arith.constant 1536 : index
    %95 = vector.load %arg4[%c48_60, %c1536_61] : memref<96x4096xbf16, #tpu.memory_space<vmem>>, vector<48x128xbf16>
    tpu.vector_store %arg4[%c48_60, %c1536_61], %94 {strides = array<i32>} : memref<96x4096xbf16, #tpu.memory_space<vmem>>, vector<48x128xbf16>,
    %96 = vector.extract_strided_slice %69 {offsets = [13, 0], sizes = [48, 128], strides = [1, 1]} : vector<80x128xbf16> to vector<48x128xbf16>
    %c48_62 = arith.constant 48 : index
    %c1664_63 = arith.constant 1664 : index
    %97 = vector.load %arg4[%c48_62, %c1664_63] : memref<96x4096xbf16, #tpu.memory_space<vmem>>, vector<48x128xbf16>
    tpu.vector_store %arg4[%c48_62, %c1664_63], %96 {strides = array<i32>} : memref<96x4096xbf16, #tpu.memory_space<vmem>>, vector<48x128xbf16>,
    %98 = vector.extract_strided_slice %69 {offsets = [14, 0], sizes = [48, 128], strides = [1, 1]} : vector<80x128xbf16> to vector<48x128xbf16>
    %c48_64 = arith.constant 48 : index
    %c1792_65 = arith.constant 1792 : index
    %99 = vector.load %arg4[%c48_64, %c1792_65] : memref<96x4096xbf16, #tpu.memory_space<vmem>>, vector<48x128xbf16>
    tpu.vector_store %arg4[%c48_64, %c1792_65], %98 {strides = array<i32>} : memref<96x4096xbf16, #tpu.memory_space<vmem>>, vector<48x128xbf16>,
    %100 = vector.extract_strided_slice %69 {offsets = [15, 0], sizes = [48, 128], strides = [1, 1]} : vector<80x128xbf16> to vector<48x128xbf16>
    %c48_66 = arith.constant 48 : index
    %c1920_67 = arith.constant 1920 : index
    %101 = vector.load %arg4[%c48_66, %c1920_67] : memref<96x4096xbf16, #tpu.memory_space<vmem>>, vector<48x128xbf16>
    tpu.vector_store %arg4[%c48_66, %c1920_67], %100 {strides = array<i32>} : memref<96x4096xbf16, #tpu.memory_space<vmem>>, vector<48x128xbf16>,
    %102 = vector.extract_strided_slice %69 {offsets = [16, 0], sizes = [48, 128], strides = [1, 1]} : vector<80x128xbf16> to vector<48x128xbf16>
    %c48_68 = arith.constant 48 : index
    %c2048_69 = arith.constant 2048 : index
    %103 = vector.load %arg4[%c48_68, %c2048_69] : memref<96x4096xbf16, #tpu.memory_space<vmem>>, vector<48x128xbf16>
    tpu.vector_store %arg4[%c48_68, %c2048_69], %102 {strides = array<i32>} : memref<96x4096xbf16, #tpu.memory_space<vmem>>, vector<48x128xbf16>,
    %104 = vector.extract_strided_slice %69 {offsets = [17, 0], sizes = [48, 128], strides = [1, 1]} : vector<80x128xbf16> to vector<48x128xbf16>
    %c48_70 = arith.constant 48 : index
    %c2176_71 = arith.constant 2176 : index
    %105 = vector.load %arg4[%c48_70, %c2176_71] : memref<96x4096xbf16, #tpu.memory_space<vmem>>, vector<48x128xbf16>
    tpu.vector_store %arg4[%c48_70, %c2176_71], %104 {strides = array<i32>} : memref<96x4096xbf16, #tpu.memory_space<vmem>>, vector<48x128xbf16>,
    %106 = vector.extract_strided_slice %69 {offsets = [18, 0], sizes = [48, 128], strides = [1, 1]} : vector<80x128xbf16> to vector<48x128xbf16>
    %c48_72 = arith.constant 48 : index
    %c2304_73 = arith.constant 2304 : index
    %107 = vector.load %arg4[%c48_72, %c2304_73] : memref<96x4096xbf16, #tpu.memory_space<vmem>>, vector<48x128xbf16>
    tpu.vector_store %arg4[%c48_72, %c2304_73], %106 {strides = array<i32>} : memref<96x4096xbf16, #tpu.memory_space<vmem>>, vector<48x128xbf16>,
    %108 = vector.extract_strided_slice %69 {offsets = [19, 0], sizes = [48, 128], strides = [1, 1]} : vector<80x128xbf16> to vector<48x128xbf16>
    %c48_74 = arith.constant 48 : index
    %c2432_75 = arith.constant 2432 : index
    %109 = vector.load %arg4[%c48_74, %c2432_75] : memref<96x4096xbf16, #tpu.memory_space<vmem>>, vector<48x128xbf16>
    tpu.vector_store %arg4[%c48_74, %c2432_75], %108 {strides = array<i32>} : memref<96x4096xbf16, #tpu.memory_space<vmem>>, vector<48x128xbf16>,
    %110 = vector.extract_strided_slice %69 {offsets = [20, 0], sizes = [48, 128], strides = [1, 1]} : vector<80x128xbf16> to vector<48x128xbf16>
    %c48_76 = arith.constant 48 : index
    %c2560_77 = arith.constant 2560 : index
    %111 = vector.load %arg4[%c48_76, %c2560_77] : memref<96x4096xbf16, #tpu.memory_space<vmem>>, vector<48x128xbf16>
    tpu.vector_store %arg4[%c48_76, %c2560_77], %110 {strides = array<i32>} : memref<96x4096xbf16, #tpu.memory_space<vmem>>, vector<48x128xbf16>,
    %112 = vector.extract_strided_slice %69 {offsets = [21, 0], sizes = [48, 128], strides = [1, 1]} : vector<80x128xbf16> to vector<48x128xbf16>
    %c48_78 = arith.constant 48 : index
    %c2688_79 = arith.constant 2688 : index
    %113 = vector.load %arg4[%c48_78, %c2688_79] : memref<96x4096xbf16, #tpu.memory_space<vmem>>, vector<48x128xbf16>
    tpu.vector_store %arg4[%c48_78, %c2688_79], %112 {strides = array<i32>} : memref<96x4096xbf16, #tpu.memory_space<vmem>>, vector<48x128xbf16>,
    %114 = vector.extract_strided_slice %69 {offsets = [22, 0], sizes = [48, 128], strides = [1, 1]} : vector<80x128xbf16> to vector<48x128xbf16>
    %c48_80 = arith.constant 48 : index
    %c2816_81 = arith.constant 2816 : index
    %115 = vector.load %arg4[%c48_80, %c2816_81] : memref<96x4096xbf16, #tpu.memory_space<vmem>>, vector<48x128xbf16>
    tpu.vector_store %arg4[%c48_80, %c2816_81], %114 {strides = array<i32>} : memref<96x4096xbf16, #tpu.memory_space<vmem>>, vector<48x128xbf16>,
    %116 = vector.extract_strided_slice %69 {offsets = [23, 0], sizes = [48, 128], strides = [1, 1]} : vector<80x128xbf16> to vector<48x128xbf16>
    %c48_82 = arith.constant 48 : index
    %c2944_83 = arith.constant 2944 : index
    %117 = vector.load %arg4[%c48_82, %c2944_83] : memref<96x4096xbf16, #tpu.memory_space<vmem>>, vector<48x128xbf16>
    tpu.vector_store %arg4[%c48_82, %c2944_83], %116 {strides = array<i32>} : memref<96x4096xbf16, #tpu.memory_space<vmem>>, vector<48x128xbf16>,
    %118 = vector.extract_strided_slice %69 {offsets = [24, 0], sizes = [48, 128], strides = [1, 1]} : vector<80x128xbf16> to vector<48x128xbf16>
    %c48_84 = arith.constant 48 : index
    %c3072_85 = arith.constant 3072 : index
    %119 = vector.load %arg4[%c48_84, %c3072_85] : memref<96x4096xbf16, #tpu.memory_space<vmem>>, vector<48x128xbf16>
    tpu.vector_store %arg4[%c48_84, %c3072_85], %118 {strides = array<i32>} : memref<96x4096xbf16, #tpu.memory_space<vmem>>, vector<48x128xbf16>,
    %120 = vector.extract_strided_slice %69 {offsets = [25, 0], sizes = [48, 128], strides = [1, 1]} : vector<80x128xbf16> to vector<48x128xbf16>
    %c48_86 = arith.constant 48 : index
    %c3200_87 = arith.constant 3200 : index
    %121 = vector.load %arg4[%c48_86, %c3200_87] : memref<96x4096xbf16, #tpu.memory_space<vmem>>, vector<48x128xbf16>
    tpu.vector_store %arg4[%c48_86, %c3200_87], %120 {strides = array<i32>} : memref<96x4096xbf16, #tpu.memory_space<vmem>>, vector<48x128xbf16>,
    %122 = vector.extract_strided_slice %69 {offsets = [26, 0], sizes = [48, 128], strides = [1, 1]} : vector<80x128xbf16> to vector<48x128xbf16>
    %c48_88 = arith.constant 48 : index
    %c3328_89 = arith.constant 3328 : index
    %123 = vector.load %arg4[%c48_88, %c3328_89] : memref<96x4096xbf16, #tpu.memory_space<vmem>>, vector<48x128xbf16>
    tpu.vector_store %arg4[%c48_88, %c3328_89], %122 {strides = array<i32>} : memref<96x4096xbf16, #tpu.memory_space<vmem>>, vector<48x128xbf16>,
    %124 = vector.extract_strided_slice %69 {offsets = [27, 0], sizes = [48, 128], strides = [1, 1]} : vector<80x128xbf16> to vector<48x128xbf16>
    %c48_90 = arith.constant 48 : index
    %c3456_91 = arith.constant 3456 : index
    %125 = vector.load %arg4[%c48_90, %c3456_91] : memref<96x4096xbf16, #tpu.memory_space<vmem>>, vector<48x128xbf16>
    tpu.vector_store %arg4[%c48_90, %c3456_91], %124 {strides = array<i32>} : memref<96x4096xbf16, #tpu.memory_space<vmem>>, vector<48x128xbf16>,
    %126 = vector.extract_strided_slice %69 {offsets = [28, 0], sizes = [48, 128], strides = [1, 1]} : vector<80x128xbf16> to vector<48x128xbf16>
    %c48_92 = arith.constant 48 : index
    %c3584_93 = arith.constant 3584 : index
    %127 = vector.load %arg4[%c48_92, %c3584_93] : memref<96x4096xbf16, #tpu.memory_space<vmem>>, vector<48x128xbf16>
    tpu.vector_store %arg4[%c48_92, %c3584_93], %126 {strides = array<i32>} : memref<96x4096xbf16, #tpu.memory_space<vmem>>, vector<48x128xbf16>,
    %128 = vector.extract_strided_slice %69 {offsets = [29, 0], sizes = [48, 128], strides = [1, 1]} : vector<80x128xbf16> to vector<48x128xbf16>
    %c48_94 = arith.constant 48 : index
    %c3712_95 = arith.constant 3712 : index
    %129 = vector.load %arg4[%c48_94, %c3712_95] : memref<96x4096xbf16, #tpu.memory_space<vmem>>, vector<48x128xbf16>
    tpu.vector_store %arg4[%c48_94, %c3712_95], %128 {strides = array<i32>} : memref<96x4096xbf16, #tpu.memory_space<vmem>>, vector<48x128xbf16>,
    %130 = vector.extract_strided_slice %69 {offsets = [30, 0], sizes = [48, 128], strides = [1, 1]} : vector<80x128xbf16> to vector<48x128xbf16>
    %c48_96 = arith.constant 48 : index
    %c3840_97 = arith.constant 3840 : index
    %131 = vector.load %arg4[%c48_96, %c3840_97] : memref<96x4096xbf16, #tpu.memory_space<vmem>>, vector<48x128xbf16>
    tpu.vector_store %arg4[%c48_96, %c3840_97], %130 {strides = array<i32>} : memref<96x4096xbf16, #tpu.memory_space<vmem>>, vector<48x128xbf16>,
    %132 = vector.extract_strided_slice %69 {offsets = [31, 0], sizes = [48, 128], strides = [1, 1]} : vector<80x128xbf16> to vector<48x128xbf16>
    %c48_98 = arith.constant 48 : index
    %c3968_99 = arith.constant 3968 : index
    %133 = vector.load %arg4[%c48_98, %c3968_99] : memref<96x4096xbf16, #tpu.memory_space<vmem>>, vector<48x128xbf16>
    tpu.vector_store %arg4[%c48_98, %c3968_99], %132 {strides = array<i32>} : memref<96x4096xbf16, #tpu.memory_space<vmem>>, vector<48x128xbf16>,
    %c0_100 = arith.constant 0 : index
    %c0_101 = arith.constant 0 : index
    %134 = vector.load %arg4[%c0_100, %c0_101] : memref<96x4096xbf16, #tpu.memory_space<vmem>>, vector<96x4096xbf16>
    %c0_102 = arith.constant 0 : index
    %c0_103 = arith.constant 0 : index
    %135 = vector.load %arg2[%c0_102, %c0_103] : memref<4096x256xbf16, #tpu.memory_space<vmem>>, vector<4096x256xbf16>
    %cst = arith.constant dense<0.000000e+00> : vector<96x256xf32>
    %136 = tpu.matmul %134, %135, %cst {dimension_numbers = #tpu.dot_dimension_numbers<[1], [0], [0], [1], [0, 0, 1, 1], [], []>} : vector<96x4096xbf16>, vector<4096x256xbf16>, vector<96x256xf32> -> vector<96x256xf32>
    %137 = vector.extract_strided_slice %136 {offsets = [0, 0], sizes = [96, 128], strides = [1, 1]} : vector<96x256xf32> to vector<96x128xf32>
    %138 = vector.extract_strided_slice %136 {offsets = [0, 128], sizes = [96, 128], strides = [1, 1]} : vector<96x256xf32> to vector<96x128xf32>
    %139 = arith.mulf %137, %137 : vector<96x128xf32>
    %140 = arith.mulf %138, %138 : vector<96x128xf32>
    %141 = arith.addf %139, %140 : vector<96x128xf32>
    %cst_104 = arith.constant 1.000000e-10 : f32
    %142 = vector.broadcast %cst_104 : f32 to vector<96x128xf32>
    %143 = arith.addf %141, %142 : vector<96x128xf32>
    %144 = math.log %143 : vector<96x128xf32>
    %cst_105 = arith.constant 4.34294462 : f32
    %145 = vector.broadcast %cst_105 : f32 to vector<96x128xf32>
    %146 = arith.mulf %145, %144 : vector<96x128xf32>
    %147 = tpu.iota {dimensions = array<i32: 0>} : vector<48x128xi32>
    %148 = tpu.iota {dimensions = array<i32: 1>} : vector<48x128xi32>
    %c33_i32 = arith.constant 33 : i32
    %149 = vector.broadcast %c33_i32 : i32 to vector<48x128xi32>
    %150 = arith.cmpi slt, %147, %149 : vector<48x128xi32>
    %c96_i32 = arith.constant 96 : i32
    %151 = vector.broadcast %c96_i32 : i32 to vector<48x128xi32>
    %152 = arith.cmpi slt, %148, %151 : vector<48x128xi32>
    %153 = arith.andi %150, %152 : vector<48x128xi1>
    %154 = vector.extract_strided_slice %146 {offsets = [0, 0], sizes = [48, 128], strides = [1, 1]} : vector<96x128xf32> to vector<48x128xf32>
    %cst_106 = arith.constant 3.000000e+38 : f32
    %155 = vector.broadcast %cst_106 : f32 to vector<48x128xf32>
    %156 = arith.select %153, %154, %155 : vector<48x128xi1>, vector<48x128xf32>
    %157 = vector.shape_cast %156 : vector<48x128xf32> to vector<1x48x128xf32>
    %cst_107 = arith.constant dense<0x7F800000> : vector<1xf32>
    %158 = vector.multi_reduction <minimumf>, %157, %cst_107 [1, 2] : vector<1x48x128xf32> to vector<1xf32>
    %159 = vector.shape_cast %158 : vector<1xf32> to vector<1x1x1xf32>
    %160 = vector.extract %159[0, 0, 0] : f32 from vector<1x1x1xf32>
    %161 = vector.broadcast %160 : f32 to vector<1x1xf32>
    %cst_108 = arith.constant -3.000000e+38 : f32
    %162 = vector.broadcast %cst_108 : f32 to vector<48x128xf32>
    %163 = arith.select %153, %154, %162 : vector<48x128xi1>, vector<48x128xf32>
    %164 = vector.shape_cast %163 : vector<48x128xf32> to vector<1x48x128xf32>
    %cst_109 = arith.constant dense<0xFF800000> : vector<1xf32>
    %165 = vector.multi_reduction <maximumf>, %164, %cst_109 [1, 2] : vector<1x48x128xf32> to vector<1xf32>
    %166 = vector.shape_cast %165 : vector<1xf32> to vector<1x1x1xf32>
    %167 = vector.extract %166[0, 0, 0] : f32 from vector<1x1x1xf32>
    %168 = vector.broadcast %167 : f32 to vector<1x1xf32>
    %169 = arith.subf %168, %161 : vector<1x1xf32>
    %cst_110 = arith.constant 9.99999968E-21 : f32
    %170 = vector.broadcast %cst_110 : f32 to vector<1x1xf32>
    %171 = arith.maximumf %169, %170 : vector<1x1xf32>
    %172 = tpu.reciprocal %171 {approx = true} : vector<1x1xf32> -> vector<1x1xf32>
    %cst_111 = arith.constant 0.000000e+00 : f32
    %173 = vector.broadcast %cst_111 : f32 to vector<1x1xf32>
    %174 = arith.cmpf ogt, %169, %173 : vector<1x1xf32>
    %175 = vector.broadcast %174 : vector<1x1xi1> to vector<48x128xi1>
    %176 = arith.andi %153, %175 : vector<48x128xi1>
    %177 = vector.broadcast %161 : vector<1x1xf32> to vector<48x128xf32>
    %178 = arith.subf %154, %177 : vector<48x128xf32>
    %179 = vector.broadcast %172 : vector<1x1xf32> to vector<48x128xf32>
    %180 = arith.mulf %178, %179 : vector<48x128xf32>
    %cst_112 = arith.constant 0.000000e+00 : f32
    %181 = vector.broadcast %cst_112 : f32 to vector<48x128xf32>
    %182 = arith.select %176, %180, %181 : vector<48x128xi1>, vector<48x128xf32>
    %c0_113 = arith.constant 0 : index
    %c0_114 = arith.constant 0 : index
    %c0_115 = arith.constant 0 : index
    %183 = vector.load %arg3[%c0_113, %c0_114, %c0_115] : memref<2x48x128xf32, #tpu.memory_space<vmem>>, vector<1x48x128xf32>
    %184 = vector.shape_cast %183 : vector<1x48x128xf32> to vector<48x128xf32>
    %185 = vector.shape_cast %182 : vector<48x128xf32> to vector<1x48x128xf32>
    tpu.vector_store %arg3[%c0_113, %c0_114, %c0_115], %185 {strides = array<i32>} : memref<2x48x128xf32, #tpu.memory_space<vmem>>, vector<1x48x128xf32>,
    %186 = vector.extract_strided_slice %146 {offsets = [48, 0], sizes = [48, 128], strides = [1, 1]} : vector<96x128xf32> to vector<48x128xf32>
    %cst_116 = arith.constant 3.000000e+38 : f32
    %187 = vector.broadcast %cst_116 : f32 to vector<48x128xf32>
    %188 = arith.select %153, %186, %187 : vector<48x128xi1>, vector<48x128xf32>
    %189 = vector.shape_cast %188 : vector<48x128xf32> to vector<1x48x128xf32>
    %cst_117 = arith.constant dense<0x7F800000> : vector<1xf32>
    %190 = vector.multi_reduction <minimumf>, %189, %cst_117 [1, 2] : vector<1x48x128xf32> to vector<1xf32>
    %191 = vector.shape_cast %190 : vector<1xf32> to vector<1x1x1xf32>
    %192 = vector.extract %191[0, 0, 0] : f32 from vector<1x1x1xf32>
    %193 = vector.broadcast %192 : f32 to vector<1x1xf32>
    %cst_118 = arith.constant -3.000000e+38 : f32
    %194 = vector.broadcast %cst_118 : f32 to vector<48x128xf32>
    %195 = arith.select %153, %186, %194 : vector<48x128xi1>, vector<48x128xf32>
    %196 = vector.shape_cast %195 : vector<48x128xf32> to vector<1x48x128xf32>
    %cst_119 = arith.constant dense<0xFF800000> : vector<1xf32>
    %197 = vector.multi_reduction <maximumf>, %196, %cst_119 [1, 2] : vector<1x48x128xf32> to vector<1xf32>
    %198 = vector.shape_cast %197 : vector<1xf32> to vector<1x1x1xf32>
    %199 = vector.extract %198[0, 0, 0] : f32 from vector<1x1x1xf32>
    %200 = vector.broadcast %199 : f32 to vector<1x1xf32>
    %201 = arith.subf %200, %193 : vector<1x1xf32>
    %cst_120 = arith.constant 9.99999968E-21 : f32
    %202 = vector.broadcast %cst_120 : f32 to vector<1x1xf32>
    %203 = arith.maximumf %201, %202 : vector<1x1xf32>
    %204 = tpu.reciprocal %203 {approx = true} : vector<1x1xf32> -> vector<1x1xf32>
    %cst_121 = arith.constant 0.000000e+00 : f32
    %205 = vector.broadcast %cst_121 : f32 to vector<1x1xf32>
    %206 = arith.cmpf ogt, %201, %205 : vector<1x1xf32>
    %207 = vector.broadcast %206 : vector<1x1xi1> to vector<48x128xi1>
    %208 = arith.andi %153, %207 : vector<48x128xi1>
    %209 = vector.broadcast %193 : vector<1x1xf32> to vector<48x128xf32>
    %210 = arith.subf %186, %209 : vector<48x128xf32>
    %211 = vector.broadcast %204 : vector<1x1xf32> to vector<48x128xf32>
    %212 = arith.mulf %210, %211 : vector<48x128xf32>
    %cst_122 = arith.constant 0.000000e+00 : f32
    %213 = vector.broadcast %cst_122 : f32 to vector<48x128xf32>
    %214 = arith.select %208, %212, %213 : vector<48x128xi1>, vector<48x128xf32>
    %c1_123 = arith.constant 1 : index
    %c0_124 = arith.constant 0 : index
    %c0_125 = arith.constant 0 : index
    %215 = vector.load %arg3[%c1_123, %c0_124, %c0_125] : memref<2x48x128xf32, #tpu.memory_space<vmem>>, vector<1x48x128xf32>
    %216 = vector.shape_cast %215 : vector<1x48x128xf32> to vector<48x128xf32>
    %217 = vector.shape_cast %214 : vector<48x128xf32> to vector<1x48x128xf32>
    tpu.vector_store %arg3[%c1_123, %c0_124, %c0_125], %217 {strides = array<i32>} : memref<2x48x128xf32, #tpu.memory_space<vmem>>, vector<1x48x128xf32>,
    return
  }
  func.func @transform_0(%arg0: i32) -> (i32, i32, i32) {
    %c0_i32 = arith.constant 0 : i32
    %c0_i32_0 = arith.constant 0 : i32
    %c0_i32_1 = arith.constant 0 : i32
    %c0_i32_2 = arith.constant 0 : i32
    return %c0_i32, %c0_i32_0, %c0_i32_1 : i32, i32, i32
  }
  func.func @transform_1(%arg0: i32) -> (i32, i32) {
    %c0_i32 = arith.constant 0 : i32
    %c0_i32_0 = arith.constant 0 : i32
    %c0_i32_1 = arith.constant 0 : i32
    return %c0_i32, %c0_i32_0 : i32, i32
  }
  func.func @transform_2(%arg0: i32) -> (i32, i32, i32) {
    %c0_i32 = arith.constant 0 : i32
    %c0_i32_0 = arith.constant 0 : i32
    %c0_i32_1 = arith.constant 0 : i32
    %c0_i32_2 = arith.constant 0 : i32
    return %c0_i32, %c0_i32_0, %c0_i32_1 : i32, i32, i32
  }
}

</mosaic_0001>

<bundles_post_ra>
// kernel: normalized_cqt.1
= control target key start
LH: loop header
LB: loop body
LE: loop exit
PB: predicated region body
PF: predicated region fallthrough
CT: control target
= control target key end

     0   :  { %vm29_vm0 = vsmask.f32 7424  ;;  %vm82_vm1 = vsmask.f32 6400  ;;  %vm68_vm2 = vcmask 1046528   ;;  %vm106_vm4 = vcmask 1045504   ;;  %s9785_s1 = inlined_call_operand.vmem [shape: bf16[4096,256], index: 1, kind: input, shape index: {}]   ;;  %s9786_s0 = inlined_call_operand.vmem [shape: f32[2,80,128], index: 0, kind: input, shape index: {}]   ;;  %s9787_s2 = inlined_call_operand.vmem [shape: f32[2,48,128], index: 2, kind: output, shape index: {}]  }
   0x1   :  { %v6747_v0 = vld [vmem:[%s9785_s1 + $0x4] ss:$8 sps:$4 sm:$0xff]   ;;  %v6751_v2 = vld [vmem:[%s9785_s1] ss:$8 sps:$4 sm:$0xff]   ;;  %v6753_v4 = vld [vmem:[%s9785_s1 + $0x14] ss:$8 sps:$4 sm:$0xff]  }
   0x2   :  { %v6749_v1 = vld [vmem:[%s9785_s1 + $0x804] ss:$8 sps:$4 sm:$0xff]   ;;  %4099 = vmatprep.subr.bf16.mxu1 %v6747_v0  ;;  %v6752_v3 = vld [vmem:[%s9785_s1 + $0x800] ss:$8 sps:$4 sm:$0xff]   ;;  %v6755_v5 = vld [vmem:[%s9785_s1 + $0x814] ss:$8 sps:$4 sm:$0xff]  }
   0x3   :  { %4843 = vmatprep.subr.bf16.mxu0 %v6749_v1  ;;  %4100 = vmatpush1.bf16.msra.mxu1 %v6751_v2  ;;  %v6757_v6 = vld [vmem:[%s9785_s1 + $0x10] ss:$8 sps:$4 sm:$0xff]   ;;  %v6759_v8 = vld [vmem:[%s9785_s1 + $0x24] ss:$8 sps:$4 sm:$0xff]   ;;  %v6763_v10 = vld [vmem:[%s9785_s1 + $0x20] ss:$8 sps:$4 sm:$0xff]  }
   0x4   :  { %4844 = vmatpush1.bf16.msra.mxu0 %v6752_v3  ;;  %4101 = vmatprep.subr.bf16.mxu1 %v6753_v4  ;;  %v6758_v7 = vld [vmem:[%s9785_s1 + $0x810] ss:$8 sps:$4 sm:$0xff]   ;;  %v6761_v9 = vld [vmem:[%s9785_s1 + $0x824] ss:$8 sps:$4 sm:$0xff]   ;;  %v6764_v11 = vld [vmem:[%s9785_s1 + $0x820] ss:$8 sps:$4 sm:$0xff]  }
   0x5   :  { %4845 = vmatprep.subr.bf16.mxu0 %v6755_v5  ;;  %v6765_v12 = vld [vmem:[%s9785_s1 + $0x34] ss:$8 sps:$4 sm:$0xff]   ;;  %v6769_v14 = vld [vmem:[%s9785_s1 + $0x30] ss:$8 sps:$4 sm:$0xff]   ;;  %v6771_v16 = vld [vmem:[%s9785_s1 + $0x44] ss:$8 sps:$4 sm:$0xff]  }
   0x6   :  { %v6767_v13 = vld [vmem:[%s9785_s1 + $0x834] ss:$8 sps:$4 sm:$0xff]   ;;  %v6770_v15 = vld [vmem:[%s9785_s1 + $0x830] ss:$8 sps:$4 sm:$0xff]   ;;  %v6773_v17 = vld [vmem:[%s9785_s1 + $0x844] ss:$8 sps:$4 sm:$0xff]  }
   0x7   :  { %4102 = vmatpush1.bf16.msra.mxu1 %v6757_v6  ;;  %v6775_v18 = vld [vmem:[%s9785_s1 + $0x40] ss:$8 sps:$4 sm:$0xff]   ;;  %v6777_v20 = vld [vmem:[%s9785_s1 + $0x54] ss:$8 sps:$4 sm:$0xff]   ;;  %v6781_v22 = vld [vmem:[%s9785_s1 + $0x50] ss:$8 sps:$4 sm:$0xff]  }
   0x8   :  { %4846 = vmatpush1.bf16.msra.mxu0 %v6758_v7  ;;  %4103 = vmatprep.subr.bf16.mxu1 %v6759_v8  ;;  %v6776_v19 = vld [vmem:[%s9785_s1 + $0x840] ss:$8 sps:$4 sm:$0xff]   ;;  %v6779_v21 = vld [vmem:[%s9785_s1 + $0x854] ss:$8 sps:$4 sm:$0xff]   ;;  %v6782_v23 = vld [vmem:[%s9785_s1 + $0x850] ss:$8 sps:$4 sm:$0xff]  }
   0x9   :  { %4847 = vmatprep.subr.bf16.mxu0 %v6761_v9  ;;  %v6783_v24 = vld [vmem:[%s9785_s1 + $0x64] ss:$8 sps:$4 sm:$0xff]   ;;  %v6787_v26 = vld [vmem:[%s9785_s1 + $0x60] ss:$8 sps:$4 sm:$0xff]   ;;  %v6789_v28 = vld [vmem:[%s9785_s1 + $0x74] ss:$8 sps:$4 sm:$0xff]  }
   0xa   :  { %v6785_v25 = vld [vmem:[%s9785_s1 + $0x864] ss:$8 sps:$4 sm:$0xff]   ;;  %v6788_v27 = vld [vmem:[%s9785_s1 + $0x860] ss:$8 sps:$4 sm:$0xff]   ;;  %v6791_v29 = vld [vmem:[%s9785_s1 + $0x874] ss:$8 sps:$4 sm:$0xff]  }
   0xb   :  { %4104 = vmatpush1.bf16.msra.mxu1 %v6763_v10  ;;  %v6793_v30 = vld [vmem:[%s9785_s1 + $0x70] ss:$8 sps:$4 sm:$0xff]   ;;  %v6795_v32 = vld [vmem:[%s9785_s1 + $0x84] ss:$8 sps:$4 sm:$0xff]   ;;  %v6799_v34 = vld [vmem:[%s9785_s1 + $0x80] ss:$8 sps:$4 sm:$0xff]  }
   0xc   :  { %4848 = vmatpush1.bf16.msra.mxu0 %v6764_v11  ;;  %4105 = vmatprep.subr.bf16.mxu1 %v6765_v12  ;;  %v6794_v31 = vld [vmem:[%s9785_s1 + $0x870] ss:$8 sps:$4 sm:$0xff]   ;;  %v6797_v33 = vld [vmem:[%s9785_s1 + $0x884] ss:$8 sps:$4 sm:$0xff]   ;;  %v6800_v35 = vld [vmem:[%s9785_s1 + $0x880] ss:$8 sps:$4 sm:$0xff]  }
   0xd   :  { %4849 = vmatprep.subr.bf16.mxu0 %v6767_v13  ;;  %v6801_v36 = vld [vmem:[%s9785_s1 + $0x94] ss:$8 sps:$4 sm:$0xff]   ;;  %v6805_v38 = vld [vmem:[%s9785_s1 + $0x90] ss:$8 sps:$4 sm:$0xff]   ;;  %v6807_v40 = vld [vmem:[%s9785_s1 + $0xa4] ss:$8 sps:$4 sm:$0xff]  }
   0xe   :  { %v6803_v37 = vld [vmem:[%s9785_s1 + $0x894] ss:$8 sps:$4 sm:$0xff]   ;;  %v6806_v39 = vld [vmem:[%s9785_s1 + $0x890] ss:$8 sps:$4 sm:$0xff]   ;;  %v6809_v41 = vld [vmem:[%s9785_s1 + $0x8a4] ss:$8 sps:$4 sm:$0xff]  }
   0xf   :  { %4106 = vmatpush1.bf16.msra.mxu1 %v6769_v14  ;;  %v6811_v42 = vld [vmem:[%s9785_s1 + $0xa0] ss:$8 sps:$4 sm:$0xff]   ;;  %v6813_v44 = vld [vmem:[%s9785_s1 + $0xb4] ss:$8 sps:$4 sm:$0xff]   ;;  %v6817_v46 = vld [vmem:[%s9785_s1 + $0xb0] ss:$8 sps:$4 sm:$0xff]  }
  0x10   :  { %4850 = vmatpush1.bf16.msra.mxu0 %v6770_v15  ;;  %4107 = vmatprep.subr.bf16.mxu1 %v6771_v16  ;;  %v6812_v43 = vld [vmem:[%s9785_s1 + $0x8a0] ss:$8 sps:$4 sm:$0xff]   ;;  %v6815_v45 = vld [vmem:[%s9785_s1 + $0x8b4] ss:$8 sps:$4 sm:$0xff]   ;;  %v6818_v47 = vld [vmem:[%s9785_s1 + $0x8b0] ss:$8 sps:$4 sm:$0xff]  }
  0x11   :  { %4851 = vmatprep.subr.bf16.mxu0 %v6773_v17  ;;  %v11_v48 = vld [vmem:[%s9786_s0] sm:$0xff]  ;;  %v12_v49 = vld [vmem:[%s9786_s0 + $0x8] sm:$0xff]  ;;  %v13_v50 = vld [vmem:[%s9786_s0 + $0x10] sm:$0xff]  ;;  %vm120_vm3 = vsmask.f32 5376  ;;  %vm142_vm6 = vcmask 1044480  }
  0x12   :  { %v14_v51 = vld [vmem:[%s9786_s0 + $0x18] sm:$0xff]  ;;  %v6819_v52 = vld [vmem:[%s9785_s1 + $0xc4] ss:$8 sps:$4 sm:$0xff]   ;;  %v7714_v53 = vpack.c.bf16 %v12_v49, %v11_v48  ;;  %v6823_v62 = vld [vmem:[%s9785_s1 + $0xc0] ss:$8 sps:$4 sm:$0xff]   ;;  %vm178_vm8 = vcmask 1043456  }
  0x13   :  { %4108 = vmatpush1.bf16.msra.mxu1 %v6775_v18  ;;  %v7716_v54 = vpack.c.bf16 %v14_v51, %v13_v50  ;;  %v6821_v55 = vld [vmem:[%s9785_s1 + $0x8c4] ss:$8 sps:$4 sm:$0xff]   ;;  %v6824_v0 = vld [vmem:[%s9785_s1 + $0x8c0] ss:$8 sps:$4 sm:$0xff]   ;;  %v6825_v4 = vld [vmem:[%s9785_s1 + $0xd4] ss:$8 sps:$4 sm:$0xff]  }
  0x14   :  { %4852 = vmatpush1.bf16.msra.mxu0 %v6776_v19  ;;  %4109 = vmatprep.subr.bf16.mxu1 %v6777_v20  ;;  %v15_v56 = vld [vmem:[%s9786_s0 + $0x20] sm:$0xff]  ;;  %v16_v57 = vld [vmem:[%s9786_s0 + $0x28] sm:$0xff]  ;;  %v7728_v58 = vshrl.u32 %v7714_v53, 16  ;;  %v7731_v59 = vshll.u32 %v7714_v53, 16  ;;  %v6827_v5 = vld [vmem:[%s9785_s1 + $0x8d4] ss:$8 sps:$4 sm:$0xff]  }
  0x15   :  { %4853 = vmatprep.subr.bf16.mxu0 %v6779_v21  ;;  %v7734_v60 = vshll.u32 %v7716_v54, 16  ;;  %v7736_v61 = vpack.c.bf16 %v16_v57, %v15_v56  ;;  %v7742_v63 = vshrl.u32 %v7716_v54, 16  ;;  %v6829_v9 = vld [vmem:[%s9785_s1 + $0xd0] ss:$8 sps:$4 sm:$0xff]   ;;  %v6831_v11 = vld [vmem:[%s9785_s1 + $0xe4] ss:$8 sps:$4 sm:$0xff]  }
  0x16   :  { %v35_v1 = vrot.slane %v7731_v59, 1  ;;  %v6830_v10 = vld [vmem:[%s9785_s1 + $0x8d0] ss:$8 sps:$4 sm:$0xff]   ;;  %v6833_v14 = vld [vmem:[%s9785_s1 + $0x8e4] ss:$8 sps:$4 sm:$0xff]   ;;  %vm214_vm10 = vcmask 1042432  }
  0x17   :  { %4110 = vmatpush1.bf16.msra.mxu1 %v6781_v22  ;;  %v40_v2 = vrot.slane %v7734_v60, 1  ;;  %v7750_v3 = vshll.u32 %v7736_v61, 16  ;;  %v6835_v15 = vld [vmem:[%s9785_s1 + $0xe0] ss:$8 sps:$4 sm:$0xff]   ;;  %v6837_v17 = vld [vmem:[%s9785_s1 + $0xf4] ss:$8 sps:$4 sm:$0xff]  }
  0x18   :  { %4854 = vmatpush1.bf16.msra.mxu0 %v6782_v23  ;;  %4111 = vmatprep.subr.bf16.mxu1 %v6783_v24  ;;  %v36_v6 = vor.u32 %v35_v1, %v7728_v58  ;;  %v6836_v16 = vld [vmem:[%s9785_s1 + $0x8e0] ss:$8 sps:$4 sm:$0xff]   ;;  %v6839_v18 = vld [vmem:[%s9785_s1 + $0x8f4] ss:$8 sps:$4 sm:$0xff]   ;;  %v6841_v19 = vld [vmem:[%s9785_s1 + $0xf0] ss:$8 sps:$4 sm:$0xff]  }
  0x19   :  { %4855 = vmatprep.subr.bf16.mxu0 %v6785_v25  ;;  %v44_v7 = vor.u32 %v7742_v63, %v40_v2  ;;  %v48_v8 = vrot.slane %v7750_v3, 1  ;;  %v6842_v20 = vld [vmem:[%s9785_s1 + $0x8f0] ss:$8 sps:$4 sm:$0xff]   ;;  %v6845_v21 = vld [vmem:[%s9785_s1 + $0x104] ss:$8 sps:$4 sm:$0xff]   ;;  %v7800_v23 = vshrl.u32 %v7736_v61, 16 }
  0x1a   :  { %v41_v12 = vsel %vm29_vm0, %v36_v6, %v40_v2  ;;  %v6848_v22 = vld [vmem:[%s9785_s1 + $0x904] ss:$8 sps:$4 sm:$0xff]   ;;  %v17_v24 = vld [vmem:[%s9786_s0 + $0x30] sm:$0xff]  ;;  %v18_v25 = vld [vmem:[%s9786_s0 + $0x38] sm:$0xff]  ;;  %vm156_vm5 = vsmask.f32 4352 }
  0x1b   :  { %4112 = vmatpush1.bf16.msra.mxu1 %v6787_v26  ;;  %v49_v13 = vsel %vm29_vm0, %v44_v7, %v48_v8  ;;  %4131 = vmatprep.mubr.bf16.mxu1 %v41_v12  ;;  %v6843_v26 = vld [vmem:[%s9785_s1 + $0x100] ss:$8 sps:$4 sm:$0xff]   ;;  %v6866_v48 = vld [vmem:[%s9785_s1 + $0x934] ss:$8 sps:$4 sm:$0xff]   ;;  %v6861_v57 = vld [vmem:[%s9785_s1 + $0x130] ss:$8 sps:$4 sm:$0xff]  }
  0x1c   :  { %4856 = vmatpush1.bf16.msra.mxu0 %v6788_v27  ;;  %4113 = vmatprep.subr.bf16.mxu1 %v6789_v28  ;;  %v7811_v27 = vpack.c.bf16 %v18_v25, %v17_v24  ;;  %v6846_v28 = vld [vmem:[%s9785_s1 + $0x900] ss:$8 sps:$4 sm:$0xff]   ;;  %v5854_v50 = vld [vmem:[%s9786_s0 + $0x50] sm:$0xff]  ;;  %v5855_v51 = vld [vmem:[%s9786_s0 + $0x58] sm:$0xff]  ;;  %vm192_vm7 = vsmask.f32 3328 }
  0x1d   :  { %4857 = vmatprep.subr.bf16.mxu0 %v6791_v29  ;;  %4875 = vmatprep.mubr.bf16.mxu0 %v49_v13  ;;  %v6851_v29 = vld [vmem:[%s9785_s1 + $0x114] ss:$8 sps:$4 sm:$0xff]   ;;  %v7882_v56 = vpack.c.bf16 %v5855_v51, %v5854_v50  ;;  %v6869_v7 = vld [vmem:[%s9785_s1 + $0x144] ss:$8 sps:$4 sm:$0xff]   ;;  %v6873_v25 = vld [vmem:[%s9785_s1 + $0x150] ss:$8 sps:$4 sm:$0xff]  }
  0x1e   :  { %v5858_v2 = vld [vmem:[%s9786_s0 + $0x70] sm:$0xff]  ;;  %v5859_v6 = vld [vmem:[%s9786_s0 + $0x78] sm:$0xff]  ;;  %v5861_v24 = vld [vmem:[%s9786_s0 + $0x88] sm:$0xff]  ;;  %vm228_vm9 = vsmask.f32 2304  ;;  %vm250_vm12 = vcmask 1041408  }
  0x1f   :  { %4114 = vmatpush1.bf16.msra.mxu1 %v6793_v30  ;;  %v6854_v30 = vld [vmem:[%s9785_s1 + $0x914] ss:$8 sps:$4 sm:$0xff]   ;;  %v6885_v51 = vld [vmem:[%s9785_s1 + $0x170] ss:$8 sps:$4 sm:$0xff]   ;;  %vm264_vm11 = vsmask.f32 1280 }
  0x20   :  { %4858 = vmatpush1.bf16.msra.mxu0 %v6794_v31  ;;  %4115 = vmatprep.subr.bf16.mxu1 %v6795_v32  ;;  %v52_v31 = vor.u32 %v7800_v23, %v48_v8  ;;  %v7824_v32 = vshll.u32 %v7811_v27, 16  ;;  %v6872_v8 = vld [vmem:[%s9785_s1 + $0x944] ss:$8 sps:$4 sm:$0xff]   ;;  %vm300_vm13 = vsmask.f32 256  ;;  %vm286_vm14 = vcmask 1040384  }
  0x21   :  { %4859 = vmatprep.subr.bf16.mxu0 %v6797_v33  ;;  %v6849_v33 = vld [vmem:[%s9785_s1 + $0x110] ss:$8 sps:$4 sm:$0xff]  }
  0x23   :  { %4116 = vmatpush1.bf16.msra.mxu1 %v6799_v34  ;;  %v6852_v34 = vld [vmem:[%s9785_s1 + $0x910] ss:$8 sps:$4 sm:$0xff]  }
  0x24   :  { %4860 = vmatpush1.bf16.msra.mxu0 %v6800_v35  ;;  %4117 = vmatprep.subr.bf16.mxu1 %v6801_v36  ;;  %v56_v35 = vrot.slane %v7824_v32, 1  ;;  %v7836_v36 = vshrl.u32 %v7811_v27, 16 }
  0x25   :  { %4861 = vmatprep.subr.bf16.mxu0 %v6803_v37  ;;  %v6857_v37 = vld [vmem:[%s9785_s1 + $0x124] ss:$8 sps:$4 sm:$0xff]  }
  0x27   :  { %4118 = vmatpush1.bf16.msra.mxu1 %v6805_v38  ;;  %v19_v38 = vld [vmem:[%s9786_s0 + $0x40] sm:$0xff] }
  0x28   :  { %4862 = vmatpush1.bf16.msra.mxu0 %v6806_v39  ;;  %4119 = vmatprep.subr.bf16.mxu1 %v6807_v40  ;;  %v20_v39 = vld [vmem:[%s9786_s0 + $0x48] sm:$0xff] }
  0x29   :  { %4863 = vmatprep.subr.bf16.mxu0 %v6809_v41  ;;  %v6860_v40 = vld [vmem:[%s9785_s1 + $0x924] ss:$8 sps:$4 sm:$0xff]   ;;  %v57_v41 = vsel %vm29_vm0, %v52_v31, %v56_v35 }
  0x2b   :  { %4120 = vmatpush1.bf16.msra.mxu1 %v6811_v42  ;;  %v7851_v42 = vpack.c.bf16 %v20_v39, %v19_v38  ;;  %v6882_v38 = vld [vmem:[%s9785_s1 + $0x960] ss:$8 sps:$4 sm:$0xff]  }
  0x2c   :  { %4864 = vmatpush1.bf16.msra.mxu0 %v6812_v43  ;;  %4121 = vmatprep.subr.bf16.mxu1 %v6813_v44  ;;  %v6855_v43 = vld [vmem:[%s9785_s1 + $0x120] ss:$8 sps:$4 sm:$0xff]  }
  0x2d   :  { %4865 = vmatprep.subr.bf16.mxu0 %v6815_v45  ;;  %v6858_v44 = vld [vmem:[%s9785_s1 + $0x920] ss:$8 sps:$4 sm:$0xff]   ;;  %v320_v45 = vor.u32 %v7836_v36, %v56_v35 }
  0x2f   :  { %4122 = vmatpush1.bf16.msra.mxu1 %v6817_v46  ;;  %v7861_v46 = vshll.u32 %v7851_v42, 16 }
  0x30   :  { %4866 = vmatpush1.bf16.msra.mxu0 %v6818_v47  ;;  %4123 = vmatprep.subr.bf16.mxu1 %v6819_v52  ;;  %v6863_v47 = vld [vmem:[%s9785_s1 + $0x134] ss:$8 sps:$4 sm:$0xff]   ;;  %v5856_v52 = vld [vmem:[%s9786_s0 + $0x60] sm:$0xff] }
  0x31   :  { %4867 = vmatprep.subr.bf16.mxu0 %v6821_v55  ;;  %v324_v49 = vrot.slane %v7861_v46, 1  ;;  %v5857_v55 = vld [vmem:[%s9786_s0 + $0x68] sm:$0xff] }
  0x32   :  { %v7893_v1 = vpack.c.bf16 %v5857_v55, %v5856_v52  ;;  %v6888_v52 = vld [vmem:[%s9785_s1 + $0x970] ss:$8 sps:$4 sm:$0xff]   ;;  %v6893_v55 = vld [vmem:[%s9785_s1 + $0x184] ss:$8 sps:$4 sm:$0xff]  }
  0x33   :  { %4124 = vmatpush1.bf16.msra.mxu1 %v6823_v62  ;;  %v6864_v62 = vld [vmem:[%s9785_s1 + $0x930] ss:$8 sps:$4 sm:$0xff]  }
  0x34   :  { %4868 = vmatpush1.bf16.msra.mxu0 %v6824_v0  ;;  %4125 = vmatprep.subr.bf16.mxu1 %v6825_v4  ;;  %v325_v0 = vsel %vm29_vm0, %v320_v45, %v324_v49  ;;  %v7899_v4 = vshrl.u32 %v7882_v56, 16  ;;  %v6890_v45 = vld [vmem:[%s9785_s1 + $0x974] ss:$8 sps:$4 sm:$0xff]  }
  0x35   :  { %4869 = vmatprep.subr.bf16.mxu0 %v6827_v5  ;;  %v7902_v5 = vshll.u32 %v7882_v56, 16 }
  0x37   :  { %4126 = vmatpush1.bf16.msra.mxu1 %v6829_v9  ;;  %v7914_v9 = vshll.u32 %v7893_v1, 16  ;;  %v454_v12 = vrot.slane %v7902_v5, 1 }
  0x38   :  { %4870 = vmatpush1.bf16.msra.mxu0 %v6830_v10  ;;  %4127 = vmatprep.subr.bf16.mxu1 %v6831_v11  ;;  %v7916_v10 = vpack.c.bf16 %v5859_v6, %v5858_v2  ;;  %v7919_v11 = vshrl.u32 %v7893_v1, 16  ;;  %v6891_v2 = vld [vmem:[%s9785_s1 + $0x180] ss:$8 sps:$4 sm:$0xff]  }
  0x39   :  { %4871 = vmatprep.subr.bf16.mxu0 %v6833_v14  ;;  %v6894_v6 = vld [vmem:[%s9785_s1 + $0x980] ss:$8 sps:$4 sm:$0xff]  }
  0x3a   :  { %v7924_v14 = vshll.u32 %v7916_v10, 16  ;;  %v7960_v31 = vshrl.u32 %v7916_v10, 16 }
  0x3b   :  { %4128 = vmatpush1.bf16.msra.mxu1 %v6835_v15  ;;  %v6867_v15 = vld [vmem:[%s9785_s1 + $0x140] ss:$8 sps:$4 sm:$0xff]  }
  0x3c   :  { %4872 = vmatpush1.bf16.msra.mxu0 %v6836_v16  ;;  %4129 = vmatprep.subr.bf16.mxu1 %v6837_v17  ;;  %v6870_v16 = vld [vmem:[%s9785_s1 + $0x940] ss:$8 sps:$4 sm:$0xff]   ;;  %v455_v17 = vor.u32 %v454_v12, %v7899_v4  ;;  %v83_v12 = vrot.slane %v7728_v58, 1 }
  0x3d   :  { %4873 = vmatprep.subr.bf16.mxu0 %v6839_v18  ;;  %v6875_v18 = vld [vmem:[%s9785_s1 + $0x154] ss:$8 sps:$4 sm:$0xff]  }
  0x3f   :  { %4130 = vmatpush1.bf16.msra.mxu1 %v6841_v19  ;;  %v6878_v19 = vld [vmem:[%s9785_s1 + $0x954] ss:$8 sps:$4 sm:$0xff]  }
  0x40   :  { %4874 = vmatpush1.bf16.msra.mxu0 %v6842_v20  ;;  %4192 = vmatprep.subr.bf16.mxu1 %v6845_v21  ;;  %v467_v21 = vrot.slane %v7924_v14, 1 }
  0x41   :  { %4936 = vmatprep.subr.bf16.mxu0 %v6848_v22  ;;  %v5860_v22 = vld [vmem:[%s9786_s0 + $0x80] sm:$0xff] }
  0x42   :  { %4132 = vmatmul.mubr.bf16.vlgmr.msra.gmra.mrb[0].mxu1 %v7714_v53  ;;  %v471_v39 = vor.u32 %v7960_v31, %v467_v21 }
  0x43   :  { %4876 = vmatmul.mubr.bf16.vlgmr.msra.gmra.mrb[0].mxu0 %v7716_v54  ;;  %4193 = vmatpush1.bf16.msra.mxu1 %v6843_v26  ;;  %v6876_v26 = vld [vmem:[%s9785_s1 + $0x950] ss:$8 sps:$4 sm:$0xff]  }
  0x44   :  { %4937 = vmatpush1.bf16.msra.mxu0 %v6846_v28  ;;  %4194 = vmatprep.subr.bf16.mxu1 %v6851_v29 }
  0x45   :  { %4938 = vmatprep.subr.bf16.mxu0 %v6854_v30  ;;  %4141 = vmatprep.mubr.bf16.mxu1 %v49_v13  ;;  %v459_v13 = vrot.slane %v7914_v9, 1  ;;  %v7957_v30 = vpack.c.bf16 %v5861_v24, %v5860_v22  ;;  %v6905_v22 = vld [vmem:[%s9785_s1 + $0x1a4] ss:$8 sps:$4 sm:$0xff]  }
  0x46   :  { %4885 = vmatprep.mubr.bf16.mxu0 %v57_v41  ;;  %v6908_v24 = vld [vmem:[%s9785_s1 + $0x9a4] ss:$8 sps:$4 sm:$0xff]  }
  0x47   :  { %4195 = vmatpush1.bf16.msra.mxu1 %v6849_v33  ;;  %v463_v20 = vor.u32 %v7919_v11, %v459_v13  ;;  %v460_v28 = vsel %vm29_vm0, %v455_v17, %v459_v13  ;;  %v6881_v33 = vld [vmem:[%s9785_s1 + $0x164] ss:$8 sps:$4 sm:$0xff]   ;;  %v7969_v35 = vshll.u32 %v7957_v30, 16  ;;  %v7997_v49 = vshrl.u32 %v7957_v30, 16 }
  0x48   :  { %4939 = vmatpush1.bf16.msra.mxu0 %v6852_v34  ;;  %4196 = vmatprep.subr.bf16.mxu1 %v6857_v37  ;;  %v6884_v34 = vld [vmem:[%s9785_s1 + $0x964] ss:$8 sps:$4 sm:$0xff]   ;;  %v6879_v37 = vld [vmem:[%s9785_s1 + $0x160] ss:$8 sps:$4 sm:$0xff]   ;;  %v84_v13 = vrot.slane %v7731_v59, 2  ;;  %v87_v17 = vrot.slane %v7734_v60, 2 }
  0x49   :  { %4940 = vmatprep.subr.bf16.mxu0 %v6860_v40  ;;  %v468_v29 = vsel %vm29_vm0, %v463_v20, %v467_v21  ;;  %v475_v40 = vrot.slane %v7969_v35, 1  ;;  %v6897_v20 = vld [vmem:[%s9785_s1 + $0x190] ss:$8 sps:$4 sm:$0xff]  }
  0x4a   :  { %4142 = vmatmul.mubr.bf16.gmra.mrb[4].mxu1 %v7716_v54  ;;  %v6900_v21 = vld [vmem:[%s9785_s1 + $0x990] ss:$8 sps:$4 sm:$0xff]  }
  0x4b   :  { %4886 = vmatmul.mubr.bf16.gmra.mrb[4].mxu0 %v7736_v61  ;;  %4197 = vmatpush1.bf16.msra.mxu1 %v6855_v43  ;;  %v5863_v43 = vld [vmem:[%s9786_s0 + $0x98] sm:$0xff] }
  0x4c   :  { %4941 = vmatpush1.bf16.msra.mxu0 %v6858_v44  ;;  %4198 = vmatprep.subr.bf16.mxu1 %v6863_v47  ;;  %v6887_v44 = vld [vmem:[%s9785_s1 + $0x174] ss:$8 sps:$4 sm:$0xff]  }
  0x4d   :  { %4942 = vmatprep.subr.bf16.mxu0 %v6866_v48  ;;  %4151 = vmatprep.mubr.bf16.mxu1 %v57_v41  ;;  %v5862_v41 = vld [vmem:[%s9786_s0 + $0x90] sm:$0xff]  ;;  %v476_v48 = vsel %vm29_vm0, %v471_v39, %v475_v40 }
  0x4e   :  { %4895 = vmatprep.mubr.bf16.mxu0 %v325_v0  ;;  %v7991_v47 = vpack.c.bf16 %v5863_v43, %v5862_v41  ;;  %v6912_v41 = vld [vmem:[%s9785_s1 + $0x9b0] ss:$8 sps:$4 sm:$0xff]   ;;  %v6917_v43 = vld [vmem:[%s9785_s1 + $0x1c4] ss:$8 sps:$4 sm:$0xff]  }
  0x4f   :  { %4199 = vmatpush1.bf16.msra.mxu1 %v6861_v57  ;;  %v6896_v57 = vld [vmem:[%s9785_s1 + $0x984] ss:$8 sps:$4 sm:$0xff]  }
  0x50   :  { %4943 = vmatpush1.bf16.msra.mxu0 %v6864_v62  ;;  %4200 = vmatprep.subr.bf16.mxu1 %v6869_v7  ;;  %v8000_v50 = vshll.u32 %v7991_v47, 16  ;;  %v725_v62 = vor.u32 %v7997_v49, %v475_v40  ;;  %v6899_v7 = vld [vmem:[%s9785_s1 + $0x194] ss:$8 sps:$4 sm:$0xff]   ;;  %v6909_v40 = vld [vmem:[%s9785_s1 + $0x1b0] ss:$8 sps:$4 sm:$0xff]  }
  0x51   :  { %4944 = vmatprep.subr.bf16.mxu0 %v6872_v8  ;;  %v6902_v8 = vld [vmem:[%s9785_s1 + $0x994] ss:$8 sps:$4 sm:$0xff]  }
  0x52   :  { %4152 = vmatmul.mubr.bf16.gmra.mrb[8].mxu1 %v7736_v61  ;;  %v729_v0 = vrot.slane %v8000_v50, 1 }
  0x53   :  { %4896 = vmatmul.mubr.bf16.gmra.mrb[8].mxu0 %v7811_v27  ;;  %4201 = vmatpush1.bf16.msra.mxu1 %v6867_v15  ;;  %v86_v15 = vrot.slane %v7742_v63, 1 }
  0x54   :  { %4945 = vmatpush1.bf16.msra.mxu0 %v6870_v16  ;;  %4202 = vmatprep.subr.bf16.mxu1 %v6875_v18  ;;  %v730_v16 = vsel %vm29_vm0, %v725_v62, %v729_v0  ;;  %v90_v18 = vrot.slane %v7800_v23, 1  ;;  %v6929_v62 = vld [vmem:[%s9785_s1 + $0x1e4] ss:$8 sps:$4 sm:$0xff]  }
  0x55   :  { %4946 = vmatprep.subr.bf16.mxu0 %v6878_v19  ;;  %4161 = vmatprep.mubr.bf16.mxu1 %v460_v28  ;;  %v91_v19 = vrot.slane %v7750_v3, 2  ;;  %v6932_v0 = vld [vmem:[%s9785_s1 + $0x9e4] ss:$8 sps:$4 sm:$0xff]  }
  0x56   :  { %4905 = vmatprep.mubr.bf16.mxu0 %v468_v29 }
  0x57   :  { %4203 = vmatpush1.bf16.msra.mxu1 %v6873_v25  ;;  %v85_v25 = vor.u32 %v84_v13, %v83_v12  ;;  %v8049_v28 = vor.u32 %v91_v19, %v90_v18  ;;  %v69_v12 = vrot.slane %v7714_v53, 1  ;;  %v70_v13 = vrot.slane %v7716_v54, 1  ;;  %v6936_v18 = vld [vmem:[%s9785_s1 + $0x9f0] ss:$8 sps:$4 sm:$0xff]  }
  0x58   :  { %4947 = vmatpush1.bf16.msra.mxu0 %v6876_v26  ;;  %4204 = vmatprep.subr.bf16.mxu1 %v6881_v33  ;;  %v88_v26 = vor.u32 %v87_v17, %v86_v15  ;;  %v6906_v33 = vld [vmem:[%s9785_s1 + $0x9a0] ss:$8 sps:$4 sm:$0xff]   ;;  %v96_v15 = vrot.slane %v7836_v36, 1  ;;  %v6933_v17 = vld [vmem:[%s9785_s1 + $0x1f0] ss:$8 sps:$4 sm:$0xff]   ;;  %v72_v19 = vrot.slane %v7736_v61, 1 }
  0x59   :  { %4948 = vmatprep.subr.bf16.mxu0 %v6884_v34  ;;  %v6911_v34 = vld [vmem:[%s9785_s1 + $0x1b4] ss:$8 sps:$4 sm:$0xff]  }
  0x5a   :  { %4162 = vmatmul.mubr.bf16.gmra.mrb[12].mxu1 %v7882_v56  ;;  %v8068_v39 = vsel %vm82_vm1, %v88_v26, %v8049_v28 }
  0x5b   :  { %4906 = vmatmul.mubr.bf16.gmra.mrb[12].mxu0 %v7893_v1  ;;  %4205 = vmatpush1.bf16.msra.mxu1 %v6879_v37  ;;  %v6914_v37 = vld [vmem:[%s9785_s1 + $0x9b4] ss:$8 sps:$4 sm:$0xff]  }
  0x5c   :  { %4949 = vmatpush1.bf16.msra.mxu0 %v6882_v38  ;;  %4206 = vmatprep.subr.bf16.mxu1 %v6887_v44  ;;  %v89_v38 = vsel %vm82_vm1, %v85_v25, %v88_v26  ;;  %v6920_v44 = vld [vmem:[%s9785_s1 + $0x9c4] ss:$8 sps:$4 sm:$0xff]   ;;  %v6939_v25 = vld [vmem:[%s9785_s1 + $0x200] ss:$8 sps:$4 sm:$0xff]  }
  0x5d   :  { %4950 = vmatprep.subr.bf16.mxu0 %v6890_v45  ;;  %4171 = vmatprep.mubr.bf16.mxu1 %v468_v29  ;;  %v6903_v29 = vld [vmem:[%s9785_s1 + $0x1a0] ss:$8 sps:$4 sm:$0xff]  }
  0x5e   :  { %4915 = vmatprep.mubr.bf16.mxu0 %v476_v48  ;;  %v6915_v45 = vld [vmem:[%s9785_s1 + $0x1c0] ss:$8 sps:$4 sm:$0xff]  }
  0x5f   :  { %4207 = vmatpush1.bf16.msra.mxu1 %v6885_v51  ;;  %v6923_v51 = vld [vmem:[%s9785_s1 + $0x1d4] ss:$8 sps:$4 sm:$0xff]   ;;  %v6942_v26 = vld [vmem:[%s9785_s1 + $0xa00] ss:$8 sps:$4 sm:$0xff]  }
  0x60   :  { %4951 = vmatpush1.bf16.msra.mxu0 %v6888_v52  ;;  %4208 = vmatprep.subr.bf16.mxu1 %v6893_v55  ;;  %v6926_v52 = vld [vmem:[%s9785_s1 + $0x9d4] ss:$8 sps:$4 sm:$0xff]   ;;  %v6921_v55 = vld [vmem:[%s9785_s1 + $0x1d0] ss:$8 sps:$4 sm:$0xff]  }
  0x61   :  { %4952 = vmatprep.subr.bf16.mxu0 %v6896_v57  ;;  %v6924_v57 = vld [vmem:[%s9785_s1 + $0x9d0] ss:$8 sps:$4 sm:$0xff]  }
  0x62   :  { %4172 = vmatmul.mubr.bf16.gmra.mrb[16].mxu1 %v7893_v1 }
  0x63   :  { %4916 = vmatmul.mubr.bf16.gmra.mrb[16].mxu0 %v7916_v10  ;;  %4209 = vmatpush1.bf16.msra.mxu1 %v6891_v2  ;;  %v6927_v2 = vld [vmem:[%s9785_s1 + $0x1e0] ss:$8 sps:$4 sm:$0xff]  }
  0x64   :  { %4953 = vmatpush1.bf16.msra.mxu0 %v6894_v6  ;;  %4210 = vmatprep.subr.bf16.mxu1 %v6899_v7  ;;  %v6930_v6 = vld [vmem:[%s9785_s1 + $0x9e0] ss:$8 sps:$4 sm:$0xff]   ;;  %v6935_v7 = vld [vmem:[%s9785_s1 + $0x1f4] ss:$8 sps:$4 sm:$0xff]  }
  0x65   :  { %4954 = vmatprep.subr.bf16.mxu0 %v6902_v8  ;;  %4181 = vmatprep.mubr.bf16.mxu1 %v476_v48  ;;  %v6918_v48 = vld [vmem:[%s9785_s1 + $0x9c0] ss:$8 sps:$4 sm:$0xff]   ;;  %v6938_v8 = vld [vmem:[%s9785_s1 + $0x9f4] ss:$8 sps:$4 sm:$0xff]  }
  0x66   :  { %4925 = vmatprep.mubr.bf16.mxu0 %v730_v16  ;;  %v97_v16 = vrot.slane %v7824_v32, 2 }
  0x67   :  { %4211 = vmatpush1.bf16.msra.mxu1 %v6897_v20  ;;  %v6941_v20 = vld [vmem:[%s9785_s1 + $0x204] ss:$8 sps:$4 sm:$0xff]  }
  0x68   :  { %4955 = vmatpush1.bf16.msra.mxu0 %v6900_v21  ;;  %4212 = vmatprep.subr.bf16.mxu1 %v6905_v22  ;;  %v6944_v21 = vld [vmem:[%s9785_s1 + $0xa04] ss:$8 sps:$4 sm:$0xff]   ;;  %v8137_v22 = vshrl.u32 %v7851_v42, 16 }
  0x69   :  { %4956 = vmatprep.subr.bf16.mxu0 %v6908_v24  ;;  %v98_v24 = vor.u32 %v97_v16, %v96_v15  ;;  %v6957_v15 = vld [vmem:[%s9785_s1 + $0x230] ss:$8 sps:$4 sm:$0xff]  }
  0x6a   :  { %4182 = vmatmul.mubr.bf16.gmra.mrb[20].mxu1 %v7916_v10  ;;  %v6960_v16 = vld [vmem:[%s9785_s1 + $0xa30] ss:$8 sps:$4 sm:$0xff]  }
  0x6b   :  { %4926 = vmatmul.mubr.bf16.gmra.mrb[20].mxu0 %v7957_v30  ;;  %4213 = vmatpush1.bf16.msra.mxu1 %v6903_v29  ;;  %v71_v29 = vsel %vm68_vm2, %v69_v12, %v70_v13  ;;  %v507_v12 = vrot.slane %v7960_v31, 1 }
  0x6c   :  { %4957 = vmatpush1.bf16.msra.mxu0 %v6906_v33  ;;  %4214 = vmatprep.subr.bf16.mxu1 %v6911_v34  ;;  %v73_v33 = vsel %vm68_vm2, %v70_v13, %v72_v19  ;;  %v6947_v34 = vld [vmem:[%s9785_s1 + $0x214] ss:$8 sps:$4 sm:$0xff]   ;;  %v508_v13 = vrot.slane %v7924_v14, 2 }
  0x6d   :  { %4958 = vmatprep.subr.bf16.mxu0 %v6914_v37  ;;  %4224 = vmatprep.mubr.bf16.mxu1 %v89_v38  ;;  %v6950_v37 = vld [vmem:[%s9785_s1 + $0xa14] ss:$8 sps:$4 sm:$0xff]   ;;  %v339_v38 = vrot.slane %v8137_v22, 1 }
  0x6e   :  { %4968 = vmatprep.mubr.bf16.mxu0 %v8068_v39 }
  0x6f   :  { %4215 = vmatpush1.bf16.msra.mxu1 %v6909_v40  ;;  %v340_v40 = vrot.slane %v7861_v46, 2 }
  0x70   :  { %4959 = vmatpush1.bf16.msra.mxu0 %v6912_v41  ;;  %4216 = vmatprep.subr.bf16.mxu1 %v6917_v43  ;;  %v99_v41 = vsel %vm82_vm1, %v8049_v28, %v98_v24  ;;  %v6945_v43 = vld [vmem:[%s9785_s1 + $0x210] ss:$8 sps:$4 sm:$0xff]   ;;  %v6956_v28 = vld [vmem:[%s9785_s1 + $0xa24] ss:$8 sps:$4 sm:$0xff]  }
  0x71   :  { %4960 = vmatprep.subr.bf16.mxu0 %v6920_v44  ;;  %v6948_v44 = vld [vmem:[%s9785_s1 + $0xa10] ss:$8 sps:$4 sm:$0xff]  }
  0x73   :  { %4217 = vmatpush1.bf16.msra.mxu1 %v6915_v45  ;;  %v74_v45 = vrot.slane %v7811_v27, 1 }
  0x74   :  { %4961 = vmatpush1.bf16.msra.mxu0 %v6918_v48  ;;  %4218 = vmatprep.subr.bf16.mxu1 %v6923_v51  ;;  %v6953_v48 = vld [vmem:[%s9785_s1 + $0x224] ss:$8 sps:$4 sm:$0xff]   ;;  %v341_v51 = vor.u32 %v340_v40, %v339_v38  ;;  %v488_v38 = vrot.slane %v7893_v1, 1 }
  0x75   :  { %4962 = vmatprep.subr.bf16.mxu0 %v6926_v52  ;;  %v6951_v52 = vld [vmem:[%s9785_s1 + $0x220] ss:$8 sps:$4 sm:$0xff]  }
  0x77   :  { %4219 = vmatpush1.bf16.msra.mxu1 %v6921_v55  ;;  %v6954_v55 = vld [vmem:[%s9785_s1 + $0xa20] ss:$8 sps:$4 sm:$0xff]  }
  0x78   :  { %4963 = vmatpush1.bf16.msra.mxu0 %v6924_v57  ;;  %4220 = vmatprep.subr.bf16.mxu1 %v6929_v62  ;;  %v75_v57 = vsel %vm68_vm2, %v72_v19, %v74_v45  ;;  %v6962_v62 = vld [vmem:[%s9785_s1 + $0xa34] ss:$8 sps:$4 sm:$0xff]   ;;  %v6968_v19 = vld [vmem:[%s9785_s1 + $0xa44] ss:$8 sps:$4 sm:$0xff]  }
  0x79   :  { %4964 = vmatprep.subr.bf16.mxu0 %v6932_v0  ;;  %v342_v0 = vsel %vm82_vm1, %v98_v24, %v341_v51  ;;  %v509_v24 = vor.u32 %v508_v13, %v507_v12  ;;  %v6977_v51 = vld [vmem:[%s9785_s1 + $0x264] ss:$8 sps:$4 sm:$0xff]   ;;  %v745_v13 = vrot.slane %v8000_v50, 2 }
  0x7b   :  { %4221 = vmatpush1.bf16.msra.mxu1 %v6927_v2  ;;  %v500_v2 = vrot.slane %v7899_v4, 1 }
  0x7c   :  { %4965 = vmatpush1.bf16.msra.mxu0 %v6930_v6  ;;  %4222 = vmatprep.subr.bf16.mxu1 %v6935_v7  ;;  %v501_v6 = vrot.slane %v7902_v5, 2  ;;  %v503_v7 = vrot.slane %v7919_v11, 1 }
  0x7d   :  { %4966 = vmatprep.subr.bf16.mxu0 %v6938_v8  ;;  %v504_v8 = vrot.slane %v7914_v9, 2 }
  0x7f   :  { %4223 = vmatpush1.bf16.msra.mxu1 %v6933_v17  ;;  %v331_v17 = vrot.slane %v7851_v42, 1 }
  0x80   :  { %4967 = vmatpush1.bf16.msra.mxu0 %v6936_v18  ;;  %4285 = vmatprep.subr.bf16.mxu1 %v6941_v20  ;;  %v6965_v18 = vld [vmem:[%s9785_s1 + $0x244] ss:$8 sps:$4 sm:$0xff]   ;;  %v502_v20 = vor.u32 %v501_v6, %v500_v2  ;;  %v6983_v6 = vld [vmem:[%s9785_s1 + $0x274] ss:$8 sps:$4 sm:$0xff]  }
  0x81   :  { %5029 = vmatprep.subr.bf16.mxu0 %v6944_v21  ;;  %v505_v21 = vor.u32 %v504_v8, %v503_v7  ;;  %v6986_v7 = vld [vmem:[%s9785_s1 + $0xa74] ss:$8 sps:$4 sm:$0xff]  }
  0x82   :  { %4225 = vmatmul.mubr.bf16.vlgmr.msra.gmra.mrb[0].mxu1 %v71_v29  ;;  %v332_v29 = vsel %vm68_vm2, %v74_v45, %v331_v17  ;;  %v6969_v45 = vld [vmem:[%s9785_s1 + $0x250] ss:$8 sps:$4 sm:$0xff]   ;;  %v492_v17 = vrot.slane %v7957_v30, 1 }
  0x83   :  { %4969 = vmatmul.mubr.bf16.vlgmr.msra.gmra.mrb[0].mxu0 %v73_v33  ;;  %4286 = vmatpush1.bf16.msra.mxu1 %v6939_v25  ;;  %v6963_v25 = vld [vmem:[%s9785_s1 + $0x240] ss:$8 sps:$4 sm:$0xff]   ;;  %v506_v40 = vsel %vm82_vm1, %v502_v20, %v505_v21 }
  0x84   :  { %5030 = vmatpush1.bf16.msra.mxu0 %v6942_v26  ;;  %4287 = vmatprep.subr.bf16.mxu1 %v6947_v34  ;;  %v6966_v26 = vld [vmem:[%s9785_s1 + $0xa40] ss:$8 sps:$4 sm:$0xff]   ;;  %v6974_v34 = vld [vmem:[%s9785_s1 + $0xa54] ss:$8 sps:$4 sm:$0xff]  }
  0x85   :  { %5031 = vmatprep.subr.bf16.mxu0 %v6950_v37  ;;  %4234 = vmatprep.mubr.bf16.mxu1 %v8068_v39  ;;  %v6959_v39 = vld [vmem:[%s9785_s1 + $0x234] ss:$8 sps:$4 sm:$0xff]   ;;  %v487_v37 = vrot.slane %v7882_v56, 1 }
  0x86   :  { %4978 = vmatprep.mubr.bf16.mxu0 %v99_v41 }
  0x87   :  { %4288 = vmatpush1.bf16.msra.mxu1 %v6945_v43  ;;  %v513_v43 = vrot.slane %v7997_v49, 1 }
  0x88   :  { %5032 = vmatpush1.bf16.msra.mxu0 %v6948_v44  ;;  %4289 = vmatprep.subr.bf16.mxu1 %v6953_v48  ;;  %v514_v44 = vrot.slane %v7969_v35, 2  ;;  %v6972_v48 = vld [vmem:[%s9785_s1 + $0xa50] ss:$8 sps:$4 sm:$0xff]  }
  0x89   :  { %5033 = vmatprep.subr.bf16.mxu0 %v6956_v28  ;;  %v490_v28 = vrot.slane %v7916_v10, 1 }
  0x8a   :  { %4235 = vmatmul.mubr.bf16.gmra.mrb[4].mxu1 %v73_v33  ;;  %v6971_v33 = vld [vmem:[%s9785_s1 + $0x254] ss:$8 sps:$4 sm:$0xff]  }
  0x8b   :  { %4979 = vmatmul.mubr.bf16.gmra.mrb[4].mxu0 %v75_v57  ;;  %4290 = vmatpush1.bf16.msra.mxu1 %v6951_v52  ;;  %v6980_v52 = vld [vmem:[%s9785_s1 + $0xa64] ss:$8 sps:$4 sm:$0xff]   ;;  %v491_v2 = vsel %vm68_vm2, %v488_v38, %v490_v28 }
  0x8c   :  { %5034 = vmatpush1.bf16.msra.mxu0 %v6954_v55  ;;  %4291 = vmatprep.subr.bf16.mxu1 %v6959_v39  ;;  %v515_v55 = vor.u32 %v514_v44, %v513_v43  ;;  %v6975_v39 = vld [vmem:[%s9785_s1 + $0x260] ss:$8 sps:$4 sm:$0xff]   ;;  %v129_v43 = vrot.slane %v7750_v3, 3  ;;  %v6993_v44 = vld [vmem:[%s9785_s1 + $0x290] ss:$8 sps:$4 sm:$0xff]  }
  0x8d   :  { %5035 = vmatprep.subr.bf16.mxu0 %v6962_v62  ;;  %4244 = vmatprep.mubr.bf16.mxu1 %v99_v41  ;;  %v510_v41 = vsel %vm82_vm1, %v505_v21, %v509_v24  ;;  %v6978_v62 = vld [vmem:[%s9785_s1 + $0xa60] ss:$8 sps:$4 sm:$0xff]  }
  0x8e   :  { %4988 = vmatprep.mubr.bf16.mxu0 %v342_v0  ;;  %v489_v0 = vsel %vm68_vm2, %v487_v37, %v488_v38  ;;  %v516_v8 = vsel %vm82_vm1, %v509_v24, %v515_v55  ;;  %v6987_v21 = vld [vmem:[%s9785_s1 + $0x280] ss:$8 sps:$4 sm:$0xff]   ;;  %v124_v37 = vrot.slane %v7742_v63, 2 }
  0x8f   :  { %4292 = vmatpush1.bf16.msra.mxu1 %v6957_v15  ;;  %v6981_v15 = vld [vmem:[%s9785_s1 + $0x270] ss:$8 sps:$4 sm:$0xff]   ;;  %v6990_v24 = vld [vmem:[%s9785_s1 + $0xa80] ss:$8 sps:$4 sm:$0xff]  }
  0x90   :  { %5036 = vmatpush1.bf16.msra.mxu0 %v6960_v16  ;;  %4293 = vmatprep.subr.bf16.mxu1 %v6965_v18  ;;  %v6984_v16 = vld [vmem:[%s9785_s1 + $0xa70] ss:$8 sps:$4 sm:$0xff]   ;;  %v6989_v18 = vld [vmem:[%s9785_s1 + $0x284] ss:$8 sps:$4 sm:$0xff]  }
  0x91   :  { %5037 = vmatprep.subr.bf16.mxu0 %v6968_v19  ;;  %v6992_v19 = vld [vmem:[%s9785_s1 + $0xa84] ss:$8 sps:$4 sm:$0xff]  }
  0x92   :  { %4245 = vmatmul.mubr.bf16.gmra.mrb[8].mxu1 %v75_v57  ;;  %v8237_v57 = vshrl.u32 %v7991_v47, 16 }
  0x93   :  { %4989 = vmatmul.mubr.bf16.gmra.mrb[8].mxu0 %v332_v29  ;;  %4294 = vmatpush1.bf16.msra.mxu1 %v6963_v25  ;;  %v493_v25 = vsel %vm68_vm2, %v490_v28, %v492_v17  ;;  %v6998_v29 = vld [vmem:[%s9785_s1 + $0xa94] ss:$8 sps:$4 sm:$0xff]   ;;  %v7001_v28 = vld [vmem:[%s9785_s1 + $0x2a4] ss:$8 sps:$4 sm:$0xff]  }
  0x94   :  { %5038 = vmatpush1.bf16.msra.mxu0 %v6966_v26  ;;  %4295 = vmatprep.subr.bf16.mxu1 %v6971_v33  ;;  %v744_v12 = vrot.slane %v8237_v57, 1  ;;  %v6995_v26 = vld [vmem:[%s9785_s1 + $0x294] ss:$8 sps:$4 sm:$0xff]   ;;  %v121_v33 = vrot.slane %v7728_v58, 2 }
  0x95   :  { %5039 = vmatprep.subr.bf16.mxu0 %v6974_v34  ;;  %4254 = vmatprep.mubr.bf16.mxu1 %v506_v40  ;;  %v122_v34 = vrot.slane %v7731_v59, 3  ;;  %v125_v40 = vrot.slane %v7734_v60, 3 }
  0x96   :  { %4998 = vmatprep.mubr.bf16.mxu0 %v510_v41  ;;  %v746_v20 = vor.u32 %v745_v13, %v744_v12  ;;  %v7005_v13 = vld [vmem:[%s9785_s1 + $0x2b0] ss:$8 sps:$4 sm:$0xff]  }
  0x97   :  { %4296 = vmatpush1.bf16.msra.mxu1 %v6969_v45  ;;  %v6996_v45 = vld [vmem:[%s9785_s1 + $0xa90] ss:$8 sps:$4 sm:$0xff]  }
  0x98   :  { %5040 = vmatpush1.bf16.msra.mxu0 %v6972_v48  ;;  %4297 = vmatprep.subr.bf16.mxu1 %v6977_v51  ;;  %v747_v38 = vsel %vm82_vm1, %v515_v55, %v746_v20  ;;  %v736_v48 = vrot.slane %v7991_v47, 1  ;;  %v7004_v51 = vld [vmem:[%s9785_s1 + $0xaa4] ss:$8 sps:$4 sm:$0xff]   ;;  %v126_v55 = vor.u32 %v125_v40, %v124_v37  ;;  %v7019_v20 = vld [vmem:[%s9785_s1 + $0x2d4] ss:$8 sps:$4 sm:$0xff]   ;;  %v107_v40 = vrot.slane %v7714_v53, 2 }
  0x99   :  { %5041 = vmatprep.subr.bf16.mxu0 %v6980_v52  ;;  %v123_v52 = vor.u32 %v122_v34, %v121_v33  ;;  %v7023_v33 = vld [vmem:[%s9785_s1 + $0x2e0] ss:$8 sps:$4 sm:$0xff]   ;;  %v7031_v37 = vld [vmem:[%s9785_s1 + $0x2f4] ss:$8 sps:$4 sm:$0xff]  }
  0x9a   :  { %4255 = vmatmul.mubr.bf16.gmra.mrb[12].mxu1 %v489_v0  ;;  %v7002_v0 = vld [vmem:[%s9785_s1 + $0xaa0] ss:$8 sps:$4 sm:$0xff]  }
  0x9b   :  { %4999 = vmatmul.mubr.bf16.gmra.mrb[12].mxu0 %v491_v2  ;;  %4298 = vmatpush1.bf16.msra.mxu1 %v6975_v39  ;;  %v7026_v34 = vld [vmem:[%s9785_s1 + $0xae0] ss:$8 sps:$4 sm:$0xff]  }
  0x9c   :  { %5042 = vmatpush1.bf16.msra.mxu0 %v6978_v62  ;;  %4299 = vmatprep.subr.bf16.mxu1 %v6983_v6  ;;  %v6999_v62 = vld [vmem:[%s9785_s1 + $0x2a0] ss:$8 sps:$4 sm:$0xff]   ;;  %v7007_v6 = vld [vmem:[%s9785_s1 + $0x2b4] ss:$8 sps:$4 sm:$0xff]  }
  0x9d   :  { %5043 = vmatprep.subr.bf16.mxu0 %v6986_v7  ;;  %4264 = vmatprep.mubr.bf16.mxu1 %v510_v41  ;;  %v128_v41 = vrot.slane %v7800_v23, 2  ;;  %v7010_v7 = vld [vmem:[%s9785_s1 + $0xab4] ss:$8 sps:$4 sm:$0xff]  }
  0x9e   :  { %5008 = vmatprep.mubr.bf16.mxu0 %v516_v8 }
  0x9f   :  { %4300 = vmatpush1.bf16.msra.mxu1 %v6981_v15  ;;  %v8302_v39 = vor.u32 %v129_v43, %v128_v41  ;;  %v7008_v15 = vld [vmem:[%s9785_s1 + $0xab0] ss:$8 sps:$4 sm:$0xff]   ;;  %v108_v41 = vrot.slane %v7716_v54, 2  ;;  %v132_v43 = vrot.slane %v7836_v36, 2 }
  0xa0   :  { %5044 = vmatpush1.bf16.msra.mxu0 %v6984_v16  ;;  %4301 = vmatprep.subr.bf16.mxu1 %v6989_v18  ;;  %v7013_v16 = vld [vmem:[%s9785_s1 + $0x2c4] ss:$8 sps:$4 sm:$0xff]   ;;  %v7011_v18 = vld [vmem:[%s9785_s1 + $0x2c0] ss:$8 sps:$4 sm:$0xff]  }
  0xa1   :  { %5045 = vmatprep.subr.bf16.mxu0 %v6992_v19  ;;  %v8320_v12 = vsel %vm120_vm3, %v126_v55, %v8302_v39  ;;  %v7014_v19 = vld [vmem:[%s9785_s1 + $0xac0] ss:$8 sps:$4 sm:$0xff]  }
  0xa2   :  { %4265 = vmatmul.mubr.bf16.gmra.mrb[16].mxu1 %v491_v2  ;;  %v737_v2 = vsel %vm68_vm2, %v492_v17, %v736_v48  ;;  %v7016_v17 = vld [vmem:[%s9785_s1 + $0xac4] ss:$8 sps:$4 sm:$0xff]   ;;  %v7032_v48 = vld [vmem:[%s9785_s1 + $0xaf0] ss:$8 sps:$4 sm:$0xff]  }
  0xa3   :  { %5009 = vmatmul.mubr.bf16.gmra.mrb[16].mxu0 %v493_v25  ;;  %4302 = vmatpush1.bf16.msra.mxu1 %v6987_v21  ;;  %v7022_v21 = vld [vmem:[%s9785_s1 + $0xad4] ss:$8 sps:$4 sm:$0xff]  }
  0xa4   :  { %5046 = vmatpush1.bf16.msra.mxu0 %v6990_v24  ;;  %4303 = vmatprep.subr.bf16.mxu1 %v6995_v26  ;;  %v7017_v24 = vld [vmem:[%s9785_s1 + $0x2d0] ss:$8 sps:$4 sm:$0xff]   ;;  %v7025_v26 = vld [vmem:[%s9785_s1 + $0x2e4] ss:$8 sps:$4 sm:$0xff]  }
  0xa5   :  { %5047 = vmatprep.subr.bf16.mxu0 %v6998_v29  ;;  %4274 = vmatprep.mubr.bf16.mxu1 %v516_v8  ;;  %v127_v8 = vsel %vm120_vm3, %v123_v52, %v126_v55  ;;  %v7028_v29 = vld [vmem:[%s9785_s1 + $0xae4] ss:$8 sps:$4 sm:$0xff]  }
  0xa6   :  { %5018 = vmatprep.mubr.bf16.mxu0 %v747_v38  ;;  %v7034_v38 = vld [vmem:[%s9785_s1 + $0xaf4] ss:$8 sps:$4 sm:$0xff]   ;;  %v7040_v52 = vld [vmem:[%s9785_s1 + $0xb04] ss:$8 sps:$4 sm:$0xff]  }
  0xa7   :  { %4304 = vmatpush1.bf16.msra.mxu1 %v6993_v44  ;;  %v133_v44 = vrot.slane %v7824_v32, 3 }
  0xa8   :  { %5048 = vmatpush1.bf16.msra.mxu0 %v6996_v45  ;;  %4305 = vmatprep.subr.bf16.mxu1 %v7001_v28  ;;  %v7029_v45 = vld [vmem:[%s9785_s1 + $0x2f0] ss:$8 sps:$4 sm:$0xff]   ;;  %v110_v28 = vrot.slane %v7736_v61, 2 }
  0xa9   :  { %5049 = vmatprep.subr.bf16.mxu0 %v7004_v51  ;;  %v7037_v51 = vld [vmem:[%s9785_s1 + $0x304] ss:$8 sps:$4 sm:$0xff]   ;;  %v134_v55 = vor.u32 %v133_v44, %v132_v43  ;;  %v544_v43 = vrot.slane %v7924_v14, 3  ;;  %v7053_v44 = vld [vmem:[%s9785_s1 + $0x330] ss:$8 sps:$4 sm:$0xff]  }
  0xaa   :  { %4275 = vmatmul.mubr.bf16.gmra.mrb[20].mxu1 %v493_v25  ;;  %v7020_v25 = vld [vmem:[%s9785_s1 + $0xad0] ss:$8 sps:$4 sm:$0xff]  }
  0xab   :  { %5019 = vmatmul.mubr.bf16.gmra.mrb[20].mxu0 %v737_v2  ;;  %4306 = vmatpush1.bf16.msra.mxu1 %v6999_v62  ;;  %v7035_v62 = vld [vmem:[%s9785_s1 + $0x300] ss:$8 sps:$4 sm:$0xff]   ;;  %v109_v2 = vsel %vm106_vm4, %v107_v40, %v108_v41  ;;  %v540_v40 = vrot.slane %v7914_v9, 3 }
  0xac   :  { %5050 = vmatpush1.bf16.msra.mxu0 %v7002_v0  ;;  %4307 = vmatprep.subr.bf16.mxu1 %v7007_v6  ;;  %v7038_v0 = vld [vmem:[%s9785_s1 + $0xb00] ss:$8 sps:$4 sm:$0xff]   ;;  %v111_v6 = vsel %vm106_vm4, %v108_v41, %v110_v28  ;;  %v543_v41 = vrot.slane %v7960_v31, 2 }
  0xad   :  { %5051 = vmatprep.subr.bf16.mxu0 %v7010_v7  ;;  %4317 = vmatprep.mubr.bf16.mxu1 %v127_v8  ;;  %v7043_v7 = vld [vmem:[%s9785_s1 + $0x314] ss:$8 sps:$4 sm:$0xff]  }
  0xae   :  { %5061 = vmatprep.mubr.bf16.mxu0 %v8320_v12  ;;  %v7046_v8 = vld [vmem:[%s9785_s1 + $0xb14] ss:$8 sps:$4 sm:$0xff]  }
  0xaf   :  { %4308 = vmatpush1.bf16.msra.mxu1 %v7005_v13  ;;  %v353_v13 = vrot.slane %v8137_v22, 2 }
  0xb0   :  { %5052 = vmatpush1.bf16.msra.mxu0 %v7008_v15  ;;  %4309 = vmatprep.subr.bf16.mxu1 %v7013_v16  ;;  %v354_v15 = vrot.slane %v7861_v46, 3  ;;  %v135_v16 = vsel %vm120_vm3, %v8302_v39, %v134_v55  ;;  %v7052_v39 = vld [vmem:[%s9785_s1 + $0xb24] ss:$8 sps:$4 sm:$0xff]  }
  0xb1   :  { %5053 = vmatprep.subr.bf16.mxu0 %v7016_v17  ;;  %v7041_v17 = vld [vmem:[%s9785_s1 + $0x310] ss:$8 sps:$4 sm:$0xff]  }
  0xb3   :  { %4310 = vmatpush1.bf16.msra.mxu1 %v7011_v18  ;;  %v7044_v18 = vld [vmem:[%s9785_s1 + $0xb10] ss:$8 sps:$4 sm:$0xff]  }
  0xb4   :  { %5054 = vmatpush1.bf16.msra.mxu0 %v7014_v19  ;;  %4311 = vmatprep.subr.bf16.mxu1 %v7019_v20  ;;  %v112_v19 = vrot.slane %v7811_v27, 2  ;;  %v7049_v20 = vld [vmem:[%s9785_s1 + $0x324] ss:$8 sps:$4 sm:$0xff]  }
  0xb5   :  { %5055 = vmatprep.subr.bf16.mxu0 %v7022_v21  ;;  %v355_v21 = vor.u32 %v354_v15, %v353_v13  ;;  %v523_v13 = vrot.slane %v7882_v56, 2  ;;  %v524_v15 = vrot.slane %v7893_v1, 2 }
  0xb7   :  { %4312 = vmatpush1.bf16.msra.mxu1 %v7017_v24  ;;  %v7047_v24 = vld [vmem:[%s9785_s1 + $0x320] ss:$8 sps:$4 sm:$0xff]  }
  0xb8   :  { %5056 = vmatpush1.bf16.msra.mxu0 %v7020_v25  ;;  %4313 = vmatprep.subr.bf16.mxu1 %v7025_v26  ;;  %v7050_v25 = vld [vmem:[%s9785_s1 + $0xb20] ss:$8 sps:$4 sm:$0xff]   ;;  %v113_v26 = vsel %vm106_vm4, %v110_v28, %v112_v19  ;;  %v7061_v28 = vld [vmem:[%s9785_s1 + $0x344] ss:$8 sps:$4 sm:$0xff]  }
  0xb9   :  { %5057 = vmatprep.subr.bf16.mxu0 %v7028_v29  ;;  %v7058_v29 = vld [vmem:[%s9785_s1 + $0xb34] ss:$8 sps:$4 sm:$0xff]  }
  0xbb   :  { %4314 = vmatpush1.bf16.msra.mxu1 %v7023_v33  ;;  %v356_v33 = vsel %vm120_vm3, %v134_v55, %v355_v21  ;;  %v526_v21 = vrot.slane %v7916_v10, 2 }
  0xbc   :  { %5058 = vmatpush1.bf16.msra.mxu0 %v7026_v34  ;;  %4315 = vmatprep.subr.bf16.mxu1 %v7031_v37  ;;  %v536_v34 = vrot.slane %v7899_v4, 2  ;;  %v537_v37 = vrot.slane %v7902_v5, 3 }
  0xbd   :  { %5059 = vmatprep.subr.bf16.mxu0 %v7034_v38  ;;  %v539_v38 = vrot.slane %v7919_v11, 2 }
  0xbf   :  { %4316 = vmatpush1.bf16.msra.mxu1 %v7029_v45  ;;  %v7056_v45 = vld [vmem:[%s9785_s1 + $0xb30] ss:$8 sps:$4 sm:$0xff]   ;;  %v541_v55 = vor.u32 %v540_v40, %v539_v38  ;;  %v7082_v38 = vld [vmem:[%s9785_s1 + $0xb74] ss:$8 sps:$4 sm:$0xff]   ;;  %v758_v40 = vrot.slane %v8237_v57, 2 }
  0xc0   :  { %5060 = vmatpush1.bf16.msra.mxu0 %v7032_v48  ;;  %4378 = vmatprep.subr.bf16.mxu1 %v7037_v51  ;;  %v347_v48 = vrot.slane %v7851_v42, 2  ;;  %v7064_v51 = vld [vmem:[%s9785_s1 + $0xb44] ss:$8 sps:$4 sm:$0xff]  }
  0xc1   :  { %5122 = vmatprep.subr.bf16.mxu0 %v7040_v52  ;;  %v538_v52 = vor.u32 %v537_v37, %v536_v34  ;;  %v527_v34 = vsel %vm106_vm4, %v524_v15, %v526_v21  ;;  %v7079_v37 = vld [vmem:[%s9785_s1 + $0x374] ss:$8 sps:$4 sm:$0xff]  }
  0xc2   :  { %4318 = vmatmul.mubr.bf16.vlgmr.msra.gmra.mrb[0].mxu1 %v109_v2  ;;  %v7062_v2 = vld [vmem:[%s9785_s1 + $0xb40] ss:$8 sps:$4 sm:$0xff]  }
  0xc3   :  { %5062 = vmatmul.mubr.bf16.vlgmr.msra.gmra.mrb[0].mxu0 %v111_v6  ;;  %4379 = vmatpush1.bf16.msra.mxu1 %v7035_v62  ;;  %v545_v62 = vor.u32 %v544_v43, %v543_v41  ;;  %v759_v41 = vrot.slane %v8000_v50, 3 }
  0xc4   :  { %5123 = vmatpush1.bf16.msra.mxu0 %v7038_v0  ;;  %4380 = vmatprep.subr.bf16.mxu1 %v7043_v7  ;;  %v7059_v0 = vld [vmem:[%s9785_s1 + $0x340] ss:$8 sps:$4 sm:$0xff]   ;;  %v7067_v7 = vld [vmem:[%s9785_s1 + $0x354] ss:$8 sps:$4 sm:$0xff]  }
  0xc5   :  { %5124 = vmatprep.subr.bf16.mxu0 %v7046_v8  ;;  %4327 = vmatprep.mubr.bf16.mxu1 %v8320_v12  ;;  %v7055_v12 = vld [vmem:[%s9785_s1 + $0x334] ss:$8 sps:$4 sm:$0xff]  }
  0xc6   :  { %5071 = vmatprep.mubr.bf16.mxu0 %v135_v16  ;;  %v7070_v8 = vld [vmem:[%s9785_s1 + $0xb54] ss:$8 sps:$4 sm:$0xff]  }
  0xc7   :  { %4381 = vmatpush1.bf16.msra.mxu1 %v7041_v17  ;;  %v546_v17 = vsel %vm120_vm3, %v541_v55, %v545_v62 }
  0xc8   :  { %5125 = vmatpush1.bf16.msra.mxu0 %v7044_v18  ;;  %4382 = vmatprep.subr.bf16.mxu1 %v7049_v20  ;;  %v547_v18 = vrot.slane %v7997_v49, 2  ;;  %v7065_v20 = vld [vmem:[%s9785_s1 + $0x350] ss:$8 sps:$4 sm:$0xff]  }
  0xc9   :  { %5126 = vmatprep.subr.bf16.mxu0 %v7052_v39  ;;  %v7068_v39 = vld [vmem:[%s9785_s1 + $0xb50] ss:$8 sps:$4 sm:$0xff]  }
  0xca   :  { %4328 = vmatmul.mubr.bf16.gmra.mrb[4].mxu1 %v111_v6  ;;  %v348_v6 = vsel %vm106_vm4, %v112_v19, %v347_v48  ;;  %v548_v19 = vrot.slane %v7969_v35, 3  ;;  %v528_v48 = vrot.slane %v7957_v30, 2 }
  0xcb   :  { %5072 = vmatmul.mubr.bf16.gmra.mrb[4].mxu0 %v113_v26  ;;  %4383 = vmatpush1.bf16.msra.mxu1 %v7047_v24  ;;  %v7073_v24 = vld [vmem:[%s9785_s1 + $0x364] ss:$8 sps:$4 sm:$0xff]  }
  0xcc   :  { %5127 = vmatpush1.bf16.msra.mxu0 %v7050_v25  ;;  %4384 = vmatprep.subr.bf16.mxu1 %v7055_v12  ;;  %v7076_v25 = vld [vmem:[%s9785_s1 + $0xb64] ss:$8 sps:$4 sm:$0xff]   ;;  %v7071_v12 = vld [vmem:[%s9785_s1 + $0x360] ss:$8 sps:$4 sm:$0xff]  }
  0xcd   :  { %5128 = vmatprep.subr.bf16.mxu0 %v7058_v29  ;;  %4337 = vmatprep.mubr.bf16.mxu1 %v135_v16  ;;  %v542_v16 = vsel %vm120_vm3, %v538_v52, %v541_v55  ;;  %v7074_v29 = vld [vmem:[%s9785_s1 + $0xb60] ss:$8 sps:$4 sm:$0xff]   ;;  %v760_v52 = vor.u32 %v759_v41, %v758_v40 }
  0xce   :  { %5081 = vmatprep.mubr.bf16.mxu0 %v356_v33  ;;  %v525_v33 = vsel %vm106_vm4, %v523_v13, %v524_v15  ;;  %v7083_v55 = vld [vmem:[%s9785_s1 + $0x380] ss:$8 sps:$4 sm:$0xff]   ;;  %v158_v13 = vrot.slane %v7731_v59, 4  ;;  %v160_v15 = vrot.slane %v7742_v63, 3 }
  0xcf   :  { %4385 = vmatpush1.bf16.msra.mxu1 %v7053_v44  ;;  %v7077_v44 = vld [vmem:[%s9785_s1 + $0x370] ss:$8 sps:$4 sm:$0xff]  }
  0xd0   :  { %5129 = vmatpush1.bf16.msra.mxu0 %v7056_v45  ;;  %4386 = vmatprep.subr.bf16.mxu1 %v7061_v28  ;;  %v7080_v45 = vld [vmem:[%s9785_s1 + $0xb70] ss:$8 sps:$4 sm:$0xff]   ;;  %v7085_v28 = vld [vmem:[%s9785_s1 + $0x384] ss:$8 sps:$4 sm:$0xff]  }
  0xd1   :  { %5130 = vmatprep.subr.bf16.mxu0 %v7064_v51  ;;  %v7088_v51 = vld [vmem:[%s9785_s1 + $0xb84] ss:$8 sps:$4 sm:$0xff]  }
  0xd2   :  { %4338 = vmatmul.mubr.bf16.gmra.mrb[8].mxu1 %v113_v26  ;;  %v549_v26 = vor.u32 %v548_v19, %v547_v18  ;;  %v165_v18 = vrot.slane %v7750_v3, 4  ;;  %v7089_v19 = vld [vmem:[%s9785_s1 + $0x390] ss:$8 sps:$4 sm:$0xff]  }
  0xd3   :  { %5082 = vmatmul.mubr.bf16.gmra.mrb[8].mxu0 %v348_v6  ;;  %4387 = vmatpush1.bf16.msra.mxu1 %v7059_v0  ;;  %v529_v0 = vsel %vm106_vm4, %v526_v21, %v528_v48  ;;  %v7094_v6 = vld [vmem:[%s9785_s1 + $0xb94] ss:$8 sps:$4 sm:$0xff]   ;;  %v7097_v21 = vld [vmem:[%s9785_s1 + $0x3a4] ss:$8 sps:$4 sm:$0xff]  }
  0xd4   :  { %5131 = vmatpush1.bf16.msra.mxu0 %v7062_v2  ;;  %4388 = vmatprep.subr.bf16.mxu1 %v7067_v7  ;;  %v550_v43 = vsel %vm120_vm3, %v545_v62, %v549_v26  ;;  %v7086_v62 = vld [vmem:[%s9785_s1 + $0xb80] ss:$8 sps:$4 sm:$0xff]   ;;  %v7091_v2 = vld [vmem:[%s9785_s1 + $0x394] ss:$8 sps:$4 sm:$0xff]   ;;  %v761_v7 = vsel %vm120_vm3, %v549_v26, %v760_v52 }
  0xd5   :  { %5132 = vmatprep.subr.bf16.mxu0 %v7070_v8  ;;  %4347 = vmatprep.mubr.bf16.mxu1 %v542_v16  ;;  %v157_v8 = vrot.slane %v7728_v58, 3  ;;  %v161_v16 = vrot.slane %v7734_v60, 4  ;;  %v7115_v52 = vld [vmem:[%s9785_s1 + $0x3d4] ss:$8 sps:$4 sm:$0xff]  }
  0xd6   :  { %5091 = vmatprep.mubr.bf16.mxu0 %v546_v17 }
  0xd7   :  { %4389 = vmatpush1.bf16.msra.mxu1 %v7065_v20  ;;  %v7092_v20 = vld [vmem:[%s9785_s1 + $0xb90] ss:$8 sps:$4 sm:$0xff]   ;;  %v162_v26 = vor.u32 %v161_v16, %v160_v15  ;;  %v7130_v15 = vld [vmem:[%s9785_s1 + $0xbf4] ss:$8 sps:$4 sm:$0xff]   ;;  %v143_v16 = vrot.slane %v7714_v53, 3 }
  0xd8   :  { %5133 = vmatpush1.bf16.msra.mxu0 %v7068_v39  ;;  %4390 = vmatprep.subr.bf16.mxu1 %v7073_v24  ;;  %v752_v39 = vrot.slane %v7991_v47, 2  ;;  %v7100_v24 = vld [vmem:[%s9785_s1 + $0xba4] ss:$8 sps:$4 sm:$0xff]  }
  0xd9   :  { %5134 = vmatprep.subr.bf16.mxu0 %v7076_v25  ;;  %v159_v25 = vor.u32 %v158_v13, %v157_v8  ;;  %v7122_v8 = vld [vmem:[%s9785_s1 + $0xbe0] ss:$8 sps:$4 sm:$0xff]   ;;  %v7127_v13 = vld [vmem:[%s9785_s1 + $0x3f4] ss:$8 sps:$4 sm:$0xff]  }
  0xda   :  { %4348 = vmatmul.mubr.bf16.gmra.mrb[12].mxu1 %v525_v33  ;;  %v7098_v33 = vld [vmem:[%s9785_s1 + $0xba0] ss:$8 sps:$4 sm:$0xff]  }
  0xdb   :  { %5092 = vmatmul.mubr.bf16.gmra.mrb[12].mxu0 %v527_v34  ;;  %4391 = vmatpush1.bf16.msra.mxu1 %v7071_v12  ;;  %v163_v40 = vsel %vm156_vm5, %v159_v25, %v162_v26  ;;  %v7136_v25 = vld [vmem:[%s9785_s1 + $0xc04] ss:$8 sps:$4 sm:$0xff]  }
  0xdc   :  { %5135 = vmatpush1.bf16.msra.mxu0 %v7074_v29  ;;  %4392 = vmatprep.subr.bf16.mxu1 %v7079_v37  ;;  %v7095_v29 = vld [vmem:[%s9785_s1 + $0x3a0] ss:$8 sps:$4 sm:$0xff]   ;;  %v7103_v37 = vld [vmem:[%s9785_s1 + $0x3b4] ss:$8 sps:$4 sm:$0xff]  }
  0xdd   :  { %5136 = vmatprep.subr.bf16.mxu0 %v7082_v38  ;;  %4357 = vmatprep.mubr.bf16.mxu1 %v546_v17  ;;  %v164_v17 = vrot.slane %v7800_v23, 3  ;;  %v7106_v38 = vld [vmem:[%s9785_s1 + $0xbb4] ss:$8 sps:$4 sm:$0xff]  }
  0xde   :  { %5101 = vmatprep.mubr.bf16.mxu0 %v550_v43 }
  0xdf   :  { %4393 = vmatpush1.bf16.msra.mxu1 %v7077_v44  ;;  %v8548_v12 = vor.u32 %v165_v18, %v164_v17  ;;  %v7104_v44 = vld [vmem:[%s9785_s1 + $0xbb0] ss:$8 sps:$4 sm:$0xff]   ;;  %v144_v17 = vrot.slane %v7716_v54, 3  ;;  %v168_v18 = vrot.slane %v7836_v36, 3 }
  0xe0   :  { %5137 = vmatpush1.bf16.msra.mxu0 %v7080_v45  ;;  %4394 = vmatprep.subr.bf16.mxu1 %v7085_v28  ;;  %v7109_v45 = vld [vmem:[%s9785_s1 + $0x3c4] ss:$8 sps:$4 sm:$0xff]   ;;  %v7107_v28 = vld [vmem:[%s9785_s1 + $0x3c0] ss:$8 sps:$4 sm:$0xff]  }
  0xe1   :  { %5138 = vmatprep.subr.bf16.mxu0 %v7088_v51  ;;  %v8566_v41 = vsel %vm156_vm5, %v162_v26, %v8548_v12  ;;  %v7110_v51 = vld [vmem:[%s9785_s1 + $0xbc0] ss:$8 sps:$4 sm:$0xff]  }
  0xe2   :  { %4358 = vmatmul.mubr.bf16.gmra.mrb[16].mxu1 %v527_v34  ;;  %v753_v34 = vsel %vm106_vm4, %v528_v48, %v752_v39  ;;  %v7112_v48 = vld [vmem:[%s9785_s1 + $0xbc4] ss:$8 sps:$4 sm:$0xff]   ;;  %v7128_v39 = vld [vmem:[%s9785_s1 + $0xbf0] ss:$8 sps:$4 sm:$0xff]  }
  0xe3   :  { %5102 = vmatmul.mubr.bf16.gmra.mrb[16].mxu0 %v529_v0  ;;  %4395 = vmatpush1.bf16.msra.mxu1 %v7083_v55  ;;  %v7118_v55 = vld [vmem:[%s9785_s1 + $0xbd4] ss:$8 sps:$4 sm:$0xff]  }
  0xe4   :  { %5139 = vmatpush1.bf16.msra.mxu0 %v7086_v62  ;;  %4396 = vmatprep.subr.bf16.mxu1 %v7091_v2  ;;  %v7113_v62 = vld [vmem:[%s9785_s1 + $0x3d0] ss:$8 sps:$4 sm:$0xff]   ;;  %v7121_v2 = vld [vmem:[%s9785_s1 + $0x3e4] ss:$8 sps:$4 sm:$0xff]  }
  0xe5   :  { %5140 = vmatprep.subr.bf16.mxu0 %v7094_v6  ;;  %4367 = vmatprep.mubr.bf16.mxu1 %v550_v43  ;;  %v7101_v43 = vld [vmem:[%s9785_s1 + $0x3b0] ss:$8 sps:$4 sm:$0xff]   ;;  %v7124_v6 = vld [vmem:[%s9785_s1 + $0xbe4] ss:$8 sps:$4 sm:$0xff]  }
  0xe6   :  { %5111 = vmatprep.mubr.bf16.mxu0 %v761_v7  ;;  %v7119_v7 = vld [vmem:[%s9785_s1 + $0x3e0] ss:$8 sps:$4 sm:$0xff]  }
  0xe7   :  { %4397 = vmatpush1.bf16.msra.mxu1 %v7089_v19  ;;  %v169_v19 = vrot.slane %v7824_v32, 4 }
  0xe8   :  { %5141 = vmatpush1.bf16.msra.mxu0 %v7092_v20  ;;  %4398 = vmatprep.subr.bf16.mxu1 %v7097_v21  ;;  %v7125_v20 = vld [vmem:[%s9785_s1 + $0x3f0] ss:$8 sps:$4 sm:$0xff]   ;;  %v146_v21 = vrot.slane %v7736_v61, 3 }
  0xe9   :  { %5142 = vmatprep.subr.bf16.mxu0 %v7100_v24  ;;  %v7133_v24 = vld [vmem:[%s9785_s1 + $0x404] ss:$8 sps:$4 sm:$0xff]   ;;  %v170_v26 = vor.u32 %v169_v19, %v168_v18  ;;  %v578_v18 = vrot.slane %v7924_v14, 4  ;;  %v7149_v19 = vld [vmem:[%s9785_s1 + $0x430] ss:$8 sps:$4 sm:$0xff]  }
  0xea   :  { %4368 = vmatmul.mubr.bf16.gmra.mrb[20].mxu1 %v529_v0  ;;  %v7116_v0 = vld [vmem:[%s9785_s1 + $0xbd0] ss:$8 sps:$4 sm:$0xff]  }
  0xeb   :  { %5112 = vmatmul.mubr.bf16.gmra.mrb[20].mxu0 %v753_v34  ;;  %4399 = vmatpush1.bf16.msra.mxu1 %v7095_v29  ;;  %v7131_v29 = vld [vmem:[%s9785_s1 + $0x400] ss:$8 sps:$4 sm:$0xff]   ;;  %v145_v34 = vsel %vm142_vm6, %v143_v16, %v144_v17  ;;  %v574_v16 = vrot.slane %v7914_v9, 4 }
  0xec   :  { %5143 = vmatpush1.bf16.msra.mxu0 %v7098_v33  ;;  %4400 = vmatprep.subr.bf16.mxu1 %v7103_v37  ;;  %v7134_v33 = vld [vmem:[%s9785_s1 + $0xc00] ss:$8 sps:$4 sm:$0xff]   ;;  %v147_v37 = vsel %vm142_vm6, %v144_v17, %v146_v21  ;;  %v577_v17 = vrot.slane %v7960_v31, 3 }
  0xed   :  { %5144 = vmatprep.subr.bf16.mxu0 %v7106_v38  ;;  %4410 = vmatprep.mubr.bf16.mxu1 %v163_v40  ;;  %v7139_v38 = vld [vmem:[%s9785_s1 + $0x414] ss:$8 sps:$4 sm:$0xff]  }
  0xee   :  { %5154 = vmatprep.mubr.bf16.mxu0 %v8566_v41  ;;  %v7142_v40 = vld [vmem:[%s9785_s1 + $0xc14] ss:$8 sps:$4 sm:$0xff]  }
  0xef   :  { %4401 = vmatpush1.bf16.msra.mxu1 %v7101_v43  ;;  %v367_v43 = vrot.slane %v8137_v22, 3 }
  0xf0   :  { %5145 = vmatpush1.bf16.msra.mxu0 %v7104_v44  ;;  %4402 = vmatprep.subr.bf16.mxu1 %v7109_v45  ;;  %v368_v44 = vrot.slane %v7861_v46, 4  ;;  %v171_v45 = vsel %vm156_vm5, %v8548_v12, %v170_v26  ;;  %v7148_v12 = vld [vmem:[%s9785_s1 + $0xc24] ss:$8 sps:$4 sm:$0xff]  }
  0xf1   :  { %5146 = vmatprep.subr.bf16.mxu0 %v7112_v48  ;;  %v7137_v48 = vld [vmem:[%s9785_s1 + $0x410] ss:$8 sps:$4 sm:$0xff]  }
  0xf3   :  { %4403 = vmatpush1.bf16.msra.mxu1 %v7107_v28  ;;  %v7140_v28 = vld [vmem:[%s9785_s1 + $0xc10] ss:$8 sps:$4 sm:$0xff]  }
  0xf4   :  { %5147 = vmatpush1.bf16.msra.mxu0 %v7110_v51  ;;  %4404 = vmatprep.subr.bf16.mxu1 %v7115_v52  ;;  %v148_v51 = vrot.slane %v7811_v27, 3  ;;  %v7145_v52 = vld [vmem:[%s9785_s1 + $0x424] ss:$8 sps:$4 sm:$0xff]  }
  0xf5   :  { %5148 = vmatprep.subr.bf16.mxu0 %v7118_v55  ;;  %v369_v55 = vor.u32 %v368_v44, %v367_v43  ;;  %v557_v43 = vrot.slane %v7882_v56, 3  ;;  %v558_v44 = vrot.slane %v7893_v1, 3 }
  0xf7   :  { %4405 = vmatpush1.bf16.msra.mxu1 %v7113_v62  ;;  %v7143_v62 = vld [vmem:[%s9785_s1 + $0x420] ss:$8 sps:$4 sm:$0xff]  }
  0xf8   :  { %5149 = vmatpush1.bf16.msra.mxu0 %v7116_v0  ;;  %4406 = vmatprep.subr.bf16.mxu1 %v7121_v2  ;;  %v7146_v0 = vld [vmem:[%s9785_s1 + $0xc20] ss:$8 sps:$4 sm:$0xff]   ;;  %v149_v2 = vsel %vm142_vm6, %v146_v21, %v148_v51  ;;  %v7157_v21 = vld [vmem:[%s9785_s1 + $0x444] ss:$8 sps:$4 sm:$0xff]  }
  0xf9   :  { %5150 = vmatprep.subr.bf16.mxu0 %v7124_v6  ;;  %v7154_v6 = vld [vmem:[%s9785_s1 + $0xc34] ss:$8 sps:$4 sm:$0xff]  }
  0xfb   :  { %4407 = vmatpush1.bf16.msra.mxu1 %v7119_v7  ;;  %v370_v7 = vsel %vm156_vm5, %v170_v26, %v369_v55  ;;  %v560_v55 = vrot.slane %v7916_v10, 3 }
  0xfc   :  { %5151 = vmatpush1.bf16.msra.mxu0 %v7122_v8  ;;  %4408 = vmatprep.subr.bf16.mxu1 %v7127_v13  ;;  %v570_v8 = vrot.slane %v7899_v4, 3  ;;  %v571_v13 = vrot.slane %v7902_v5, 4 }
  0xfd   :  { %5152 = vmatprep.subr.bf16.mxu0 %v7130_v15  ;;  %v573_v15 = vrot.slane %v7919_v11, 3 }
  0xff   :  { %4409 = vmatpush1.bf16.msra.mxu1 %v7125_v20  ;;  %v7152_v20 = vld [vmem:[%s9785_s1 + $0xc30] ss:$8 sps:$4 sm:$0xff]   ;;  %v575_v26 = vor.u32 %v574_v16, %v573_v15  ;;  %v7178_v15 = vld [vmem:[%s9785_s1 + $0xc74] ss:$8 sps:$4 sm:$0xff]  }
 0x100   :  { %5153 = vmatpush1.bf16.msra.mxu0 %v7128_v39  ;;  %4471 = vmatprep.subr.bf16.mxu1 %v7133_v24  ;;  %v361_v39 = vrot.slane %v7851_v42, 3  ;;  %v7160_v24 = vld [vmem:[%s9785_s1 + $0xc44] ss:$8 sps:$4 sm:$0xff]  }
 0x101   :  { %5215 = vmatprep.subr.bf16.mxu0 %v7136_v25  ;;  %v572_v25 = vor.u32 %v571_v13, %v570_v8  ;;  %v561_v8 = vsel %vm142_vm6, %v558_v44, %v560_v55  ;;  %v7175_v13 = vld [vmem:[%s9785_s1 + $0x474] ss:$8 sps:$4 sm:$0xff]  }
 0x102   :  { %4411 = vmatmul.mubr.bf16.vlgmr.msra.gmra.mrb[0].mxu1 %v145_v34  ;;  %v7158_v34 = vld [vmem:[%s9785_s1 + $0xc40] ss:$8 sps:$4 sm:$0xff]  }
 0x103   :  { %5155 = vmatmul.mubr.bf16.vlgmr.msra.gmra.mrb[0].mxu0 %v147_v37  ;;  %4472 = vmatpush1.bf16.msra.mxu1 %v7131_v29  ;;  %v579_v29 = vor.u32 %v578_v18, %v577_v17  ;;  %v772_v17 = vrot.slane %v8237_v57, 3  ;;  %v773_v18 = vrot.slane %v8000_v50, 4 }
 0x104   :  { %5216 = vmatpush1.bf16.msra.mxu0 %v7134_v33  ;;  %4473 = vmatprep.subr.bf16.mxu1 %v7139_v38  ;;  %v7155_v33 = vld [vmem:[%s9785_s1 + $0x440] ss:$8 sps:$4 sm:$0xff]   ;;  %v7163_v38 = vld [vmem:[%s9785_s1 + $0x454] ss:$8 sps:$4 sm:$0xff]  }
 0x105   :  { %5217 = vmatprep.subr.bf16.mxu0 %v7142_v40  ;;  %4420 = vmatprep.mubr.bf16.mxu1 %v8566_v41  ;;  %v7151_v41 = vld [vmem:[%s9785_s1 + $0x434] ss:$8 sps:$4 sm:$0xff]  }
 0x106   :  { %5164 = vmatprep.mubr.bf16.mxu0 %v171_v45  ;;  %v7166_v40 = vld [vmem:[%s9785_s1 + $0xc54] ss:$8 sps:$4 sm:$0xff]  }
 0x107   :  { %4474 = vmatpush1.bf16.msra.mxu1 %v7137_v48  ;;  %v580_v48 = vsel %vm156_vm5, %v575_v26, %v579_v29 }
 0x108   :  { %5218 = vmatpush1.bf16.msra.mxu0 %v7140_v28  ;;  %4475 = vmatprep.subr.bf16.mxu1 %v7145_v52  ;;  %v581_v28 = vrot.slane %v7997_v49, 3  ;;  %v7161_v52 = vld [vmem:[%s9785_s1 + $0x450] ss:$8 sps:$4 sm:$0xff]  }
 0x109   :  { %5219 = vmatprep.subr.bf16.mxu0 %v7148_v12  ;;  %v7164_v12 = vld [vmem:[%s9785_s1 + $0xc50] ss:$8 sps:$4 sm:$0xff]  }
 0x10a   :  { %4421 = vmatmul.mubr.bf16.gmra.mrb[4].mxu1 %v147_v37  ;;  %v362_v37 = vsel %vm142_vm6, %v148_v51, %v361_v39  ;;  %v582_v51 = vrot.slane %v7969_v35, 4  ;;  %v562_v39 = vrot.slane %v7957_v30, 3 }
 0x10b   :  { %5165 = vmatmul.mubr.bf16.gmra.mrb[4].mxu0 %v149_v2  ;;  %4476 = vmatpush1.bf16.msra.mxu1 %v7143_v62  ;;  %v7169_v62 = vld [vmem:[%s9785_s1 + $0x464] ss:$8 sps:$4 sm:$0xff]  }
 0x10c   :  { %5220 = vmatpush1.bf16.msra.mxu0 %v7146_v0  ;;  %4477 = vmatprep.subr.bf16.mxu1 %v7151_v41  ;;  %v7172_v0 = vld [vmem:[%s9785_s1 + $0xc64] ss:$8 sps:$4 sm:$0xff]   ;;  %v7167_v41 = vld [vmem:[%s9785_s1 + $0x460] ss:$8 sps:$4 sm:$0xff]  }
 0x10d   :  { %5221 = vmatprep.subr.bf16.mxu0 %v7154_v6  ;;  %4430 = vmatprep.mubr.bf16.mxu1 %v171_v45  ;;  %v576_v45 = vsel %vm156_vm5, %v572_v25, %v575_v26  ;;  %v7170_v6 = vld [vmem:[%s9785_s1 + $0xc60] ss:$8 sps:$4 sm:$0xff]   ;;  %v774_v25 = vor.u32 %v773_v18, %v772_v17  ;;  %v7197_v18 = vld [vmem:[%s9785_s1 + $0x4b0] ss:$8 sps:$4 sm:$0xff]  }
 0x10e   :  { %5174 = vmatprep.mubr.bf16.mxu0 %v370_v7  ;;  %v559_v7 = vsel %vm142_vm6, %v557_v43, %v558_v44  ;;  %v7179_v26 = vld [vmem:[%s9785_s1 + $0x480] ss:$8 sps:$4 sm:$0xff]   ;;  %v196_v43 = vrot.slane %v7742_v63, 4 }
 0x10f   :  { %4478 = vmatpush1.bf16.msra.mxu1 %v7149_v19  ;;  %v7173_v19 = vld [vmem:[%s9785_s1 + $0x470] ss:$8 sps:$4 sm:$0xff]  }
 0x110   :  { %5222 = vmatpush1.bf16.msra.mxu0 %v7152_v20  ;;  %4479 = vmatprep.subr.bf16.mxu1 %v7157_v21  ;;  %v7176_v20 = vld [vmem:[%s9785_s1 + $0xc70] ss:$8 sps:$4 sm:$0xff]   ;;  %v7181_v21 = vld [vmem:[%s9785_s1 + $0x484] ss:$8 sps:$4 sm:$0xff]  }
 0x111   :  { %5223 = vmatprep.subr.bf16.mxu0 %v7160_v24  ;;  %v7184_v24 = vld [vmem:[%s9785_s1 + $0xc84] ss:$8 sps:$4 sm:$0xff]  }
 0x112   :  { %4431 = vmatmul.mubr.bf16.gmra.mrb[8].mxu1 %v149_v2  ;;  %v583_v2 = vor.u32 %v582_v51, %v581_v28  ;;  %v201_v28 = vrot.slane %v7750_v3, 5  ;;  %v7185_v51 = vld [vmem:[%s9785_s1 + $0x490] ss:$8 sps:$4 sm:$0xff]  }
 0x113   :  { %5175 = vmatmul.mubr.bf16.gmra.mrb[8].mxu0 %v362_v37  ;;  %4480 = vmatpush1.bf16.msra.mxu1 %v7155_v33  ;;  %v563_v33 = vsel %vm142_vm6, %v560_v55, %v562_v39  ;;  %v7190_v37 = vld [vmem:[%s9785_s1 + $0xc94] ss:$8 sps:$4 sm:$0xff]   ;;  %v7193_v55 = vld [vmem:[%s9785_s1 + $0x4a4] ss:$8 sps:$4 sm:$0xff]  }
 0x114   :  { %5224 = vmatpush1.bf16.msra.mxu0 %v7158_v34  ;;  %4481 = vmatprep.subr.bf16.mxu1 %v7163_v38  ;;  %v584_v16 = vsel %vm156_vm5, %v579_v29, %v583_v2  ;;  %v7182_v29 = vld [vmem:[%s9785_s1 + $0xc80] ss:$8 sps:$4 sm:$0xff]   ;;  %v7187_v34 = vld [vmem:[%s9785_s1 + $0x494] ss:$8 sps:$4 sm:$0xff]   ;;  %v193_v38 = vrot.slane %v7728_v58, 4  ;;  %v775_v44 = vsel %vm156_vm5, %v583_v2, %v774_v25 }
 0x115   :  { %5225 = vmatprep.subr.bf16.mxu0 %v7166_v40  ;;  %4440 = vmatprep.mubr.bf16.mxu1 %v576_v45  ;;  %v194_v40 = vrot.slane %v7731_v59, 5  ;;  %v197_v45 = vrot.slane %v7734_v60, 5  ;;  %v7211_v25 = vld [vmem:[%s9785_s1 + $0x4d4] ss:$8 sps:$4 sm:$0xff]  }
 0x116   :  { %5184 = vmatprep.mubr.bf16.mxu0 %v580_v48 }
 0x117   :  { %4482 = vmatpush1.bf16.msra.mxu1 %v7161_v52  ;;  %v7188_v52 = vld [vmem:[%s9785_s1 + $0xc90] ss:$8 sps:$4 sm:$0xff]   ;;  %v198_v2 = vor.u32 %v197_v45, %v196_v43  ;;  %v7223_v43 = vld [vmem:[%s9785_s1 + $0x4f4] ss:$8 sps:$4 sm:$0xff]   ;;  %v179_v45 = vrot.slane %v7714_v53, 4 }
 0x118   :  { %5226 = vmatpush1.bf16.msra.mxu0 %v7164_v12  ;;  %4483 = vmatprep.subr.bf16.mxu1 %v7169_v62  ;;  %v766_v12 = vrot.slane %v7991_v47, 3  ;;  %v7196_v62 = vld [vmem:[%s9785_s1 + $0xca4] ss:$8 sps:$4 sm:$0xff]  }
 0x119   :  { %5227 = vmatprep.subr.bf16.mxu0 %v7172_v0  ;;  %v195_v0 = vor.u32 %v194_v40, %v193_v38  ;;  %v7215_v38 = vld [vmem:[%s9785_s1 + $0x4e0] ss:$8 sps:$4 sm:$0xff]  }
 0x11a   :  { %4441 = vmatmul.mubr.bf16.gmra.mrb[12].mxu1 %v559_v7  ;;  %v7194_v7 = vld [vmem:[%s9785_s1 + $0xca0] ss:$8 sps:$4 sm:$0xff]  }
 0x11b   :  { %5185 = vmatmul.mubr.bf16.gmra.mrb[12].mxu0 %v561_v8  ;;  %4484 = vmatpush1.bf16.msra.mxu1 %v7167_v41  ;;  %v7218_v40 = vld [vmem:[%s9785_s1 + $0xce0] ss:$8 sps:$4 sm:$0xff]  }
 0x11c   :  { %5228 = vmatpush1.bf16.msra.mxu0 %v7170_v6  ;;  %4485 = vmatprep.subr.bf16.mxu1 %v7175_v13  ;;  %v7191_v6 = vld [vmem:[%s9785_s1 + $0x4a0] ss:$8 sps:$4 sm:$0xff]   ;;  %v7199_v13 = vld [vmem:[%s9785_s1 + $0x4b4] ss:$8 sps:$4 sm:$0xff]  }
 0x11d   :  { %5229 = vmatprep.subr.bf16.mxu0 %v7178_v15  ;;  %4450 = vmatprep.mubr.bf16.mxu1 %v580_v48  ;;  %v200_v48 = vrot.slane %v7800_v23, 4  ;;  %v7202_v15 = vld [vmem:[%s9785_s1 + $0xcb4] ss:$8 sps:$4 sm:$0xff]  }
 0x11e   :  { %5194 = vmatprep.mubr.bf16.mxu0 %v584_v16 }
 0x11f   :  { %4486 = vmatpush1.bf16.msra.mxu1 %v7173_v19  ;;  %v8794_v41 = vor.u32 %v201_v28, %v200_v48  ;;  %v7200_v19 = vld [vmem:[%s9785_s1 + $0xcb0] ss:$8 sps:$4 sm:$0xff]   ;;  %v180_v48 = vrot.slane %v7716_v54, 4  ;;  %v204_v28 = vrot.slane %v7836_v36, 4 }
 0x120   :  { %5230 = vmatpush1.bf16.msra.mxu0 %v7176_v20  ;;  %4487 = vmatprep.subr.bf16.mxu1 %v7181_v21  ;;  %v7205_v20 = vld [vmem:[%s9785_s1 + $0x4c4] ss:$8 sps:$4 sm:$0xff]   ;;  %v7203_v21 = vld [vmem:[%s9785_s1 + $0x4c0] ss:$8 sps:$4 sm:$0xff]  }
 0x121   :  { %5231 = vmatprep.subr.bf16.mxu0 %v7184_v24  ;;  %v8812_v17 = vsel %vm192_vm7, %v198_v2, %v8794_v41  ;;  %v7206_v24 = vld [vmem:[%s9785_s1 + $0xcc0] ss:$8 sps:$4 sm:$0xff]  }
 0x122   :  { %4451 = vmatmul.mubr.bf16.gmra.mrb[16].mxu1 %v561_v8  ;;  %v767_v8 = vsel %vm142_vm6, %v562_v39, %v766_v12  ;;  %v7208_v39 = vld [vmem:[%s9785_s1 + $0xcc4] ss:$8 sps:$4 sm:$0xff]   ;;  %v7224_v12 = vld [vmem:[%s9785_s1 + $0xcf0] ss:$8 sps:$4 sm:$0xff]  }
 0x123   :  { %5195 = vmatmul.mubr.bf16.gmra.mrb[16].mxu0 %v563_v33  ;;  %4488 = vmatpush1.bf16.msra.mxu1 %v7179_v26  ;;  %v7214_v26 = vld [vmem:[%s9785_s1 + $0xcd4] ss:$8 sps:$4 sm:$0xff]  }
 0x124   :  { %5232 = vmatpush1.bf16.msra.mxu0 %v7182_v29  ;;  %4489 = vmatprep.subr.bf16.mxu1 %v7187_v34  ;;  %v7209_v29 = vld [vmem:[%s9785_s1 + $0x4d0] ss:$8 sps:$4 sm:$0xff]   ;;  %v7217_v34 = vld [vmem:[%s9785_s1 + $0x4e4] ss:$8 sps:$4 sm:$0xff]  }
 0x125   :  { %5233 = vmatprep.subr.bf16.mxu0 %v7190_v37  ;;  %4460 = vmatprep.mubr.bf16.mxu1 %v584_v16  ;;  %v199_v16 = vsel %vm192_vm7, %v195_v0, %v198_v2  ;;  %v7220_v37 = vld [vmem:[%s9785_s1 + $0xce4] ss:$8 sps:$4 sm:$0xff]  }
 0x126   :  { %5204 = vmatprep.mubr.bf16.mxu0 %v775_v44  ;;  %v7226_v44 = vld [vmem:[%s9785_s1 + $0xcf4] ss:$8 sps:$4 sm:$0xff]   ;;  %v7232_v0 = vld [vmem:[%s9785_s1 + $0xd04] ss:$8 sps:$4 sm:$0xff]  }
 0x127   :  { %4490 = vmatpush1.bf16.msra.mxu1 %v7185_v51  ;;  %v205_v51 = vrot.slane %v7824_v32, 5 }
 0x128   :  { %5234 = vmatpush1.bf16.msra.mxu0 %v7188_v52  ;;  %4491 = vmatprep.subr.bf16.mxu1 %v7193_v55  ;;  %v7221_v52 = vld [vmem:[%s9785_s1 + $0x4f0] ss:$8 sps:$4 sm:$0xff]   ;;  %v182_v55 = vrot.slane %v7736_v61, 4 }
 0x129   :  { %5235 = vmatprep.subr.bf16.mxu0 %v7196_v62  ;;  %v7229_v62 = vld [vmem:[%s9785_s1 + $0x504] ss:$8 sps:$4 sm:$0xff]   ;;  %v206_v2 = vor.u32 %v205_v51, %v204_v28  ;;  %v612_v28 = vrot.slane %v7924_v14, 5  ;;  %v7245_v51 = vld [vmem:[%s9785_s1 + $0x530] ss:$8 sps:$4 sm:$0xff]  }
 0x12a   :  { %4461 = vmatmul.mubr.bf16.gmra.mrb[20].mxu1 %v563_v33  ;;  %v7212_v33 = vld [vmem:[%s9785_s1 + $0xcd0] ss:$8 sps:$4 sm:$0xff]  }
 0x12b   :  { %5205 = vmatmul.mubr.bf16.gmra.mrb[20].mxu0 %v767_v8  ;;  %4492 = vmatpush1.bf16.msra.mxu1 %v7191_v6  ;;  %v7227_v6 = vld [vmem:[%s9785_s1 + $0x500] ss:$8 sps:$4 sm:$0xff]   ;;  %v181_v8 = vsel %vm178_vm8, %v179_v45, %v180_v48  ;;  %v608_v45 = vrot.slane %v7914_v9, 5 }
 0x12c   :  { %5236 = vmatpush1.bf16.msra.mxu0 %v7194_v7  ;;  %4493 = vmatprep.subr.bf16.mxu1 %v7199_v13  ;;  %v7230_v7 = vld [vmem:[%s9785_s1 + $0xd00] ss:$8 sps:$4 sm:$0xff]   ;;  %v183_v13 = vsel %vm178_vm8, %v180_v48, %v182_v55  ;;  %v611_v48 = vrot.slane %v7960_v31, 4 }
 0x12d   :  { %5237 = vmatprep.subr.bf16.mxu0 %v7202_v15  ;;  %4503 = vmatprep.mubr.bf16.mxu1 %v199_v16  ;;  %v7235_v15 = vld [vmem:[%s9785_s1 + $0x514] ss:$8 sps:$4 sm:$0xff]  }
 0x12e   :  { %5247 = vmatprep.mubr.bf16.mxu0 %v8812_v17  ;;  %v7238_v16 = vld [vmem:[%s9785_s1 + $0xd14] ss:$8 sps:$4 sm:$0xff]  }
 0x12f   :  { %4494 = vmatpush1.bf16.msra.mxu1 %v7197_v18  ;;  %v207_v18 = vsel %vm192_vm7, %v8794_v41, %v206_v2  ;;  %v7241_v41 = vld [vmem:[%s9785_s1 + $0x524] ss:$8 sps:$4 sm:$0xff]  }
 0x130   :  { %5238 = vmatpush1.bf16.msra.mxu0 %v7200_v19  ;;  %4495 = vmatprep.subr.bf16.mxu1 %v7205_v20  ;;  %v381_v19 = vrot.slane %v8137_v22, 4  ;;  %v382_v20 = vrot.slane %v7861_v46, 5 }
 0x131   :  { %5239 = vmatprep.subr.bf16.mxu0 %v7208_v39  ;;  %v7233_v39 = vld [vmem:[%s9785_s1 + $0x510] ss:$8 sps:$4 sm:$0xff]  }
 0x133   :  { %4496 = vmatpush1.bf16.msra.mxu1 %v7203_v21  ;;  %v7236_v21 = vld [vmem:[%s9785_s1 + $0xd10] ss:$8 sps:$4 sm:$0xff]  }
 0x134   :  { %5240 = vmatpush1.bf16.msra.mxu0 %v7206_v24  ;;  %4497 = vmatprep.subr.bf16.mxu1 %v7211_v25  ;;  %v184_v24 = vrot.slane %v7811_v27, 4  ;;  %v7244_v25 = vld [vmem:[%s9785_s1 + $0xd24] ss:$8 sps:$4 sm:$0xff]  }
 0x135   :  { %5241 = vmatprep.subr.bf16.mxu0 %v7214_v26  ;;  %v383_v26 = vor.u32 %v382_v20, %v381_v19 }
 0x137   :  { %4498 = vmatpush1.bf16.msra.mxu1 %v7209_v29  ;;  %v7239_v29 = vld [vmem:[%s9785_s1 + $0x520] ss:$8 sps:$4 sm:$0xff]  }
 0x138   :  { %5242 = vmatpush1.bf16.msra.mxu0 %v7212_v33  ;;  %4499 = vmatprep.subr.bf16.mxu1 %v7217_v34  ;;  %v7242_v33 = vld [vmem:[%s9785_s1 + $0xd20] ss:$8 sps:$4 sm:$0xff]   ;;  %v185_v34 = vsel %vm178_vm8, %v182_v55, %v184_v24  ;;  %v7253_v55 = vld [vmem:[%s9785_s1 + $0x544] ss:$8 sps:$4 sm:$0xff]  }
 0x139   :  { %5243 = vmatprep.subr.bf16.mxu0 %v7220_v37  ;;  %v7250_v37 = vld [vmem:[%s9785_s1 + $0xd34] ss:$8 sps:$4 sm:$0xff]  }
 0x13b   :  { %4500 = vmatpush1.bf16.msra.mxu1 %v7215_v38  ;;  %v604_v38 = vrot.slane %v7899_v4, 4 }
 0x13c   :  { %5244 = vmatpush1.bf16.msra.mxu0 %v7218_v40  ;;  %4501 = vmatprep.subr.bf16.mxu1 %v7223_v43  ;;  %v605_v40 = vrot.slane %v7902_v5, 5  ;;  %v607_v43 = vrot.slane %v7919_v11, 4 }
 0x13d   :  { %5245 = vmatprep.subr.bf16.mxu0 %v7226_v44  ;;  %v384_v44 = vsel %vm192_vm7, %v206_v2, %v383_v26  ;;  %v594_v26 = vrot.slane %v7916_v10, 4 }
 0x13e   :  { %v609_v2 = vor.u32 %v608_v45, %v607_v43  ;;  %v7271_v43 = vld [vmem:[%s9785_s1 + $0x574] ss:$8 sps:$4 sm:$0xff]   ;;  %v786_v45 = vrot.slane %v8237_v57, 4 }
 0x13f   :  { %4502 = vmatpush1.bf16.msra.mxu1 %v7221_v52  ;;  %v7248_v52 = vld [vmem:[%s9785_s1 + $0xd30] ss:$8 sps:$4 sm:$0xff]  }
 0x140   :  { %5246 = vmatpush1.bf16.msra.mxu0 %v7224_v12  ;;  %4564 = vmatprep.subr.bf16.mxu1 %v7229_v62  ;;  %v375_v12 = vrot.slane %v7851_v42, 4  ;;  %v7256_v62 = vld [vmem:[%s9785_s1 + $0xd44] ss:$8 sps:$4 sm:$0xff]  }
 0x141   :  { %5308 = vmatprep.subr.bf16.mxu0 %v7232_v0  ;;  %v606_v0 = vor.u32 %v605_v40, %v604_v38 }
 0x142   :  { %4504 = vmatmul.mubr.bf16.vlgmr.msra.gmra.mrb[0].mxu1 %v181_v8  ;;  %v7254_v8 = vld [vmem:[%s9785_s1 + $0xd40] ss:$8 sps:$4 sm:$0xff]  }
 0x143   :  { %5248 = vmatmul.mubr.bf16.vlgmr.msra.gmra.mrb[0].mxu0 %v183_v13  ;;  %4565 = vmatpush1.bf16.msra.mxu1 %v7227_v6  ;;  %v613_v6 = vor.u32 %v612_v28, %v611_v48  ;;  %v610_v19 = vsel %vm192_vm7, %v606_v0, %v609_v2  ;;  %v787_v48 = vrot.slane %v8000_v50, 5 }
 0x144   :  { %5309 = vmatpush1.bf16.msra.mxu0 %v7230_v7  ;;  %4566 = vmatprep.subr.bf16.mxu1 %v7235_v15  ;;  %v7251_v7 = vld [vmem:[%s9785_s1 + $0x540] ss:$8 sps:$4 sm:$0xff]   ;;  %v7259_v15 = vld [vmem:[%s9785_s1 + $0x554] ss:$8 sps:$4 sm:$0xff]  }
 0x145   :  { %5310 = vmatprep.subr.bf16.mxu0 %v7238_v16  ;;  %4513 = vmatprep.mubr.bf16.mxu1 %v8812_v17  ;;  %v7247_v17 = vld [vmem:[%s9785_s1 + $0x534] ss:$8 sps:$4 sm:$0xff]   ;;  %v614_v20 = vsel %vm192_vm7, %v609_v2, %v613_v6  ;;  %v788_v0 = vor.u32 %v787_v48, %v786_v45  ;;  %v7275_v2 = vld [vmem:[%s9785_s1 + $0x580] ss:$8 sps:$4 sm:$0xff]  }
 0x146   :  { %5257 = vmatprep.mubr.bf16.mxu0 %v207_v18  ;;  %v7262_v16 = vld [vmem:[%s9785_s1 + $0xd54] ss:$8 sps:$4 sm:$0xff]  }
 0x147   :  { %4567 = vmatpush1.bf16.msra.mxu1 %v7233_v39  ;;  %v615_v39 = vrot.slane %v7997_v49, 4 }
 0x148   :  { %5311 = vmatpush1.bf16.msra.mxu0 %v7236_v21  ;;  %4568 = vmatprep.subr.bf16.mxu1 %v7241_v41  ;;  %v616_v21 = vrot.slane %v7969_v35, 5  ;;  %v591_v41 = vrot.slane %v7882_v56, 4 }
 0x149   :  { %5312 = vmatprep.subr.bf16.mxu0 %v7244_v25  ;;  %v592_v25 = vrot.slane %v7893_v1, 4 }
 0x14a   :  { %4514 = vmatmul.mubr.bf16.gmra.mrb[4].mxu1 %v183_v13  ;;  %v376_v13 = vsel %vm178_vm8, %v184_v24, %v375_v12  ;;  %v7260_v24 = vld [vmem:[%s9785_s1 + $0xd50] ss:$8 sps:$4 sm:$0xff]   ;;  %v596_v12 = vrot.slane %v7957_v30, 4 }
 0x14b   :  { %5258 = vmatmul.mubr.bf16.gmra.mrb[4].mxu0 %v185_v34  ;;  %4569 = vmatpush1.bf16.msra.mxu1 %v7239_v29  ;;  %v7265_v29 = vld [vmem:[%s9785_s1 + $0x564] ss:$8 sps:$4 sm:$0xff]   ;;  %v593_v38 = vsel %vm178_vm8, %v591_v41, %v592_v25  ;;  %v595_v40 = vsel %vm178_vm8, %v592_v25, %v594_v26  ;;  %v7284_v41 = vld [vmem:[%s9785_s1 + $0xd90] ss:$8 sps:$4 sm:$0xff]   ;;  %v780_v25 = vrot.slane %v7991_v47, 4 }
 0x14c   :  { %5313 = vmatpush1.bf16.msra.mxu0 %v7242_v33  ;;  %4570 = vmatprep.subr.bf16.mxu1 %v7247_v17  ;;  %v7268_v33 = vld [vmem:[%s9785_s1 + $0xd64] ss:$8 sps:$4 sm:$0xff]   ;;  %v7263_v17 = vld [vmem:[%s9785_s1 + $0x560] ss:$8 sps:$4 sm:$0xff]  }
 0x14d   :  { %5314 = vmatprep.subr.bf16.mxu0 %v7250_v37  ;;  %4523 = vmatprep.mubr.bf16.mxu1 %v207_v18  ;;  %v7257_v18 = vld [vmem:[%s9785_s1 + $0x550] ss:$8 sps:$4 sm:$0xff]   ;;  %v7266_v37 = vld [vmem:[%s9785_s1 + $0xd60] ss:$8 sps:$4 sm:$0xff]  }
 0x14e   :  { %5267 = vmatprep.mubr.bf16.mxu0 %v384_v44  ;;  %v7274_v44 = vld [vmem:[%s9785_s1 + $0xd74] ss:$8 sps:$4 sm:$0xff]  }
 0x14f   :  { %4571 = vmatpush1.bf16.msra.mxu1 %v7245_v51  ;;  %v7269_v51 = vld [vmem:[%s9785_s1 + $0x570] ss:$8 sps:$4 sm:$0xff]  }
 0x150   :  { %5315 = vmatpush1.bf16.msra.mxu0 %v7248_v52  ;;  %4572 = vmatprep.subr.bf16.mxu1 %v7253_v55  ;;  %v7272_v52 = vld [vmem:[%s9785_s1 + $0xd70] ss:$8 sps:$4 sm:$0xff]   ;;  %v7277_v55 = vld [vmem:[%s9785_s1 + $0x584] ss:$8 sps:$4 sm:$0xff]  }
 0x151   :  { %5316 = vmatprep.subr.bf16.mxu0 %v7256_v62  ;;  %v7280_v62 = vld [vmem:[%s9785_s1 + $0xd84] ss:$8 sps:$4 sm:$0xff]  }
 0x152   :  { %4524 = vmatmul.mubr.bf16.gmra.mrb[8].mxu1 %v185_v34  ;;  %v617_v34 = vor.u32 %v616_v21, %v615_v39  ;;  %v236_v39 = vrot.slane %v7800_v23, 5  ;;  %v237_v21 = vrot.slane %v7750_v3, 6 }
 0x153   :  { %5268 = vmatmul.mubr.bf16.gmra.mrb[8].mxu0 %v376_v13  ;;  %4573 = vmatpush1.bf16.msra.mxu1 %v7251_v7  ;;  %v597_v7 = vsel %vm178_vm8, %v594_v26, %v596_v12  ;;  %v7286_v13 = vld [vmem:[%s9785_s1 + $0xd94] ss:$8 sps:$4 sm:$0xff]   ;;  %v7289_v26 = vld [vmem:[%s9785_s1 + $0x5a4] ss:$8 sps:$4 sm:$0xff]  }
 0x154   :  { %5317 = vmatpush1.bf16.msra.mxu0 %v7254_v8  ;;  %4574 = vmatprep.subr.bf16.mxu1 %v7259_v15  ;;  %v618_v28 = vsel %vm192_vm7, %v613_v6, %v617_v34  ;;  %v7278_v6 = vld [vmem:[%s9785_s1 + $0xd80] ss:$8 sps:$4 sm:$0xff]   ;;  %v7283_v8 = vld [vmem:[%s9785_s1 + $0x594] ss:$8 sps:$4 sm:$0xff]   ;;  %v789_v15 = vsel %vm192_vm7, %v617_v34, %v788_v0 }
 0x155   :  { %5318 = vmatprep.subr.bf16.mxu0 %v7262_v16  ;;  %4533 = vmatprep.mubr.bf16.mxu1 %v610_v19  ;;  %v229_v16 = vrot.slane %v7728_v58, 5  ;;  %v232_v19 = vrot.slane %v7742_v63, 5  ;;  %v7307_v0 = vld [vmem:[%s9785_s1 + $0x5d4] ss:$8 sps:$4 sm:$0xff]  }
 0x156   :  { %5277 = vmatprep.mubr.bf16.mxu0 %v614_v20 }
 0x157   :  { %4575 = vmatpush1.bf16.msra.mxu1 %v7257_v18  ;;  %v230_v18 = vrot.slane %v7731_v59, 6 }
 0x158   :  { %5319 = vmatpush1.bf16.msra.mxu0 %v7260_v24  ;;  %4576 = vmatprep.subr.bf16.mxu1 %v7265_v29  ;;  %v7281_v24 = vld [vmem:[%s9785_s1 + $0x590] ss:$8 sps:$4 sm:$0xff]   ;;  %v7292_v29 = vld [vmem:[%s9785_s1 + $0xda4] ss:$8 sps:$4 sm:$0xff]  }
 0x159   :  { %5320 = vmatprep.subr.bf16.mxu0 %v7268_v33  ;;  %v231_v33 = vor.u32 %v230_v18, %v229_v16  ;;  %v7314_v16 = vld [vmem:[%s9785_s1 + $0xde0] ss:$8 sps:$4 sm:$0xff]   ;;  %v7319_v18 = vld [vmem:[%s9785_s1 + $0x5f4] ss:$8 sps:$4 sm:$0xff]  }
 0x15a   :  { %4534 = vmatmul.mubr.bf16.gmra.mrb[12].mxu1 %v593_v38  ;;  %v7290_v38 = vld [vmem:[%s9785_s1 + $0xda0] ss:$8 sps:$4 sm:$0xff]  }
 0x15b   :  { %5278 = vmatmul.mubr.bf16.gmra.mrb[12].mxu0 %v595_v40  ;;  %4577 = vmatpush1.bf16.msra.mxu1 %v7263_v17  ;;  %v9040_v17 = vor.u32 %v237_v21, %v236_v39  ;;  %v240_v39 = vrot.slane %v7836_v36, 5  ;;  %v241_v21 = vrot.slane %v7824_v32, 6 }
 0x15c   :  { %5321 = vmatpush1.bf16.msra.mxu0 %v7266_v37  ;;  %4578 = vmatprep.subr.bf16.mxu1 %v7271_v43  ;;  %v7287_v37 = vld [vmem:[%s9785_s1 + $0x5a0] ss:$8 sps:$4 sm:$0xff]   ;;  %v7295_v43 = vld [vmem:[%s9785_s1 + $0x5b4] ss:$8 sps:$4 sm:$0xff]  }
 0x15d   :  { %5322 = vmatprep.subr.bf16.mxu0 %v7274_v44  ;;  %4543 = vmatprep.mubr.bf16.mxu1 %v614_v20  ;;  %v233_v20 = vrot.slane %v7734_v60, 6  ;;  %v7298_v44 = vld [vmem:[%s9785_s1 + $0xdb4] ss:$8 sps:$4 sm:$0xff]  }
 0x15e   :  { %5287 = vmatprep.mubr.bf16.mxu0 %v618_v28 }
 0x15f   :  { %4579 = vmatpush1.bf16.msra.mxu1 %v7269_v51  ;;  %v234_v34 = vor.u32 %v233_v20, %v232_v19  ;;  %v7296_v51 = vld [vmem:[%s9785_s1 + $0xdb0] ss:$8 sps:$4 sm:$0xff]   ;;  %v7322_v19 = vld [vmem:[%s9785_s1 + $0xdf4] ss:$8 sps:$4 sm:$0xff]   ;;  %v215_v20 = vrot.slane %v7714_v53, 5 }
 0x160   :  { %5323 = vmatpush1.bf16.msra.mxu0 %v7272_v52  ;;  %4580 = vmatprep.subr.bf16.mxu1 %v7277_v55  ;;  %v7301_v52 = vld [vmem:[%s9785_s1 + $0x5c4] ss:$8 sps:$4 sm:$0xff]   ;;  %v7299_v55 = vld [vmem:[%s9785_s1 + $0x5c0] ss:$8 sps:$4 sm:$0xff]  }
 0x161   :  { %5324 = vmatprep.subr.bf16.mxu0 %v7280_v62  ;;  %v235_v45 = vsel %vm228_vm9, %v231_v33, %v234_v34  ;;  %v9058_v48 = vsel %vm228_vm9, %v234_v34, %v9040_v17  ;;  %v7302_v62 = vld [vmem:[%s9785_s1 + $0xdc0] ss:$8 sps:$4 sm:$0xff]   ;;  %v7328_v33 = vld [vmem:[%s9785_s1 + $0xe04] ss:$8 sps:$4 sm:$0xff]   ;;  %v242_v34 = vor.u32 %v241_v21, %v240_v39  ;;  %v645_v39 = vrot.slane %v7960_v31, 5 }
 0x162   :  { %4544 = vmatmul.mubr.bf16.gmra.mrb[16].mxu1 %v595_v40  ;;  %v781_v40 = vsel %vm178_vm8, %v596_v12, %v780_v25  ;;  %v7304_v12 = vld [vmem:[%s9785_s1 + $0xdc4] ss:$8 sps:$4 sm:$0xff]   ;;  %v216_v25 = vrot.slane %v7716_v54, 5  ;;  %v646_v21 = vrot.slane %v7924_v14, 6 }
 0x163   :  { %5288 = vmatmul.mubr.bf16.gmra.mrb[16].mxu0 %v597_v7  ;;  %4581 = vmatpush1.bf16.msra.mxu1 %v7275_v2  ;;  %v7310_v2 = vld [vmem:[%s9785_s1 + $0xdd4] ss:$8 sps:$4 sm:$0xff]  }
 0x164   :  { %5325 = vmatpush1.bf16.msra.mxu0 %v7278_v6  ;;  %4582 = vmatprep.subr.bf16.mxu1 %v7283_v8  ;;  %v7305_v6 = vld [vmem:[%s9785_s1 + $0x5d0] ss:$8 sps:$4 sm:$0xff]   ;;  %v7313_v8 = vld [vmem:[%s9785_s1 + $0x5e4] ss:$8 sps:$4 sm:$0xff]  }
 0x165   :  { %5326 = vmatprep.subr.bf16.mxu0 %v7286_v13  ;;  %4553 = vmatprep.mubr.bf16.mxu1 %v618_v28  ;;  %v7293_v28 = vld [vmem:[%s9785_s1 + $0x5b0] ss:$8 sps:$4 sm:$0xff]   ;;  %v7316_v13 = vld [vmem:[%s9785_s1 + $0xde4] ss:$8 sps:$4 sm:$0xff]  }
 0x166   :  { %5297 = vmatprep.mubr.bf16.mxu0 %v789_v15  ;;  %v7311_v15 = vld [vmem:[%s9785_s1 + $0x5e0] ss:$8 sps:$4 sm:$0xff]  }
 0x167   :  { %4583 = vmatpush1.bf16.msra.mxu1 %v7281_v24  ;;  %v7317_v24 = vld [vmem:[%s9785_s1 + $0x5f0] ss:$8 sps:$4 sm:$0xff]  }
 0x168   :  { %5327 = vmatpush1.bf16.msra.mxu0 %v7284_v41  ;;  %4584 = vmatprep.subr.bf16.mxu1 %v7289_v26  ;;  %v7320_v41 = vld [vmem:[%s9785_s1 + $0xdf0] ss:$8 sps:$4 sm:$0xff]   ;;  %v218_v26 = vrot.slane %v7736_v61, 5 }
 0x169   :  { %5328 = vmatprep.subr.bf16.mxu0 %v7292_v29  ;;  %v7325_v29 = vld [vmem:[%s9785_s1 + $0x604] ss:$8 sps:$4 sm:$0xff]  }
 0x16a   :  { %4554 = vmatmul.mubr.bf16.gmra.mrb[20].mxu1 %v597_v7  ;;  %v7308_v7 = vld [vmem:[%s9785_s1 + $0xdd0] ss:$8 sps:$4 sm:$0xff]  }
 0x16b   :  { %5298 = vmatmul.mubr.bf16.gmra.mrb[20].mxu0 %v781_v40  ;;  %4585 = vmatpush1.bf16.msra.mxu1 %v7287_v37  ;;  %v7323_v37 = vld [vmem:[%s9785_s1 + $0x600] ss:$8 sps:$4 sm:$0xff]   ;;  %v217_v40 = vsel %vm214_vm10, %v215_v20, %v216_v25  ;;  %v642_v20 = vrot.slane %v7914_v9, 6 }
 0x16c   :  { %5329 = vmatpush1.bf16.msra.mxu0 %v7290_v38  ;;  %4586 = vmatprep.subr.bf16.mxu1 %v7295_v43  ;;  %v7326_v38 = vld [vmem:[%s9785_s1 + $0xe00] ss:$8 sps:$4 sm:$0xff]   ;;  %v219_v43 = vsel %vm214_vm10, %v216_v25, %v218_v26  ;;  %v389_v25 = vrot.slane %v7851_v42, 5 }
 0x16d   :  { %5330 = vmatprep.subr.bf16.mxu0 %v7298_v44  ;;  %4596 = vmatprep.mubr.bf16.mxu1 %v235_v45  ;;  %v7331_v44 = vld [vmem:[%s9785_s1 + $0x614] ss:$8 sps:$4 sm:$0xff]  }
 0x16e   :  { %5340 = vmatprep.mubr.bf16.mxu0 %v9058_v48  ;;  %v7334_v45 = vld [vmem:[%s9785_s1 + $0xe14] ss:$8 sps:$4 sm:$0xff]  }
 0x16f   :  { %4587 = vmatpush1.bf16.msra.mxu1 %v7293_v28  ;;  %v395_v28 = vrot.slane %v8137_v22, 5 }
 0x170   :  { %5331 = vmatpush1.bf16.msra.mxu0 %v7296_v51  ;;  %4588 = vmatprep.subr.bf16.mxu1 %v7301_v52  ;;  %v396_v51 = vrot.slane %v7861_v46, 6  ;;  %v243_v52 = vsel %vm228_vm9, %v9040_v17, %v242_v34  ;;  %v7340_v17 = vld [vmem:[%s9785_s1 + $0xe24] ss:$8 sps:$4 sm:$0xff]  }
 0x171   :  { %5332 = vmatprep.subr.bf16.mxu0 %v7304_v12  ;;  %v7329_v12 = vld [vmem:[%s9785_s1 + $0x610] ss:$8 sps:$4 sm:$0xff]  }
 0x173   :  { %4589 = vmatpush1.bf16.msra.mxu1 %v7299_v55  ;;  %v7332_v55 = vld [vmem:[%s9785_s1 + $0xe10] ss:$8 sps:$4 sm:$0xff]  }
 0x174   :  { %5333 = vmatpush1.bf16.msra.mxu0 %v7302_v62  ;;  %4590 = vmatprep.subr.bf16.mxu1 %v7307_v0  ;;  %v220_v62 = vrot.slane %v7811_v27, 5  ;;  %v7337_v0 = vld [vmem:[%s9785_s1 + $0x624] ss:$8 sps:$4 sm:$0xff]  }
 0x175   :  { %5334 = vmatprep.subr.bf16.mxu0 %v7310_v2  ;;  %v397_v2 = vor.u32 %v396_v51, %v395_v28  ;;  %v7353_v28 = vld [vmem:[%s9785_s1 + $0x650] ss:$8 sps:$4 sm:$0xff]  }
 0x177   :  { %4591 = vmatpush1.bf16.msra.mxu1 %v7305_v6  ;;  %v7335_v6 = vld [vmem:[%s9785_s1 + $0x620] ss:$8 sps:$4 sm:$0xff]  }
 0x178   :  { %5335 = vmatpush1.bf16.msra.mxu0 %v7308_v7  ;;  %4592 = vmatprep.subr.bf16.mxu1 %v7313_v8  ;;  %v7338_v7 = vld [vmem:[%s9785_s1 + $0xe20] ss:$8 sps:$4 sm:$0xff]   ;;  %v221_v8 = vsel %vm214_vm10, %v218_v26, %v220_v62  ;;  %v7349_v26 = vld [vmem:[%s9785_s1 + $0x644] ss:$8 sps:$4 sm:$0xff]  }
 0x179   :  { %5336 = vmatprep.subr.bf16.mxu0 %v7316_v13  ;;  %v7346_v13 = vld [vmem:[%s9785_s1 + $0xe34] ss:$8 sps:$4 sm:$0xff]  }
 0x17b   :  { %4593 = vmatpush1.bf16.msra.mxu1 %v7311_v15  ;;  %v398_v15 = vsel %vm228_vm9, %v242_v34, %v397_v2  ;;  %v628_v2 = vrot.slane %v7916_v10, 5 }
 0x17c   :  { %5337 = vmatpush1.bf16.msra.mxu0 %v7314_v16  ;;  %4594 = vmatprep.subr.bf16.mxu1 %v7319_v18  ;;  %v638_v16 = vrot.slane %v7899_v4, 5  ;;  %v639_v18 = vrot.slane %v7902_v5, 6 }
 0x17d   :  { %5338 = vmatprep.subr.bf16.mxu0 %v7322_v19  ;;  %v641_v19 = vrot.slane %v7919_v11, 5 }
 0x17f   :  { %4595 = vmatpush1.bf16.msra.mxu1 %v7317_v24  ;;  %v7341_v24 = vld [vmem:[%s9785_s1 + $0x630] ss:$8 sps:$4 sm:$0xff]   ;;  %v643_v34 = vor.u32 %v642_v20, %v641_v19  ;;  %v7370_v19 = vld [vmem:[%s9785_s1 + $0xe74] ss:$8 sps:$4 sm:$0xff]   ;;  %v800_v20 = vrot.slane %v8237_v57, 5 }
 0x180   :  { %5339 = vmatpush1.bf16.msra.mxu0 %v7320_v41  ;;  %4657 = vmatprep.subr.bf16.mxu1 %v7325_v29  ;;  %v7344_v41 = vld [vmem:[%s9785_s1 + $0xe30] ss:$8 sps:$4 sm:$0xff]   ;;  %v7352_v29 = vld [vmem:[%s9785_s1 + $0xe44] ss:$8 sps:$4 sm:$0xff]  }
 0x181   :  { %5401 = vmatprep.subr.bf16.mxu0 %v7328_v33  ;;  %v640_v33 = vor.u32 %v639_v18, %v638_v16  ;;  %v7367_v18 = vld [vmem:[%s9785_s1 + $0x674] ss:$8 sps:$4 sm:$0xff]  }
 0x182   :  { %4597 = vmatmul.mubr.bf16.vlgmr.msra.gmra.mrb[0].mxu1 %v217_v40  ;;  %v7350_v40 = vld [vmem:[%s9785_s1 + $0xe40] ss:$8 sps:$4 sm:$0xff]  }
 0x183   :  { %5341 = vmatmul.mubr.bf16.vlgmr.msra.gmra.mrb[0].mxu0 %v219_v43  ;;  %4658 = vmatpush1.bf16.msra.mxu1 %v7323_v37  ;;  %v647_v37 = vor.u32 %v646_v21, %v645_v39  ;;  %v644_v51 = vsel %vm228_vm9, %v640_v33, %v643_v34  ;;  %v801_v39 = vrot.slane %v8000_v50, 6 }
 0x184   :  { %5402 = vmatpush1.bf16.msra.mxu0 %v7326_v38  ;;  %4659 = vmatprep.subr.bf16.mxu1 %v7331_v44  ;;  %v7347_v38 = vld [vmem:[%s9785_s1 + $0x640] ss:$8 sps:$4 sm:$0xff]   ;;  %v7355_v44 = vld [vmem:[%s9785_s1 + $0x654] ss:$8 sps:$4 sm:$0xff]  }
 0x185   :  { %5403 = vmatprep.subr.bf16.mxu0 %v7334_v45  ;;  %4606 = vmatprep.mubr.bf16.mxu1 %v9058_v48  ;;  %v7343_v48 = vld [vmem:[%s9785_s1 + $0x634] ss:$8 sps:$4 sm:$0xff]   ;;  %v802_v33 = vor.u32 %v801_v39, %v800_v20  ;;  %v7389_v39 = vld [vmem:[%s9785_s1 + $0x6b0] ss:$8 sps:$4 sm:$0xff]  }
 0x186   :  { %5350 = vmatprep.mubr.bf16.mxu0 %v243_v52  ;;  %v7358_v45 = vld [vmem:[%s9785_s1 + $0xe54] ss:$8 sps:$4 sm:$0xff]  }
 0x187   :  { %4660 = vmatpush1.bf16.msra.mxu1 %v7329_v12  ;;  %v649_v12 = vrot.slane %v7997_v49, 5 }
 0x188   :  { %5404 = vmatpush1.bf16.msra.mxu0 %v7332_v55  ;;  %4661 = vmatprep.subr.bf16.mxu1 %v7337_v0  ;;  %v650_v55 = vrot.slane %v7969_v35, 6  ;;  %v625_v0 = vrot.slane %v7882_v56, 5 }
 0x189   :  { %5405 = vmatprep.subr.bf16.mxu0 %v7340_v17  ;;  %v626_v17 = vrot.slane %v7893_v1, 5 }
 0x18a   :  { %4607 = vmatmul.mubr.bf16.gmra.mrb[4].mxu1 %v219_v43  ;;  %v390_v43 = vsel %vm214_vm10, %v220_v62, %v389_v25  ;;  %v7356_v62 = vld [vmem:[%s9785_s1 + $0xe50] ss:$8 sps:$4 sm:$0xff]   ;;  %v630_v25 = vrot.slane %v7957_v30, 5 }
 0x18b   :  { %5351 = vmatmul.mubr.bf16.gmra.mrb[4].mxu0 %v221_v8  ;;  %4662 = vmatpush1.bf16.msra.mxu1 %v7335_v6  ;;  %v7361_v6 = vld [vmem:[%s9785_s1 + $0x664] ss:$8 sps:$4 sm:$0xff]   ;;  %v629_v16 = vsel %vm214_vm10, %v626_v17, %v628_v2 }
 0x18c   :  { %5406 = vmatpush1.bf16.msra.mxu0 %v7338_v7  ;;  %4663 = vmatprep.subr.bf16.mxu1 %v7343_v48  ;;  %v7364_v7 = vld [vmem:[%s9785_s1 + $0xe64] ss:$8 sps:$4 sm:$0xff]   ;;  %v7359_v48 = vld [vmem:[%s9785_s1 + $0x660] ss:$8 sps:$4 sm:$0xff]  }
 0x18d   :  { %5407 = vmatprep.subr.bf16.mxu0 %v7346_v13  ;;  %4616 = vmatprep.mubr.bf16.mxu1 %v243_v52  ;;  %v648_v52 = vsel %vm228_vm9, %v643_v34, %v647_v37  ;;  %v7362_v13 = vld [vmem:[%s9785_s1 + $0xe60] ss:$8 sps:$4 sm:$0xff]  }
 0x18e   :  { %5360 = vmatprep.mubr.bf16.mxu0 %v398_v15  ;;  %v627_v15 = vsel %vm214_vm10, %v625_v0, %v626_v17  ;;  %v7371_v34 = vld [vmem:[%s9785_s1 + $0x680] ss:$8 sps:$4 sm:$0xff]   ;;  %v794_v0 = vrot.slane %v7991_v47, 5  ;;  %v7385_v17 = vld [vmem:[%s9785_s1 + $0x6a4] ss:$8 sps:$4 sm:$0xff]  }
 0x18f   :  { %4664 = vmatpush1.bf16.msra.mxu1 %v7341_v24  ;;  %v7365_v24 = vld [vmem:[%s9785_s1 + $0x670] ss:$8 sps:$4 sm:$0xff]  }
 0x190   :  { %5408 = vmatpush1.bf16.msra.mxu0 %v7344_v41  ;;  %4665 = vmatprep.subr.bf16.mxu1 %v7349_v26  ;;  %v7368_v41 = vld [vmem:[%s9785_s1 + $0xe70] ss:$8 sps:$4 sm:$0xff]   ;;  %v7373_v26 = vld [vmem:[%s9785_s1 + $0x684] ss:$8 sps:$4 sm:$0xff]  }
 0x191   :  { %5409 = vmatprep.subr.bf16.mxu0 %v7352_v29  ;;  %v7376_v29 = vld [vmem:[%s9785_s1 + $0xe84] ss:$8 sps:$4 sm:$0xff]  }
 0x192   :  { %4617 = vmatmul.mubr.bf16.gmra.mrb[8].mxu1 %v221_v8  ;;  %v651_v8 = vor.u32 %v650_v55, %v649_v12  ;;  %v272_v12 = vrot.slane %v7800_v23, 6  ;;  %v273_v55 = vrot.slane %v7750_v3, 7 }
 0x193   :  { %5361 = vmatmul.mubr.bf16.gmra.mrb[8].mxu0 %v390_v43  ;;  %4666 = vmatpush1.bf16.msra.mxu1 %v7347_v38  ;;  %v631_v38 = vsel %vm214_vm10, %v628_v2, %v630_v25  ;;  %v7382_v43 = vld [vmem:[%s9785_s1 + $0xe94] ss:$8 sps:$4 sm:$0xff]   ;;  %v7388_v2 = vld [vmem:[%s9785_s1 + $0xea4] ss:$8 sps:$4 sm:$0xff]  }
 0x194   :  { %5410 = vmatpush1.bf16.msra.mxu0 %v7350_v40  ;;  %4667 = vmatprep.subr.bf16.mxu1 %v7355_v44  ;;  %v652_v21 = vsel %vm228_vm9, %v647_v37, %v651_v8  ;;  %v7374_v37 = vld [vmem:[%s9785_s1 + $0xe80] ss:$8 sps:$4 sm:$0xff]   ;;  %v7379_v40 = vld [vmem:[%s9785_s1 + $0x694] ss:$8 sps:$4 sm:$0xff]   ;;  %v803_v44 = vsel %vm228_vm9, %v651_v8, %v802_v33  ;;  %v9286_v8 = vor.u32 %v273_v55, %v272_v12  ;;  %v277_v12 = vrot.slane %v7824_v32, 7 }
 0x195   :  { %5411 = vmatprep.subr.bf16.mxu0 %v7358_v45  ;;  %4626 = vmatprep.mubr.bf16.mxu1 %v644_v51  ;;  %v265_v45 = vrot.slane %v7728_v58, 6  ;;  %v268_v51 = vrot.slane %v7742_v63, 6  ;;  %v7406_v33 = vld [vmem:[%s9785_s1 + $0xed4] ss:$8 sps:$4 sm:$0xff]   ;;  %v7416_v55 = vld [vmem:[%s9785_s1 + $0xef0] ss:$8 sps:$4 sm:$0xff]  }
 0x196   :  { %5370 = vmatprep.mubr.bf16.mxu0 %v648_v52 }
 0x197   :  { %4668 = vmatpush1.bf16.msra.mxu1 %v7353_v28  ;;  %v266_v28 = vrot.slane %v7731_v59, 7  ;;  %v7380_v59 = vld [vmem:[%s9785_s1 + $0xe90] ss:$8 sps:$4 sm:$0xff]  }
 0x198   :  { %5412 = vmatpush1.bf16.msra.mxu0 %v7356_v62  ;;  %4669 = vmatprep.subr.bf16.mxu1 %v7361_v6  ;;  %v7377_v62 = vld [vmem:[%s9785_s1 + $0x690] ss:$8 sps:$4 sm:$0xff]  }
 0x199   :  { %5413 = vmatprep.subr.bf16.mxu0 %v7364_v7  ;;  %v267_v6 = vor.u32 %v266_v28, %v265_v45  ;;  %v7415_v45 = vld [vmem:[%s9785_s1 + $0x6f4] ss:$8 sps:$4 sm:$0xff]  }
 0x19a   :  { %4627 = vmatmul.mubr.bf16.gmra.mrb[12].mxu1 %v627_v15  ;;  %v795_v15 = vsel %vm214_vm10, %v630_v25, %v794_v0  ;;  %v7395_v25 = vld [vmem:[%s9785_s1 + $0x6c0] ss:$8 sps:$4 sm:$0xff]   ;;  %v7418_v28 = vld [vmem:[%s9785_s1 + $0xef4] ss:$8 sps:$4 sm:$0xff]   ;;  %v254_v0 = vrot.slane %v7736_v61, 6 }
 0x19b   :  { %5371 = vmatmul.mubr.bf16.gmra.mrb[12].mxu0 %v629_v16  ;;  %4670 = vmatpush1.bf16.msra.mxu1 %v7359_v48  ;;  %v7383_v48 = vld [vmem:[%s9785_s1 + $0x6a0] ss:$8 sps:$4 sm:$0xff]  }
 0x19c   :  { %5414 = vmatpush1.bf16.msra.mxu0 %v7362_v13  ;;  %4671 = vmatprep.subr.bf16.mxu1 %v7367_v18  ;;  %v7386_v13 = vld [vmem:[%s9785_s1 + $0xea0] ss:$8 sps:$4 sm:$0xff]   ;;  %v7394_v18 = vld [vmem:[%s9785_s1 + $0xeb4] ss:$8 sps:$4 sm:$0xff]  }
 0x19d   :  { %5415 = vmatprep.subr.bf16.mxu0 %v7370_v19  ;;  %4636 = vmatprep.mubr.bf16.mxu1 %v648_v52  ;;  %v269_v52 = vrot.slane %v7734_v60, 7 }
 0x19e   :  { %5380 = vmatprep.mubr.bf16.mxu0 %v652_v21 }
 0x19f   :  { %4672 = vmatpush1.bf16.msra.mxu1 %v7365_v24  ;;  %v270_v7 = vor.u32 %v269_v52, %v268_v51  ;;  %v7397_v24 = vld [vmem:[%s9785_s1 + $0x6c4] ss:$8 sps:$4 sm:$0xff]   ;;  %v7413_v51 = vld [vmem:[%s9785_s1 + $0x6f0] ss:$8 sps:$4 sm:$0xff]   ;;  %v276_v52 = vrot.slane %v7836_v36, 6 }
 0x1a0   :  { %5416 = vmatpush1.bf16.msra.mxu0 %v7368_v41  ;;  %4673 = vmatprep.subr.bf16.mxu1 %v7373_v26  ;;  %v7400_v41 = vld [vmem:[%s9785_s1 + $0xec4] ss:$8 sps:$4 sm:$0xff]   ;;  %v7398_v26 = vld [vmem:[%s9785_s1 + $0xec0] ss:$8 sps:$4 sm:$0xff]  }
 0x1a1   :  { %5417 = vmatprep.subr.bf16.mxu0 %v7376_v29  ;;  %v271_v19 = vsel %vm264_vm11, %v267_v6, %v270_v7  ;;  %v9304_v20 = vsel %vm264_vm11, %v270_v7, %v9286_v8  ;;  %v7403_v29 = vld [vmem:[%s9785_s1 + $0x6d4] ss:$8 sps:$4 sm:$0xff]   ;;  %v278_v6 = vor.u32 %v277_v12, %v276_v52  ;;  %v7419_v7 = vld [vmem:[%s9785_s1 + $0x700] ss:$8 sps:$4 sm:$0xff]   ;;  %v680_v52 = vrot.slane %v7924_v14, 7 }
 0x1a2   :  { %4637 = vmatmul.mubr.bf16.gmra.mrb[16].mxu1 %v629_v16  ;;  %v7391_v16 = vld [vmem:[%s9785_s1 + $0x6b4] ss:$8 sps:$4 sm:$0xff]   ;;  %v7437_v12 = vld [vmem:[%s9785_s1 + $0x730] ss:$8 sps:$4 sm:$0xff]  }
 0x1a3   :  { %5381 = vmatmul.mubr.bf16.gmra.mrb[16].mxu0 %v631_v38  ;;  %4674 = vmatpush1.bf16.msra.mxu1 %v7371_v34  ;;  %v7401_v34 = vld [vmem:[%s9785_s1 + $0x6d0] ss:$8 sps:$4 sm:$0xff]  }
 0x1a4   :  { %5418 = vmatpush1.bf16.msra.mxu0 %v7374_v37  ;;  %4675 = vmatprep.subr.bf16.mxu1 %v7379_v40  ;;  %v7404_v37 = vld [vmem:[%s9785_s1 + $0xed0] ss:$8 sps:$4 sm:$0xff]   ;;  %v7412_v40 = vld [vmem:[%s9785_s1 + $0xee4] ss:$8 sps:$4 sm:$0xff]  }
 0x1a5   :  { %5419 = vmatprep.subr.bf16.mxu0 %v7382_v43  ;;  %4646 = vmatprep.mubr.bf16.mxu1 %v652_v21  ;;  %v7392_v21 = vld [vmem:[%s9785_s1 + $0xeb0] ss:$8 sps:$4 sm:$0xff]   ;;  %v7407_v43 = vld [vmem:[%s9785_s1 + $0x6e0] ss:$8 sps:$4 sm:$0xff]  }
 0x1a6   :  { %5390 = vmatprep.mubr.bf16.mxu0 %v803_v44  ;;  %v7410_v44 = vld [vmem:[%s9785_s1 + $0xee0] ss:$8 sps:$4 sm:$0xff]  }
 0x1a7   :  { %4676 = vmatpush1.bf16.msra.mxu1 %v7377_v62  ;;  %v251_v62 = vrot.slane %v7714_v53, 6 }
 0x1a8   :  { %5420 = vmatpush1.bf16.msra.mxu0 %v7380_v59  ;;  %4677 = vmatprep.subr.bf16.mxu1 %v7385_v17  ;;  %v252_v59 = vrot.slane %v7716_v54, 6  ;;  %v7421_v17 = vld [vmem:[%s9785_s1 + $0x704] ss:$8 sps:$4 sm:$0xff]  }
 0x1a9   :  { %5421 = vmatprep.subr.bf16.mxu0 %v7388_v2  ;;  %v7424_v2 = vld [vmem:[%s9785_s1 + $0xf04] ss:$8 sps:$4 sm:$0xff]  }
 0x1aa   :  { %4647 = vmatmul.mubr.bf16.gmra.mrb[20].mxu1 %v631_v38  ;;  %v7409_v38 = vld [vmem:[%s9785_s1 + $0x6e4] ss:$8 sps:$4 sm:$0xff]  }
 0x1ab   :  { %5391 = vmatmul.mubr.bf16.gmra.mrb[20].mxu0 %v795_v15  ;;  %4678 = vmatpush1.bf16.msra.mxu1 %v7383_v48  ;;  %v7422_v48 = vld [vmem:[%s9785_s1 + $0xf00] ss:$8 sps:$4 sm:$0xff]   ;;  %v255_v15 = vsel %vm250_vm12, %v252_v59, %v254_v0 }
 0x1ac   :  { %5422 = vmatpush1.bf16.msra.mxu0 %v7386_v13  ;;  %4679 = vmatprep.subr.bf16.mxu1 %v7391_v16  ;;  %v253_v13 = vsel %vm250_vm12, %v251_v62, %v252_v59  ;;  %v7427_v16 = vld [vmem:[%s9785_s1 + $0x714] ss:$8 sps:$4 sm:$0xff]   ;;  %v7445_v62 = vld [vmem:[%s9785_s1 + $0x744] ss:$8 sps:$4 sm:$0xff]  }
 0x1ad   :  { %5423 = vmatprep.subr.bf16.mxu0 %v7394_v18  ;;  %4689 = vmatprep.mubr.bf16.mxu1 %v271_v19  ;;  %v7430_v18 = vld [vmem:[%s9785_s1 + $0xf14] ss:$8 sps:$4 sm:$0xff]   ;;  %v409_v19 = vrot.slane %v8137_v22, 6  ;;  %v7448_v59 = vld [vmem:[%s9785_s1 + $0xf44] ss:$8 sps:$4 sm:$0xff]  }
 0x1ae   :  { %5433 = vmatprep.mubr.bf16.mxu0 %v9304_v20 }
 0x1af   :  { %4680 = vmatpush1.bf16.msra.mxu1 %v7389_v39  ;;  %v410_v39 = vrot.slane %v7861_v46, 7 }
 0x1b0   :  { %5424 = vmatpush1.bf16.msra.mxu0 %v7392_v21  ;;  %4681 = vmatprep.subr.bf16.mxu1 %v7397_v24  ;;  %v279_v21 = vsel %vm264_vm11, %v9286_v8, %v278_v6  ;;  %v7425_v24 = vld [vmem:[%s9785_s1 + $0x710] ss:$8 sps:$4 sm:$0xff]   ;;  %v7436_v8 = vld [vmem:[%s9785_s1 + $0xf24] ss:$8 sps:$4 sm:$0xff]  }
 0x1b1   :  { %5425 = vmatprep.subr.bf16.mxu0 %v7400_v41  ;;  %v7428_v41 = vld [vmem:[%s9785_s1 + $0xf10] ss:$8 sps:$4 sm:$0xff]  }
 0x1b3   :  { %4682 = vmatpush1.bf16.msra.mxu1 %v7395_v25  ;;  %v256_v25 = vrot.slane %v7811_v27, 6 }
 0x1b4   :  { %5426 = vmatpush1.bf16.msra.mxu0 %v7398_v26  ;;  %4683 = vmatprep.subr.bf16.mxu1 %v7403_v29  ;;  %v7433_v26 = vld [vmem:[%s9785_s1 + $0x724] ss:$8 sps:$4 sm:$0xff]   ;;  %v411_v29 = vor.u32 %v410_v39, %v409_v19  ;;  %v683_v39 = vrot.slane %v7997_v49, 6 }
 0x1b5   :  { %5427 = vmatprep.subr.bf16.mxu0 %v7406_v33  ;;  %v7431_v33 = vld [vmem:[%s9785_s1 + $0x720] ss:$8 sps:$4 sm:$0xff]  }
 0x1b7   :  { %4684 = vmatpush1.bf16.msra.mxu1 %v7401_v34  ;;  %v7434_v34 = vld [vmem:[%s9785_s1 + $0xf20] ss:$8 sps:$4 sm:$0xff]  }
 0x1b8   :  { %5428 = vmatpush1.bf16.msra.mxu0 %v7404_v37  ;;  %4685 = vmatprep.subr.bf16.mxu1 %v7409_v38  ;;  %v257_v37 = vsel %vm250_vm12, %v254_v0, %v256_v25  ;;  %v7442_v38 = vld [vmem:[%s9785_s1 + $0xf34] ss:$8 sps:$4 sm:$0xff]  }
 0x1b9   :  { %5429 = vmatprep.subr.bf16.mxu0 %v7412_v40  ;;  %v412_v40 = vsel %vm264_vm11, %v278_v6, %v411_v29  ;;  %v7443_v6 = vld [vmem:[%s9785_s1 + $0x740] ss:$8 sps:$4 sm:$0xff]   ;;  %v7460_v29 = vld [vmem:[%s9785_s1 + $0xf64] ss:$8 sps:$4 sm:$0xff]  }
 0x1bb   :  { %4686 = vmatpush1.bf16.msra.mxu1 %v7407_v43  ;;  %v672_v43 = vrot.slane %v7899_v4, 6 }
 0x1bc   :  { %5430 = vmatpush1.bf16.msra.mxu0 %v7410_v44  ;;  %4687 = vmatprep.subr.bf16.mxu1 %v7415_v45  ;;  %v673_v44 = vrot.slane %v7902_v5, 7  ;;  %v675_v45 = vrot.slane %v7919_v11, 6  ;;  %v7440_v5 = vld [vmem:[%s9785_s1 + $0xf30] ss:$8 sps:$4 sm:$0xff]  }
 0x1bd   :  { %5431 = vmatprep.subr.bf16.mxu0 %v7418_v28  ;;  %v676_v28 = vrot.slane %v7914_v9, 7 }
 0x1be   :  { %v674_v0 = vor.u32 %v673_v44, %v672_v43  ;;  %v7466_v43 = vld [vmem:[%s9785_s1 + $0xf74] ss:$8 sps:$4 sm:$0xff]  }
 0x1bf   :  { %4688 = vmatpush1.bf16.msra.mxu1 %v7413_v51  ;;  %v679_v51 = vrot.slane %v7960_v31, 6 }
 0x1c0   :  { %5432 = vmatpush1.bf16.msra.mxu0 %v7416_v55  ;;  %4750 = vmatprep.subr.bf16.mxu1 %v7421_v17  ;;  %v403_v55 = vrot.slane %v7851_v42, 6  ;;  %v677_v17 = vor.u32 %v676_v28, %v675_v45  ;;  %v814_v45 = vrot.slane %v8237_v57, 6  ;;  %v815_v28 = vrot.slane %v8000_v50, 7 }
 0x1c1   :  { %5494 = vmatprep.subr.bf16.mxu0 %v7424_v2  ;;  %v681_v2 = vor.u32 %v680_v52, %v679_v51  ;;  %v7461_v51 = vld [vmem:[%s9785_s1 + $0x770] ss:$8 sps:$4 sm:$0xff]  }
 0x1c2   :  { %4690 = vmatmul.mubr.bf16.vlgmr.msra.gmra.mrb[0].mxu1 %v253_v13  ;;  %v7451_v13 = vld [vmem:[%s9785_s1 + $0x754] ss:$8 sps:$4 sm:$0xff]   ;;  %v7464_v52 = vld [vmem:[%s9785_s1 + $0xf70] ss:$8 sps:$4 sm:$0xff]  }
 0x1c3   :  { %5434 = vmatmul.mubr.bf16.vlgmr.msra.gmra.mrb[0].mxu0 %v255_v15  ;;  %4751 = vmatpush1.bf16.msra.mxu1 %v7419_v7  ;;  %v7446_v7 = vld [vmem:[%s9785_s1 + $0xf40] ss:$8 sps:$4 sm:$0xff]   ;;  %v682_v19 = vsel %vm264_vm11, %v677_v17, %v681_v2 }
 0x1c4   :  { %5495 = vmatpush1.bf16.msra.mxu0 %v7422_v48  ;;  %4752 = vmatprep.subr.bf16.mxu1 %v7427_v16  ;;  %v404_v48 = vsel %vm250_vm12, %v256_v25, %v403_v55  ;;  %v7449_v16 = vld [vmem:[%s9785_s1 + $0x750] ss:$8 sps:$4 sm:$0xff]   ;;  %v660_v25 = vrot.slane %v7893_v1, 6  ;;  %v7472_v55 = vld [vmem:[%s9785_s1 + $0xf84] ss:$8 sps:$4 sm:$0xff]  }
 0x1c5   :  { %5496 = vmatprep.subr.bf16.mxu0 %v7430_v18  ;;  %4699 = vmatprep.mubr.bf16.mxu1 %v9304_v20  ;;  %v7439_v20 = vld [vmem:[%s9785_s1 + $0x734] ss:$8 sps:$4 sm:$0xff]   ;;  %v678_v18 = vsel %vm264_vm11, %v674_v0, %v677_v17  ;;  %v7470_v0 = vld [vmem:[%s9785_s1 + $0xf80] ss:$8 sps:$4 sm:$0xff]  }
 0x1c6   :  { %5443 = vmatprep.mubr.bf16.mxu0 %v279_v21 }
 0x1c7   :  { %4753 = vmatpush1.bf16.msra.mxu1 %v7425_v24  ;;  %v7452_v24 = vld [vmem:[%s9785_s1 + $0xf50] ss:$8 sps:$4 sm:$0xff]  }
 0x1c8   :  { %5497 = vmatpush1.bf16.msra.mxu0 %v7428_v41  ;;  %4754 = vmatprep.subr.bf16.mxu1 %v7433_v26  ;;  %v659_v41 = vrot.slane %v7882_v56, 6  ;;  %v662_v26 = vrot.slane %v7916_v10, 6 }
 0x1c9   :  { %5498 = vmatprep.subr.bf16.mxu0 %v7436_v8  ;;  %v7457_v8 = vld [vmem:[%s9785_s1 + $0x764] ss:$8 sps:$4 sm:$0xff]  }
 0x1ca   :  { %4700 = vmatmul.mubr.bf16.gmra.mrb[4].mxu1 %v255_v15  ;;  %v7454_v15 = vld [vmem:[%s9785_s1 + $0xf54] ss:$8 sps:$4 sm:$0xff]  }
 0x1cb   :  { %5444 = vmatmul.mubr.bf16.gmra.mrb[4].mxu0 %v257_v37  ;;  %4755 = vmatpush1.bf16.msra.mxu1 %v7431_v33 }
 0x1cc   :  { %5499 = vmatpush1.bf16.msra.mxu0 %v7434_v34  ;;  %4756 = vmatprep.subr.bf16.mxu1 %v7439_v20  ;;  %v7455_v34 = vld [vmem:[%s9785_s1 + $0x760] ss:$8 sps:$4 sm:$0xff]   ;;  %v661_v20 = vsel %vm250_vm12, %v659_v41, %v660_v25 }
 0x1cd   :  { %5500 = vmatprep.subr.bf16.mxu0 %v7442_v38  ;;  %4709 = vmatprep.mubr.bf16.mxu1 %v279_v21  ;;  %v684_v21 = vrot.slane %v7969_v35, 7  ;;  %v663_v38 = vsel %vm250_vm12, %v660_v25, %v662_v26  ;;  %v7479_v41 = vld [vmem:[%s9785_s1 + $0x7a0] ss:$8 sps:$4 sm:$0xff]  }
 0x1ce   :  { %5453 = vmatprep.mubr.bf16.mxu0 %v412_v40  ;;  %v7463_v40 = vld [vmem:[%s9785_s1 + $0x774] ss:$8 sps:$4 sm:$0xff]   ;;  %v7482_v25 = vld [vmem:[%s9785_s1 + $0xfa0] ss:$8 sps:$4 sm:$0xff]  }
 0x1cf   :  { %4757 = vmatpush1.bf16.msra.mxu1 %v7437_v12  ;;  %v685_v33 = vor.u32 %v684_v21, %v683_v39  ;;  %v664_v12 = vrot.slane %v7957_v30, 6  ;;  %v301_v39 = vrot.slane %v7728_v58, 7  ;;  %v7487_v58 = vld [vmem:[%s9785_s1 + $0x7b4] ss:$8 sps:$4 sm:$0xff]  }
 0x1d0   :  { %5501 = vmatpush1.bf16.msra.mxu0 %v7440_v5  ;;  %4758 = vmatprep.subr.bf16.mxu1 %v7445_v62  ;;  %v7469_v5 = vld [vmem:[%s9785_s1 + $0x784] ss:$8 sps:$4 sm:$0xff]   ;;  %v816_v62 = vor.u32 %v815_v28, %v814_v45  ;;  %v7500_v45 = vld [vmem:[%s9785_s1 + $0xfd0] ss:$8 sps:$4 sm:$0xff]  }
 0x1d1   :  { %5502 = vmatprep.subr.bf16.mxu0 %v7448_v59  ;;  %v686_v44 = vsel %vm264_vm11, %v681_v2, %v685_v33  ;;  %v7467_v59 = vld [vmem:[%s9785_s1 + $0x780] ss:$8 sps:$4 sm:$0xff]   ;;  %v665_v17 = vsel %vm250_vm12, %v662_v26, %v664_v12  ;;  %v7475_v2 = vld [vmem:[%s9785_s1 + $0x794] ss:$8 sps:$4 sm:$0xff]   ;;  %v7505_v28 = vld [vmem:[%s9785_s1 + $0x7e4] ss:$8 sps:$4 sm:$0xff]  }
 0x1d2   :  { %4710 = vmatmul.mubr.bf16.gmra.mrb[8].mxu1 %v257_v37  ;;  %v7458_v37 = vld [vmem:[%s9785_s1 + $0xf60] ss:$8 sps:$4 sm:$0xff]  }
 0x1d3   :  { %5454 = vmatmul.mubr.bf16.gmra.mrb[8].mxu0 %v404_v48  ;;  %4759 = vmatpush1.bf16.msra.mxu1 %v7443_v6  ;;  %v7478_v6 = vld [vmem:[%s9785_s1 + $0xf94] ss:$8 sps:$4 sm:$0xff]   ;;  %v302_v48 = vrot.slane %v7742_v63, 7  ;;  %v7481_v63 = vld [vmem:[%s9785_s1 + $0x7a4] ss:$8 sps:$4 sm:$0xff]  }
 0x1d4   :  { %5503 = vmatpush1.bf16.msra.mxu0 %v7446_v7  ;;  %4760 = vmatprep.subr.bf16.mxu1 %v7451_v13  ;;  %v817_v7 = vsel %vm264_vm11, %v685_v33, %v816_v62  ;;  %v305_v13 = vrot.slane %v7800_v23, 7  ;;  %v7488_v33 = vld [vmem:[%s9785_s1 + $0xfb0] ss:$8 sps:$4 sm:$0xff]   ;;  %v308_v62 = vrot.slane %v7836_v36, 7  ;;  %v710_v23 = vrot.slane %v7960_v31, 7 }
 0x1d5   :  { %5504 = vmatprep.subr.bf16.mxu0 %v7454_v15  ;;  %4719 = vmatprep.mubr.bf16.mxu1 %v678_v18  ;;  %v7473_v15 = vld [vmem:[%s9785_s1 + $0x790] ss:$8 sps:$4 sm:$0xff]   ;;  %v808_v18 = vrot.slane %v7991_v47, 6  ;;  %v303_v21 = vor.u32 %v302_v48, %v7734_v60  ;;  %v7490_v60 = vld [vmem:[%s9785_s1 + $0xfb4] ss:$8 sps:$4 sm:$0xff]   ;;  %v713_v31 = vrot.slane %v7997_v49, 7 }
 0x1d6   :  { %5463 = vmatprep.mubr.bf16.mxu0 %v682_v19  ;;  %v309_v36 = vor.u32 %v308_v62, %v7824_v32  ;;  %v828_v49 = vrot.slane %v8237_v57, 7 }
 0x1d7   :  { %4761 = vmatpush1.bf16.msra.mxu1 %v7449_v16  ;;  %v7476_v16 = vld [vmem:[%s9785_s1 + $0xf90] ss:$8 sps:$4 sm:$0xff]   ;;  %v809_v26 = vsel %vm250_vm12, %v664_v12, %v808_v18  ;;  %v7506_v12 = vld [vmem:[%s9785_s1 + $0xfe0] ss:$8 sps:$4 sm:$0xff]   ;;  %v707_v18 = vrot.slane %v7919_v11, 7 }
 0x1d8   :  { %5505 = vmatpush1.bf16.msra.mxu0 %v7452_v24  ;;  %4762 = vmatprep.subr.bf16.mxu1 %v7457_v8  ;;  %v306_v24 = vor.u32 %v305_v13, %v7750_v3  ;;  %v304_v3 = vsel %vm300_vm13, %v301_v39, %v303_v21 }
 0x1d9   :  { %5506 = vmatprep.subr.bf16.mxu0 %v7460_v29  ;;  %v7485_v29 = vld [vmem:[%s9785_s1 + $0x7b0] ss:$8 sps:$4 sm:$0xff]  }
 0x1da   :  { %4720 = vmatmul.mubr.bf16.gmra.mrb[12].mxu1 %v661_v20  ;;  %v307_v8 = vsel %vm300_vm13, %v302_v48, %v306_v24  ;;  %v7491_v20 = vld [vmem:[%s9785_s1 + $0x7c0] ss:$8 sps:$4 sm:$0xff]  }
 0x1db   :  { %5464 = vmatmul.mubr.bf16.gmra.mrb[12].mxu0 %v663_v38  ;;  %4763 = vmatpush1.bf16.msra.mxu1 %v7455_v34  ;;  %v7493_v34 = vld [vmem:[%s9785_s1 + $0x7c4] ss:$8 sps:$4 sm:$0xff]  }
 0x1dc   :  { %5507 = vmatpush1.bf16.msra.mxu0 %v7458_v37  ;;  %4764 = vmatprep.subr.bf16.mxu1 %v7463_v40  ;;  %v7496_v37 = vld [vmem:[%s9785_s1 + $0xfc4] ss:$8 sps:$4 sm:$0xff]   ;;  %v7499_v40 = vld [vmem:[%s9785_s1 + $0x7d4] ss:$8 sps:$4 sm:$0xff]  }
 0x1dd   :  { %5508 = vmatprep.subr.bf16.mxu0 %v7466_v43  ;;  %4729 = vmatprep.mubr.bf16.mxu1 %v682_v19  ;;  %v7484_v19 = vld [vmem:[%s9785_s1 + $0xfa4] ss:$8 sps:$4 sm:$0xff]   ;;  %v7502_v43 = vld [vmem:[%s9785_s1 + $0xfd4] ss:$8 sps:$4 sm:$0xff]  }
 0x1de   :  { %5473 = vmatprep.mubr.bf16.mxu0 %v686_v44 }
 0x1df   :  { %4765 = vmatpush1.bf16.msra.mxu1 %v7461_v51  ;;  %v7508_v51 = vld [vmem:[%s9785_s1 + $0xfe4] ss:$8 sps:$4 sm:$0xff]  }
 0x1e0   :  { %5509 = vmatpush1.bf16.msra.mxu0 %v7464_v52  ;;  %4766 = vmatprep.subr.bf16.mxu1 %v7469_v5  ;;  %v7503_v52 = vld [vmem:[%s9785_s1 + $0x7e0] ss:$8 sps:$4 sm:$0xff]   ;;  %v7511_v5 = vld [vmem:[%s9785_s1 + $0x7f4] ss:$8 sps:$4 sm:$0xff]  }
 0x1e1   :  { %5510 = vmatprep.subr.bf16.mxu0 %v7472_v55  ;;  %v7514_v55 = vld [vmem:[%s9785_s1 + $0xff4] ss:$8 sps:$4 sm:$0xff]  }
 0x1e2   :  { %4730 = vmatmul.mubr.bf16.gmra.mrb[16].mxu1 %v663_v38  ;;  %v7494_v38 = vld [vmem:[%s9785_s1 + $0xfc0] ss:$8 sps:$4 sm:$0xff]  }
 0x1e3   :  { %5474 = vmatmul.mubr.bf16.gmra.mrb[16].mxu0 %v665_v17  ;;  %4767 = vmatpush1.bf16.msra.mxu1 %v7467_v59  ;;  %v7509_v59 = vld [vmem:[%s9785_s1 + $0x7f0] ss:$8 sps:$4 sm:$0xff]  }
 0x1e4   :  { %5511 = vmatpush1.bf16.msra.mxu0 %v7470_v0  ;;  %4768 = vmatprep.subr.bf16.mxu1 %v7475_v2  ;;  %v7512_v0 = vld [vmem:[%s9785_s1 + $0xff0] ss:$8 sps:$4 sm:$0xff]   ;;  %v288_v2 = vrot.slane %v7716_v54, 7  ;;  %v292_v54 = vrot.slane %v7811_v27, 7  ;;  %v708_v27 = vor.u32 %v707_v18, %v7914_v9  ;;  %v696_v9 = vrot.slane %v7916_v10, 7 }
 0x1e5   :  { %5512 = vmatprep.subr.bf16.mxu0 %v7478_v6  ;;  %4739 = vmatprep.mubr.bf16.mxu1 %v686_v44  ;;  %v7497_v44 = vld [vmem:[%s9785_s1 + $0x7d0] ss:$8 sps:$4 sm:$0xff]   ;;  %v290_v6 = vrot.slane %v7736_v61, 7 }
 0x1e6   :  { %5483 = vmatprep.mubr.bf16.mxu0 %v817_v7 }
 0x1e7   :  { %4769 = vmatpush1.bf16.msra.mxu1 %v7473_v15  ;;  %v291_v48 = vsel %vm286_vm14, %v288_v2, %v290_v6  ;;  %v310_v15 = vsel %vm300_vm13, %v305_v13, %v309_v36  ;;  %v293_v32 = vsel %vm286_vm14, %v290_v6, %v292_v54  ;;  %v706_v13 = vrot.slane %v7899_v4, 7 }
 0x1e8   :  { %5513 = vmatpush1.bf16.msra.mxu0 %v7476_v16  ;;  %4770 = vmatprep.subr.bf16.mxu1 %v7481_v63  ;;  %v694_v4 = vrot.slane %v7893_v1, 7  ;;  %v829_v1 = vor.u32 %v828_v49, %v8000_v50  ;;  %v5671_v49 = vlaneseq }
 0x1e9   :  { %5514 = vmatprep.subr.bf16.mxu0 %v7484_v19  ;;  %v709_v19 = vsel %vm300_vm13, %v706_v13, %v708_v27 }
 0x1ea   :  { %4740 = vmatmul.mubr.bf16.gmra.mrb[20].mxu1 %v665_v17  ;;  %v287_v17 = vrot.slane %v7714_v53, 7  ;;  %v423_v53 = vrot.slane %v8137_v22, 7  ;;  %v417_v22 = vrot.slane %v7851_v42, 7  ;;  %v693_v42 = vrot.slane %v7882_v56, 7 }
 0x1eb   :  { %5484 = vmatmul.mubr.bf16.gmra.mrb[20].mxu0 %v809_v26  ;;  %4771 = vmatpush1.bf16.msra.mxu1 %v7479_v41  ;;  %v697_v21 = vsel %vm286_vm14, %v694_v4, %v696_v9  ;;  %v698_v56 = vrot.slane %v7957_v30, 7  ;;  %v822_v41 = vrot.slane %v7991_v47, 7 }
 0x1ec   :  { %5515 = vmatpush1.bf16.msra.mxu0 %v7482_v25  ;;  %4772 = vmatprep.subr.bf16.mxu1 %v7487_v58  ;;  %v289_v7 = vsel %vm286_vm14, %v287_v17, %v288_v2  ;;  %v424_v61 = vor.u32 %v423_v53, %v7861_v46  ;;  %v711_v46 = vor.u32 %v710_v23, %v7924_v14 }
 0x1ed   :  { %5516 = vmatprep.subr.bf16.mxu0 %v7490_v60  ;;  %4782 = vmatprep.mubr.bf16.mxu1 %v304_v3  ;;  %v418_v63 = vsel %vm286_vm14, %v292_v54, %v417_v22  ;;  %v714_v14 = vor.u32 %v713_v31, %v7969_v35  ;;  %v695_v39 = vsel %vm286_vm14, %v693_v42, %v694_v4 }
 0x1ee   :  { %5526 = vmatprep.mubr.bf16.mxu0 %v307_v8  ;;  %v425_v16 = vsel %vm300_vm13, %v308_v62, %v424_v61  ;;  %v712_v11 = vsel %vm300_vm13, %v707_v18, %v711_v46  ;;  %v699_v10 = vsel %vm286_vm14, %v696_v9, %v698_v56  ;;  %v830_v35 = vsel %vm300_vm13, %v713_v31, %v829_v1 }
 0x1ef   :  { %4773 = vmatpush1.bf16.msra.mxu1 %v7485_v29  ;;  %v715_v24 = vsel %vm300_vm13, %v710_v23, %v714_v14  ;;  %v823_v57 = vsel %vm286_vm14, %v698_v56, %v822_v41 }
 0x1f0   :  { %5517 = vmatpush1.bf16.msra.mxu0 %v7488_v33  ;;  %4774 = vmatprep.subr.bf16.mxu1 %v7493_v34 }
 0x1f1   :  { %5518 = vmatprep.subr.bf16.mxu0 %v7496_v37 }
 0x1f3   :  { %4775 = vmatpush1.bf16.msra.mxu1 %v7491_v20 }
 0x1f4   :  { %5519 = vmatpush1.bf16.msra.mxu0 %v7494_v38  ;;  %4776 = vmatprep.subr.bf16.mxu1 %v7499_v40 }
 0x1f5   :  { %5520 = vmatprep.subr.bf16.mxu0 %v7502_v43 }
 0x1f7   :  { %4777 = vmatpush1.bf16.msra.mxu1 %v7497_v44 }
 0x1f8   :  { %5521 = vmatpush1.bf16.msra.mxu0 %v7500_v45  ;;  %4778 = vmatprep.subr.bf16.mxu1 %v7505_v28 }
 0x1f9   :  { %5522 = vmatprep.subr.bf16.mxu0 %v7508_v51 }
 0x1fb   :  { %4779 = vmatpush1.bf16.msra.mxu1 %v7503_v52 }
 0x1fc   :  { %5523 = vmatpush1.bf16.msra.mxu0 %v7506_v12  ;;  %4780 = vmatprep.subr.bf16.mxu1 %v7511_v5 }
 0x1fd   :  { %5524 = vmatprep.subr.bf16.mxu0 %v7514_v55 }
 0x1ff   :  { %4781 = vmatpush1.bf16.msra.mxu1 %v7509_v59 }
 0x200   :  { %5525 = vmatpush1.bf16.msra.mxu0 %v7512_v0 }
 0x202   :  { %4783 = vmatmul.mubr.bf16.vlgmr.msra.gmra.mrb[0].mxu1 %v289_v7 }
 0x203   :  { %5527 = vmatmul.mubr.bf16.vlgmr.msra.gmra.mrb[0].mxu0 %v291_v48  ;;  %4792 = vmatprep.mubr.bf16.mxu1 %v307_v8 }
 0x204   :  { %5536 = vmatprep.mubr.bf16.mxu0 %v310_v15 }
 0x20a   :  { %4793 = vmatmul.mubr.bf16.gmra.mrb[4].mxu1 %v291_v48 }
 0x20b   :  { %5537 = vmatmul.mubr.bf16.gmra.mrb[4].mxu0 %v293_v32  ;;  %4802 = vmatprep.mubr.bf16.mxu1 %v310_v15 }
 0x20c   :  { %5546 = vmatprep.mubr.bf16.mxu0 %v425_v16 }
 0x212   :  { %4803 = vmatmul.mubr.bf16.gmra.mrb[8].mxu1 %v293_v32 }
 0x213   :  { %5547 = vmatmul.mubr.bf16.gmra.mrb[8].mxu0 %v418_v63  ;;  %4812 = vmatprep.mubr.bf16.mxu1 %v709_v19 }
 0x214   :  { %5556 = vmatprep.mubr.bf16.mxu0 %v712_v11 }
 0x21a   :  { %4813 = vmatmul.mubr.bf16.gmra.mrb[12].mxu1 %v695_v39 }
 0x21b   :  { %5557 = vmatmul.mubr.bf16.gmra.mrb[12].mxu0 %v697_v21  ;;  %4822 = vmatprep.mubr.bf16.mxu1 %v712_v11 }
 0x21c   :  { %5566 = vmatprep.mubr.bf16.mxu0 %v715_v24 }
 0x222   :  { %4823 = vmatmul.mubr.bf16.gmra.mrb[16].mxu1 %v697_v21 }
 0x223   :  { %5567 = vmatmul.mubr.bf16.gmra.mrb[16].mxu0 %v699_v10  ;;  %4832 = vmatprep.mubr.bf16.mxu1 %v715_v24 }
 0x224   :  { %5576 = vmatprep.mubr.bf16.mxu0 %v830_v35 }
 0x22a   :  { %4833 = vmatmul.mubr.bf16.gmra.mrb[20].mxu1 %v699_v10 }
 0x22b   :  { %5577 = vmatmul.mubr.bf16.gmra.mrb[20].mxu0 %v823_v57 }
 0x2d5   :  { %v4784_v25 = vpop.f32.mrb[0].mxu1 }
 0x2d6   :  { %v5528_v26 = vpop.f32.mrb[0].mxu0  ;;  %v4786_v30 = vpop.f32.mrb[1].mxu1 }
 0x2d7   :  { %v6382_v58 = vadd.f32 %v5528_v26, %v4784_v25  ;;  %v5530_v60 = vpop.f32.mrb[1].mxu0  ;;  %v4788_v3 = vpop.f32.mrb[2].mxu1  ;;  %v5672_v26 = vshrl.u32 %v5671_v49, 7 }
 0x2d8   :  { %v6383_v50 = vadd.f32 %v5530_v60, %v4786_v30  ;;  %v5532_v8 = vpop.f32.mrb[2].mxu0  ;;  %v4790_v34 = vpop.f32.mrb[3].mxu1 }
 0x2d9   :  { %v5587_v29 = vmul.f32 %v6382_v58, %v6382_v58  ;;  %v6384_v33 = vadd.f32 %v5532_v8, %v4788_v3  ;;  %v5534_v37 = vpop.f32.mrb[3].mxu0 }
 0x2da   :  { %v5599_v20 = vmul.f32 %v6383_v50, %v6383_v50  ;;  %v6385_v38 = vadd.f32 %v5534_v37, %v4790_v34  ;;  %v9641_v37 = vand.u32 127, %v5671_v49 }
 0x2db   :  { %v5588_v40 = vmul.f32 %v6384_v33, %v6384_v33 }
 0x2dc   :  { %v5611_v47 = vadd.f32 %v5599_v20, %v5587_v29  ;;  %v5600_v43 = vmul.f32 %v6385_v38, %v6385_v38  ;;  %vm5686_vm15 = vcmp.lt.s32.totalorder %v9641_v37, 96 }
 0x2dd   :  { %v4794_v45 = vpop.f32.mrb[4].mxu1 }
 0x2de   :  { %v5612_v44 = vadd.f32 %v5600_v43, %v5588_v40  ;;  %v5538_v28 = vpop.f32.mrb[4].mxu0  ;;  %v4796_v52 = vpop.f32.mrb[5].mxu1  ;;  %v5623_v0 = vadd.f32 1e-10, %v5611_v47  ;;  %v5676_v47 = vadd.s32 32, %v5672_v26 }
 0x2df   :  { %v6386_v51 = vadd.f32 %v5538_v28, %v4794_v45  ;;  %v5540_v12 = vpop.f32.mrb[5].mxu0  ;;  %v4798_v62 = vpop.f32.mrb[6].mxu1 }
 0x2e0   :  { %v5624_v5 = vadd.f32 1e-10, %v5612_v44  ;;  %v6387_v55 = vadd.f32 %v5540_v12, %v4796_v52  ;;  %v5542_v59 = vpop.f32.mrb[6].mxu0  ;;  %v4800_v6 = vpop.f32.mrb[7].mxu1  ;;  %vm5684_vm0 = vcmp.lt.s32.totalorder %v5676_v47, 33 }
 0x2e1   :  { %v5589_v17 = vmul.f32 %v6386_v51, %v6386_v51  ;;  %v6388_v2 = vadd.f32 %v5542_v59, %v4798_v62  ;;  %v5544_v36 = vpop.f32.mrb[7].mxu0  ;;  %vm9662_vm1 = vmand %vm5684_vm0, %vm5686_vm15 }
 0x2e2   :  { %v5601_v7 = vmul.f32 %v6387_v55, %v6387_v55  ;;  %v6389_v48 = vadd.f32 %v5544_v36, %v4800_v6  ;;  %7515 = vlog2.f32 %v5624_v5 }
 0x2e3   :  { %v5590_v15 = vmul.f32 %v6388_v2, %v6388_v2  ;;  %7517 = vlog2.f32 %v5623_v0 }
 0x2e4   :  { %v5613_v53 = vadd.f32 %v5601_v7, %v5589_v17  ;;  %v5602_v54 = vmul.f32 %v6389_v48, %v6389_v48 }
 0x2e5   :  { %v4804_v32 = vpop.f32.mrb[8].mxu1 }
 0x2e6   :  { %v5614_v61 = vadd.f32 %v5602_v54, %v5590_v15  ;;  %v5548_v16 = vpop.f32.mrb[8].mxu0  ;;  %v4806_v23 = vpop.f32.mrb[9].mxu1  ;;  %v5625_v13 = vadd.f32 1e-10, %v5613_v53 }
 0x2e7   :  { %v6390_v18 = vadd.f32 %v5548_v16, %v4804_v32  ;;  %v5550_v22 = vpop.f32.mrb[9].mxu0  ;;  %v4808_v63 = vpop.f32.mrb[10].mxu1 }
 0x2e8   :  { %v5626_v27 = vadd.f32 1e-10, %v5614_v61  ;;  %v6391_v46 = vadd.f32 %v5550_v22, %v4806_v23  ;;  %v5552_v19 = vpop.f32.mrb[10].mxu0  ;;  %v4810_v31 = vpop.f32.mrb[11].mxu1 }
 0x2e9   :  { %v5591_v11 = vmul.f32 %v6390_v18, %v6390_v18  ;;  %v5554_v42 = vpop.f32.mrb[11].mxu0 }
 0x2ea   :  { %7519 = vlog2.f32 %v5626_v27  ;;  %v5603_v4 = vmul.f32 %v6391_v46, %v6391_v46 }
 0x2eb   :  { %7521 = vlog2.f32 %v5625_v13 }
 0x2ec   :  { %v5615_v9 = vadd.f32 %v5603_v4, %v5591_v11  ;;  %v7516_v14 = vpop.eup %7515 }
 0x2ed   :  { %v4814_v21 = vpop.f32.mrb[12].mxu1  ;;  %v7518_v56 = vpop.eup %7517  ;;  %v5638_v58 = vmul.f32 0.6931472, %v7516_v14 }
 0x2ee   :  { %v5627_v39 = vadd.f32 1e-10, %v5615_v9  ;;  %v5558_v24 = vpop.f32.mrb[12].mxu0  ;;  %v4816_v10 = vpop.f32.mrb[13].mxu1  ;;  %v5636_v8 = vmul.f32 0.6931472, %v7518_v56 }
 0x2ef   :  { %v6392_v1 = vadd.f32 %v5558_v24, %v4814_v21  ;;  %v5560_v35 = vpop.f32.mrb[13].mxu0  ;;  %v4818_v57 = vpop.f32.mrb[14].mxu1  ;;  %v9643_v43 = vmul.f32 4.3429446, %v5638_v58 }
 0x2f0   :  { %7523 = vlog2.f32 %v5627_v39  ;;  %v6393_v41 = vadd.f32 %v5560_v35, %v4816_v10  ;;  %v5562_v25 = vpop.f32.mrb[14].mxu0  ;;  %v4820_v50 = vpop.f32.mrb[15].mxu1  ;;  %v9645_v45 = vmul.f32 4.3429446, %v5636_v8 }
 0x2f1   :  { %v5593_v30 = vmul.f32 %v6392_v1, %v6392_v1  ;;  %v6394_v60 = vadd.f32 %v5562_v25, %v4818_v57  ;;  %v5564_v3 = vpop.f32.mrb[15].mxu0  ;;  %v5694_v15 = vsel %vm5686_vm15, %v9643_v43, 3e+38  ;;  %v5715_v13 = vsel %vm5686_vm15, %v9643_v43, -3e+38 }
 0x2f2   :  { %v5605_v29 = vmul.f32 %v6393_v41, %v6393_v41  ;;  %v6395_v33 = vadd.f32 %v5564_v3, %v4820_v50  ;;  %v5693_v16 = vsel %vm5686_vm15, %v9645_v45, 3e+38  ;;  %v5700_v19 = vmin.f32 %v5694_v15, 3e+38 }
 0x2f3   :  { %v5594_v34 = vmul.f32 %v6394_v60, %v6394_v60  ;;  %v5714_v11 = vsel %vm5686_vm15, %v9645_v45, -3e+38  ;;  %v5721_v24 = vmax.f32 %v5715_v13, -3e+38 }
 0x2f4   :  { %v7520_v20 = vpop.eup %7519  ;;  %v5617_v38 = vadd.f32 %v5605_v29, %v5593_v30  ;;  %v5606_v40 = vmul.f32 %v6395_v33, %v6395_v33 }
 0x2f5   :  { %v7522_v44 = vpop.eup %7521  ;;  %v5642_v28 = vmul.f32 0.6931472, %v7520_v20  ;;  %v4824_v52 = vpop.f32.mrb[16].mxu1 }
 0x2f6   :  { %v5618_v51 = vadd.f32 %v5606_v40, %v5594_v34  ;;  %v5568_v12 = vpop.f32.mrb[16].mxu0  ;;  %v4826_v55 = vpop.f32.mrb[17].mxu1  ;;  %v5640_v2 = vmul.f32 0.6931472, %v7522_v44  ;;  %v5629_v4 = vadd.f32 1e-10, %v5617_v38 }
 0x2f7   :  { %v6396_v5 = vadd.f32 %v5568_v12, %v4824_v52  ;;  %v5570_v62 = vpop.f32.mrb[17].mxu0  ;;  %v4828_v0 = vpop.f32.mrb[18].mxu1  ;;  %v9651_v54 = vmul.f32 4.3429446, %v5642_v28 }
 0x2f8   :  { %v6397_v59 = vadd.f32 %v5570_v62, %v4826_v55  ;;  %v5572_v17 = vpop.f32.mrb[18].mxu0  ;;  %v4830_v7 = vpop.f32.mrb[19].mxu1  ;;  %v5630_v23 = vadd.f32 1e-10, %v5618_v51  ;;  %v9669_v31 = vmul.f32 4.3429446, %v5640_v2 }
 0x2f9   :  { %v5595_v6 = vmul.f32 %v6396_v5, %v6396_v5  ;;  %v6398_v36 = vadd.f32 %v5572_v17, %v4828_v0  ;;  %v5574_v48 = vpop.f32.mrb[19].mxu0  ;;  %v5696_v21 = vsel %vm5686_vm15, %v9651_v54, 3e+38  ;;  %v5717_v38 = vsel %vm5686_vm15, %v9651_v54, -3e+38 }
 0x2fa   :  { %v7524_v53 = vpop.eup %7523  ;;  %v5607_v61 = vmul.f32 %v6397_v59, %v6397_v59  ;;  %v6399_v32 = vadd.f32 %v5574_v48, %v4830_v7  ;;  %7525 = vlog2.f32 %v5630_v23  ;;  %v5695_v8 = vsel %vm5686_vm15, %v9669_v31, 3e+38 }
 0x2fb   :  { %v5644_v18 = vmul.f32 0.6931472, %v7524_v53  ;;  %v5596_v22 = vmul.f32 %v6398_v36, %v6398_v36  ;;  %7527 = vlog2.f32 %v5629_v4  ;;  %v5702_v20 = vmin.f32 %v5695_v8, %v5696_v21 }
 0x2fc   :  { %v5619_v27 = vadd.f32 %v5607_v61, %v5595_v6  ;;  %v5608_v46 = vmul.f32 %v6399_v32, %v6399_v32  ;;  %v5716_v28 = vsel %vm5686_vm15, %v9669_v31, -3e+38 }
 0x2fd   :  { %v9671_v42 = vmul.f32 4.3429446, %v5644_v18  ;;  %v4834_v14 = vpop.f32.mrb[20].mxu1  ;;  %v5723_v52 = vmax.f32 %v5716_v28, %v5717_v38 }
 0x2fe   :  { %v5620_v9 = vadd.f32 %v5608_v46, %v5596_v22  ;;  %v5578_v39 = vpop.f32.mrb[20].mxu0  ;;  %v4836_v56 = vpop.f32.mrb[21].mxu1  ;;  %v5631_v41 = vadd.f32 1e-10, %v5619_v27 }
 0x2ff   :  { %v6400_v49 = vadd.f32 %v5578_v39, %v4834_v14  ;;  %v5580_v1 = vpop.f32.mrb[21].mxu0  ;;  %v5697_v10 = vsel %vm9662_vm1, %v9671_v42, 3e+38  ;;  %v5718_v35 = vsel %vm9662_vm1, %v9671_v42, -3e+38  ;;  %v4838_v26 = vpop.f32.mrb[22].mxu1 }
 0x300   :  { %v5632_v57 = vadd.f32 1e-10, %v5620_v9  ;;  %v6401_v25 = vadd.f32 %v5580_v1, %v4836_v56  ;;  %v5582_v58 = vpop.f32.mrb[22].mxu0  ;;  %v5699_v30 = vmin.f32 %v5693_v16, %v5697_v10  ;;  %v4840_v50 = vpop.f32.mrb[23].mxu1  ;;  %v5720_v29 = vmax.f32 %v5714_v11, %v5718_v35 }
 0x301   :  { %v5597_v60 = vmul.f32 %v6400_v49, %v6400_v49  ;;  %v5584_v3 = vpop.f32.mrb[23].mxu0 }
 0x302   :  { %7529 = vlog2.f32 %v5632_v57  ;;  %v5609_v33 = vmul.f32 %v6401_v25, %v6401_v25  ;;  %v5701_v34 = vmin.f32 %v5699_v30, %v5700_v19  ;;  %v5722_v44 = vmax.f32 %v5720_v29, %v5721_v24 }
 0x303   :  { %7531 = vlog2.f32 %v5631_v41  ;;  %v7539_v41 = vmov 0.0  }
 0x304   :  { %v5621_v40 = vadd.f32 %v5609_v33, %v5597_v60  ;;  %v5703_v47 = vmin.f32 %v5701_v34, %v5702_v20  ;;  %v5724_v12 = vmax.f32 %v5722_v44, %v5723_v52  ;;  %v7526_v5 = vpop.eup %7525  ;;  %5770 = vst [vmem:[%s9787_s2 + $0x28] sm:$0xff] %v7539_v41  ;;  %6381 = vst [vmem:[%s9787_s2 + $0x58] sm:$0xff] %v7539_v41 }
 0x305   :  { %v7528_v55 = vpop.eup %7527  ;;  %v5650_v59 = vmul.f32 0.6931472, %v7526_v5 }
 0x306   :  { %v5633_v51 = vadd.f32 1e-10, %v5621_v40  ;;  %5704 = vmin.xlane.f32.xlu0 %v5703_v47  ;;  %v5648_v17 = vmul.f32 0.6931472, %v7528_v55 }
 0x307   :  { %v9691_v6 = vmul.f32 4.3429446, %v5650_v59 }
 0x308   :  { %7533 = vlog2.f32 %v5633_v51  ;;  %v9693_v48 = vmul.f32 4.3429446, %v5648_v17 }
 0x309   :  { %v5772_v16 = vsel %vm5686_vm15, %v9691_v6, 3e+38  ;;  %v5793_v22 = vsel %vm5686_vm15, %v9691_v6, -3e+38 }
 0x30a   :  { %5725 = vmax.xlane.f32.xlu0 %v5724_v12  ;;  %v5771_v18 = vsel %vm5686_vm15, %v9693_v48, 3e+38  ;;  %v5792_v23 = vsel %vm5686_vm15, %v9693_v48, -3e+38  ;;  %v5778_v11 = vmin.f32 %v5772_v16, 3e+38 }
 0x30b   :  { %v5799_v21 = vmax.f32 %v5793_v22, -3e+38 }
 0x30c   :  { %v7530_v62 = vpop.eup %7529 }
 0x30d   :  { %v7532_v0 = vpop.eup %7531  ;;  %v5654_v2 = vmul.f32 0.6931472, %v7530_v62 }
 0x30e   :  { %v5652_v36 = vmul.f32 0.6931472, %v7532_v0 }
 0x30f   :  { %v9695_v15 = vmul.f32 4.3429446, %v5654_v2 }
 0x310   :  { %v9697_v61 = vmul.f32 4.3429446, %v5652_v36 }
 0x311   :  { %v5774_v13 = vsel %vm5686_vm15, %v9695_v15, 3e+38  ;;  %v5795_v24 = vsel %vm5686_vm15, %v9695_v15, -3e+38 }
 0x312   :  { %v7534_v7 = vpop.eup %7533  ;;  %v5773_v9 = vsel %vm5686_vm15, %v9697_v61, 3e+38  ;;  %v5794_v1 = vsel %vm5686_vm15, %v9697_v61, -3e+38 }
 0x313   :  { %v5656_v53 = vmul.f32 0.6931472, %v7534_v7  ;;  %v5780_v39 = vmin.f32 %v5773_v9, %v5774_v13  ;;  %v5801_v10 = vmax.f32 %v5794_v1, %v5795_v24 }
 0x315   :  { %v9699_v32 = vmul.f32 4.3429446, %v5656_v53 }
 0x317   :  { %v5775_v27 = vsel %vm9662_vm1, %v9699_v32, 3e+38  ;;  %v5796_v46 = vsel %vm9662_vm1, %v9699_v32, -3e+38 }
 0x318   :  { %v5777_v19 = vmin.f32 %v5771_v18, %v5775_v27  ;;  %v5798_v4 = vmax.f32 %v5792_v23, %v5796_v46 }
 0x31a   :  { %v5779_v14 = vmin.f32 %v5777_v19, %v5778_v11  ;;  %v5800_v56 = vmax.f32 %v5798_v4, %v5799_v21 }
 0x31c   :  { %v5781_v49 = vmin.f32 %v5779_v14, %v5780_v39  ;;  %v5802_v35 = vmax.f32 %v5800_v56, %v5801_v10 }
 0x31e   :  { %5782 = vmin.xlane.f32.xlu1 %v5781_v49 }
 0x322   :  { %5803 = vmax.xlane.f32.xlu1 %v5802_v35 }
 0x393   :  { %v5705_v57 = vpop.xlane.xlu0 %5704 }
 0x394   :  { %v5706_v25 = vrot.slane %v5705_v57, 4 }
 0x396   :  { %v5707_v26 = vmin.f32 %v5705_v57, %v5706_v25 }
 0x397   :  { %v5726_v58 = vpop.xlane.xlu0 %5725 }
 0x398   :  { %v5708_v30 = vrot.slane %v5707_v26, 2  ;;  %v5727_v60 = vrot.slane %v5726_v58, 4 }
 0x39a   :  { %v5728_v50 = vmax.f32 %v5726_v58, %v5727_v60  ;;  %v5709_v3 = vmin.f32 %v5707_v26, %v5708_v30 }
 0x39c   :  { %v5729_v8 = vrot.slane %v5728_v50, 2  ;;  %v5710_v29 = vrot.slane %v5709_v3, 1 }
 0x39e   :  { %v5730_v33 = vmax.f32 %v5728_v50, %v5729_v8  ;;  %v5711_v34 = vmin.f32 %v5709_v3, %v5710_v29 }
 0x3a0   :  { %6738 = vpush %v5711_v34  ;;  %v5731_v20 = vrot.slane %v5730_v33, 1 }
 0x3a2   :  { %v5732_v38 = vmax.f32 %v5730_v33, %v5731_v20 }
 0x3a4   :  { %6740 = vpush %v5732_v38 }
 0x3ab   :  { %v5783_v40 = vpop.xlane.xlu1 %5782 }
 0x3ac   :  { %v5784_v47 = vrot.slane %v5783_v40, 4 }
 0x3ae   :  { %v5785_v44 = vmin.f32 %v5783_v40, %v5784_v47 }
 0x3af   :  { %v5804_v28 = vpop.xlane.xlu1 %5803 }
 0x3b0   :  { %v5786_v51 = vrot.slane %v5785_v44, 2  ;;  %v5805_v52 = vrot.slane %v5804_v28, 4 }
 0x3b2   :  { %v5806_v12 = vmax.f32 %v5804_v28, %v5805_v52  ;;  %v5787_v5 = vmin.f32 %v5785_v44, %v5786_v51 }
 0x3b4   :  { %v5807_v55 = vrot.slane %v5806_v12, 2  ;;  %v5788_v62 = vrot.slane %v5787_v5, 1 }
 0x3b6   :  { %v5808_v59 = vmax.f32 %v5806_v12, %v5807_v55  ;;  %v5789_v0 = vmin.f32 %v5787_v5, %v5788_v62 }
 0x3b8   :  { %6742 = vpush %v5789_v0  ;;  %v5809_v17 = vrot.slane %v5808_v59, 1 }
 0x3ba   :  { %v5810_v2 = vmax.f32 %v5808_v59, %v5809_v17 }
 0x3bc   :  { %6744 = vpush %v5810_v2 }
 0x3d1   :  { %s6739_s11 = spop %6738 }
 0x3d2   :  { %v5713_v36 = vstv %s6739_s11 }
 0x3d3   :  { %v5747_v18 = vsub.f32 %v9645_v45, %v5713_v36  ;;  %v5748_v23 = vsub.f32 %v9643_v43, %v5713_v36  ;;  %v5749_v22 = vsub.f32 %v9669_v31, %v5713_v36  ;;  %v5750_v13 = vsub.f32 %v9651_v54, %v5713_v36 }
 0x3d4   :  { %v5751_v46 = vsub.f32 %v9671_v42, %v5713_v36 }
 0x3d5   :  { %s6741_s12 = spop %6740 }
 0x3d6   :  { %v5734_v7 = vstv %s6741_s12 }
 0x3d7   :  { %v5735_v53 = vsub.f32 %v5734_v7, %v5713_v36 }
 0x3d9   :  { %v5736_v16 = vmax.f32 %v5735_v53, 1e-20  ;;  %vm5738_vm2 = vcmp.gt.f32.partialorder %v5735_v53, 0.0 }
 0x3da   :  { %vm5741_vm3 = vmand %vm5686_vm15, %vm5738_vm2 }
 0x3db   :  { %7535 = vrcp.f32 %v5736_v16  ;;  %vm5745_vm4 = vmand %vm9662_vm1, %vm5738_vm2 }
 0x3e5   :  { %v7536_v27 = vpop.eup %7535 }
 0x3e6   :  { %v5753_v19 = vmul.f32 %v7536_v27, %v5747_v18  ;;  %v5754_v11 = vmul.f32 %v7536_v27, %v5748_v23  ;;  %v5755_v4 = vmul.f32 %v7536_v27, %v5749_v22  ;;  %v5756_v9 = vmul.f32 %v7536_v27, %v5750_v13 }
 0x3e7   :  { %v5757_v14 = vmul.f32 %v7536_v27, %v5751_v46 }
 0x3e8   :  { %v5759_v43 = vsel %vm5741_vm3, %v5753_v19, 0.0  ;;  %v5760_v45 = vsel %vm5741_vm3, %v5754_v11, 0.0  ;;  %v5761_v31 = vsel %vm5741_vm3, %v5755_v4, 0.0  ;;  %v5762_v39 = vsel %vm5741_vm3, %v5756_v9, 0.0 }
 0x3e9   :  { %v5763_v54 = vsel %vm5745_vm4, %v5757_v14, 0.0  ;;  %5765 = vst [vmem:[%s9787_s2] sm:$0xff] %v5759_v43  ;;  %5766 = vst [vmem:[%s9787_s2 + $0x8] sm:$0xff] %v5760_v45  ;;  %s6743_s22 = spop %6742 }
 0x3ea   :  { %5767 = vst [vmem:[%s9787_s2 + $0x10] sm:$0xff] %v5761_v31  ;;  %5768 = vst [vmem:[%s9787_s2 + $0x18] sm:$0xff] %v5762_v39  ;;  %v5791_v42 = vstv %s6743_s22 }
 0x3eb   :  { %5769 = vst [vmem:[%s9787_s2 + $0x20] sm:$0xff] %v5763_v54  ;;  %v5825_v56 = vsub.f32 %v9693_v48, %v5791_v42  ;;  %v5826_v1 = vsub.f32 %v9691_v6, %v5791_v42  ;;  %v5827_v10 = vsub.f32 %v9697_v61, %v5791_v42  ;;  %v5828_v35 = vsub.f32 %v9695_v15, %v5791_v42 }
 0x3ec   :  { %v5829_v57 = vsub.f32 %v9699_v32, %v5791_v42 }
 0x3ed   :  { %s6745_s23 = spop %6744 }
 0x3ee   :  { %v5812_v21 = vstv %s6745_s23 }
 0x3ef   :  { %v5813_v24 = vsub.f32 %v5812_v21, %v5791_v42 }
 0x3f1   :  { %v5814_v49 = vmax.f32 %v5813_v24, 1e-20  ;;  %vm5816_vm5 = vcmp.gt.f32.partialorder %v5813_v24, 0.0 }
 0x3f2   :  { %vm5819_vm6 = vmand %vm5686_vm15, %vm5816_vm5 }
 0x3f3   :  { %7537 = vrcp.f32 %v5814_v49  ;;  %vm5823_vm7 = vmand %vm9662_vm1, %vm5816_vm5 }
 0x3fd   :  { %v7538_v41 = vpop.eup %7537 }
 0x3fe   :  { %v5831_v25 = vmul.f32 %v7538_v41, %v5825_v56  ;;  %v5832_v26 = vmul.f32 %v7538_v41, %v5826_v1  ;;  %v5833_v58 = vmul.f32 %v7538_v41, %v5827_v10  ;;  %v5834_v30 = vmul.f32 %v7538_v41, %v5828_v35 }
 0x3ff   :  { %v5835_v60 = vmul.f32 %v7538_v41, %v5829_v57 }
 0x400   :  { %v5837_v6 = vsel %vm5819_vm6, %v5831_v25, 0.0  ;;  %v5838_v48 = vsel %vm5819_vm6, %v5832_v26, 0.0  ;;  %v5839_v61 = vsel %vm5819_vm6, %v5833_v58, 0.0  ;;  %v5840_v50 = vsel %vm5819_vm6, %v5834_v30, 0.0 }
 0x401   :  { %v5841_v15 = vsel %vm5823_vm7, %v5835_v60, 0.0  ;;  %6376 = vst [vmem:[%s9787_s2 + $0x30] sm:$0xff] %v5837_v6  ;;  %6377 = vst [vmem:[%s9787_s2 + $0x38] sm:$0xff] %v5838_v48 }
 0x402   :  { %6378 = vst [vmem:[%s9787_s2 + $0x40] sm:$0xff] %v5839_v61  ;;  %6379 = vst [vmem:[%s9787_s2 + $0x48] sm:$0xff] %v5840_v50 }
 0x403   :  { %6380 = vst [vmem:[%s9787_s2 + $0x50] sm:$0xff] %v5841_v15 }

</bundles_post_ra>
